<compile_context>
chip_gen: v6e
topology: v6e:2x2x1
jax: 0.10.0
libtpu: 0.0.40
codegen_flags: <defaults>
</compile_context>

<pallas_src>
from functools import partial

import numpy as np
import jax
import jax.numpy as jnp
from jax.experimental import pallas as pl
from jax.experimental.pallas import tpu as pltpu

# ----- module hyperparameters (from LibrosaMelSpectrogram.__init__) -----
SAMPLE_RATE = 16000
WIN_LENGTH = 400
N_FFT = 512
HOP_LENGTH = 160
N_MELS = 80
FMIN = 0.0
FMAX = None            # -> sr / 2
TOP_DB = 120.0
AMIN = 1e-10
# librosa < 0.10 (and torchaudio) use 'reflect' for center padding; librosa >=
# 0.10 defaults to 'constant'.  Keep 'reflect' (classic behavior).
PAD_MODE = "reflect"   # TODO(synk): flip to "constant" if the reference runs librosa>=0.10

N_FREQ = N_FFT // 2 + 1          # 257 rfft bins
FREQ_KEEP = 256                  # drop Nyquist bin (slaney weight there is 0 for fmax<=sr/2)
MEL_PAD = 128                    # 80 padded up to 128
MAX_TM = 512                     # max frame rows per grid step
_STEP_OVERHEAD_ROWS = 32         # ~0.35 us per-grid-step overhead, in frame-rows

# Nyquist-bin drop is only exact while fmax <= sr/2; guard against silent changes.
assert FMAX is None or FMAX <= SAMPLE_RATE / 2, "FREQ_KEEP=256 requires fmax <= sr/2"


# ----------------- deterministic parameter construction -----------------
def _hz_to_mel(freqs):
    freqs = np.asarray(freqs, dtype=np.float64)
    f_sp = 200.0 / 3
    mels = freqs / f_sp
    min_log_hz = 1000.0
    min_log_mel = min_log_hz / f_sp
    logstep = np.log(6.4) / 27.0
    return np.where(
        freqs >= min_log_hz,
        min_log_mel + np.log(np.maximum(freqs, min_log_hz) / min_log_hz) / logstep,
        mels,
    )


def _mel_to_hz(mels):
    mels = np.asarray(mels, dtype=np.float64)
    f_sp = 200.0 / 3
    freqs = f_sp * mels
    min_log_hz = 1000.0
    min_log_mel = min_log_hz / f_sp
    logstep = np.log(6.4) / 27.0
    return np.where(
        mels >= min_log_mel,
        min_log_hz * np.exp(logstep * (mels - min_log_mel)),
        freqs,
    )


def mel_filterbank(sr, n_fft, n_mels, fmin, fmax):
    """librosa.filters.mel (htk=False, norm='slaney'). Returns (n_mels, n_freq)."""
    if fmax is None:
        fmax = sr / 2.0
    n_freq = n_fft // 2 + 1
    fftfreqs = np.linspace(0.0, sr / 2.0, n_freq)
    mel_pts = _mel_to_hz(np.linspace(_hz_to_mel(fmin), _hz_to_mel(fmax), n_mels + 2))
    fdiff = np.diff(mel_pts)
    ramps = mel_pts[:, None] - fftfreqs[None, :]
    lower = -ramps[:-2] / fdiff[:-1, None]
    upper = ramps[2:] / fdiff[1:, None]
    weights = np.maximum(0.0, np.minimum(lower, upper))
    enorm = 2.0 / (mel_pts[2 : n_mels + 2] - mel_pts[:n_mels])  # slaney norm
    weights *= enorm[:, None]
    return weights.astype(np.float32)


def dft_window_mat():
    """Hann window (periodic, padded-center to n_fft) folded into a fused
    [cos | sin] rfft matrix of shape (N_FFT, 2*FREQ_KEEP)."""
    n = np.arange(WIN_LENGTH, dtype=np.float64)
    hann = 0.5 - 0.5 * np.cos(2.0 * np.pi * n / WIN_LENGTH)  # fftbins=True hann
    win = np.zeros(N_FFT, dtype=np.float64)
    off = (N_FFT - WIN_LENGTH) // 2
    win[off : off + WIN_LENGTH] = hann

    t = np.arange(N_FFT, dtype=np.float64)[:, None]
    f = np.arange(FREQ_KEEP, dtype=np.float64)[None, :]
    ang = 2.0 * np.pi * t * f / N_FFT
    cw = win[:, None] * np.cos(ang)
    sw = win[:, None] * np.sin(ang)  # sign irrelevant: only |X|^2 is used
    return np.concatenate([cw, sw], axis=1).astype(np.float32)   # (512, 512)


_DFT_W = dft_window_mat()                                         # (N_FFT, 2*FREQ_KEEP) f32
_MEL_T = np.zeros((FREQ_KEEP, MEL_PAD), dtype=np.float32)
_MEL_T[:, :N_MELS] = mel_filterbank(SAMPLE_RATE, N_FFT, N_MELS, FMIN, FMAX).T[:FREQ_KEEP]


# ----------------------------- Pallas kernel -----------------------------
def _logmel_kernel(frames_ref, whi_ref, wlo_ref, melT_ref, out_ref):
    # frames_ref: (TM, N_FFT) f32; whi/wlo: (N_FFT, 2*FREQ_KEEP) bf16;
    # melT: (FREQ_KEEP, MEL_PAD) f32; out_ref: (MEL_PAD, TM) f32.
    f = frames_ref[...]
    # hi/lo bf16 split of the frames; paired with the hi/lo weight split below
    # this gives 3 native-rate bf16 MXU passes with ~f32 accuracy (f_lo@w_lo
    # term is ~2^-18 relative and dropped).
    f_hi = f.astype(jnp.bfloat16)
    f_lo = (f - f_hi.astype(jnp.float32)).astype(jnp.bfloat16)
    spec = jnp.dot(f_hi, whi_ref[...], preferred_element_type=jnp.float32)
    spec = spec + jnp.dot(f_hi, wlo_ref[...], preferred_element_type=jnp.float32)
    spec = spec + jnp.dot(f_lo, whi_ref[...], preferred_element_type=jnp.float32)

    re = spec[:, :FREQ_KEEP]                      # lane-aligned split at 256
    im = spec[:, FREQ_KEEP:]
    power = re * re + im * im                     # |STFT|^2, f32

    mel = jnp.dot(power, melT_ref[...], preferred_element_type=jnp.float32)  # (TM, 128)
    db = 10.0 * jnp.log10(jnp.maximum(mel, AMIN))  # power_to_db (ref=1)
    # XLU transpose (free-ish while the MXU is binding) -> lane-dense (128, TM) store.
    out_ref[...] = db.T


# ------------------------------- wrapper ---------------------------------
def _round_up(x, m):
    return int(-(-x // m) * m)


def _num_tensorcores():
    """2 TensorCores per chip on v4 / v5p / v7x, 1 on v5e / v6e."""
    try:
        kind = jax.devices()[0].device_kind.lower()
    except Exception:
        return 1
    return 2 if any(t in kind for t in ("v4", "v5p", "v7")) else 1


def _choose_tm(n_frames, batch, n_cores):
    """Frame-row tile: multiple of 128 (full MXU passes, safe in-kernel
    transpose), up to MAX_TM; balances padding waste vs. per-step overhead and
    keeps >= 2 grid steps on 2-TensorCore chips."""
    f128 = _round_up(max(n_frames, 1), 128)
    best_tm, best_cost = 128, None
    for tm in (512, 384, 256, 128):
        if tm > f128:
            continue
        padded = _round_up(n_frames, tm)
        cost = padded + _STEP_OVERHEAD_ROWS * (padded // tm)
        if best_cost is None or cost < best_cost:
            best_cost, best_tm = cost, tm
    if (n_cores >= 2 and batch == 1 and f128 >= 256
            and _round_up(n_frames, best_tm) // best_tm < 2):
        best_tm = max(128, _round_up(f128 // 2, 128))   # keep both TensorCores fed
    return best_tm


@jax.jit
def librosa_mel_spectrogram(audio):
    """audio: (batch, time) or (time,) -> (batch, n_mels, n_frames) / (n_mels, n_frames)."""
    squeeze = audio.ndim == 1
    if squeeze:
        audio = audio[None, :]
    audio = audio.astype(jnp.float32)
    batch = audio.shape[0]

    # center=True framing with reflect padding (classic librosa.stft behavior).
    # TODO(synk): move framing into the kernel (memory_space=pl.ANY + per-row
    # strided copies) to avoid materializing the 3.2x-expanded frames in HBM.
    pad = N_FFT // 2
    padded = jnp.pad(audio, ((0, 0), (pad, pad)), mode=PAD_MODE)
    n_frames = 1 + (padded.shape[1] - N_FFT) // HOP_LENGTH
    idx = np.arange(n_frames)[:, None] * HOP_LENGTH + np.arange(N_FFT)[None, :]
    frames = padded[:, idx]                       # (batch, n_frames, n_fft)

    tm = _choose_tm(n_frames, batch, _num_tensorcores())
    frames_pad = _round_up(n_frames, tm)
    frames = jnp.pad(frames, ((0, 0), (0, frames_pad - n_frames), (0, 0)))

    # hi/lo bf16 split of the fused [cos|sin] DFT weights (constant-folded under jit).
    w = jnp.asarray(_DFT_W)
    w_hi = w.astype(jnp.bfloat16)
    w_lo = (w - w_hi.astype(jnp.float32)).astype(jnp.bfloat16)
    mel_t = jnp.asarray(_MEL_T)

    out = pl.pallas_call(
        _logmel_kernel,
        out_shape=jax.ShapeDtypeStruct((batch, MEL_PAD, frames_pad), jnp.float32),
        grid_spec=pltpu.PrefetchScalarGridSpec(
            num_scalar_prefetch=0,
            grid=(batch, frames_pad // tm),
            in_specs=[
                pl.BlockSpec((None, tm, N_FFT), lambda b, i: (b, i, 0)),
                pl.BlockSpec((N_FFT, 2 * FREQ_KEEP), lambda b, i: (0, 0)),
                pl.BlockSpec((N_FFT, 2 * FREQ_KEEP), lambda b, i: (0, 0)),
                pl.BlockSpec((FREQ_KEEP, MEL_PAD), lambda b, i: (0, 0)),
            ],
            out_specs=pl.BlockSpec((None, MEL_PAD, tm), lambda b, i: (b, 0, i)),
        ),
        compiler_params=pltpu.CompilerParams(
            dimension_semantics=("parallel", "parallel")),
    )(frames, w_hi, w_lo, mel_t)

    log_spec = out[:, :N_MELS, :n_frames]                 # (batch, n_mels, n_frames)
    # power_to_db top_db clip: librosa applies it to the whole batched tensor,
    # i.e. clips against the GLOBAL max (couples examples by design).
    # TODO(synk): emit per-tile maxima from the kernel to skip this extra HBM
    # reduce pass for very long audio.
    log_spec = jnp.maximum(log_spec, jnp.max(log_spec) - TOP_DB)
    if squeeze:
        log_spec = log_spec[0]
    return log_spec


if __name__ == "__main__":
    key = jax.random.PRNGKey(0)
    audio = jax.random.normal(key, (2, 1600), dtype=jnp.float32)  # 0.1 s @ 16 kHz
    mel = librosa_mel_spectrogram(audio)
    jax.block_until_ready(mel)
    expected_frames = 1 + 1600 // HOP_LENGTH  # 11
    assert mel.shape == (2, N_MELS, expected_frames), mel.shape
    assert mel.dtype == jnp.float32
    assert bool(jnp.all(jnp.isfinite(mel)))
    print("KERNEL_OK")
</pallas_src>

<mosaic_0001>
module attributes {stable_mosaic.version = 11 : i64} {
  func.func @_logmel_kernel(%arg0: i32, %arg1: i32, %arg2: memref<1x128x512xf32, #tpu.memory_space<vmem>>, %arg3: memref<512x512xbf16, #tpu.memory_space<vmem>>, %arg4: memref<512x512xbf16, #tpu.memory_space<vmem>>, %arg5: memref<256x128xf32, #tpu.memory_space<vmem>>, %arg6: memref<1x128x128xf32, #tpu.memory_space<vmem>>) attributes {dimension_semantics = [#tpu.dimension_semantics<parallel>, #tpu.dimension_semantics<parallel>], iteration_bounds = array<i64: 2, 1>, scalar_prefetch = 0 : i64, scratch_operands = 0 : i64, tpu.core_type = #tpu.core_type<tc>, window_params = [{transform_indices = @transform_0, window_bounds = array<i64: 1, 128, 512>}, {pipeline_mode = #tpu.pipeline_mode<synchronous>, transform_indices = @transform_1, window_bounds = array<i64: 512, 512>}, {pipeline_mode = #tpu.pipeline_mode<synchronous>, transform_indices = @transform_2, window_bounds = array<i64: 512, 512>}, {pipeline_mode = #tpu.pipeline_mode<synchronous>, transform_indices = @transform_3, window_bounds = array<i64: 256, 128>}, {transform_indices = @transform_4, window_bounds = array<i64: 1, 128, 128>}]} {
    %c0 = arith.constant 0 : index
    %c0_0 = arith.constant 0 : index
    %c0_1 = arith.constant 0 : index
    %0 = vector.load %arg2[%c0, %c0_0, %c0_1] : memref<1x128x512xf32, #tpu.memory_space<vmem>>, vector<1x128x512xf32>
    %1 = vector.shape_cast %0 : vector<1x128x512xf32> to vector<128x512xf32>
    %2 = arith.truncf %1 : vector<128x512xf32> to vector<128x512xbf16>
    %3 = arith.extf %2 : vector<128x512xbf16> to vector<128x512xf32>
    %4 = arith.subf %1, %3 : vector<128x512xf32>
    %5 = arith.truncf %4 : vector<128x512xf32> to vector<128x512xbf16>
    %c0_2 = arith.constant 0 : index
    %c0_3 = arith.constant 0 : index
    %6 = vector.load %arg3[%c0_2, %c0_3] : memref<512x512xbf16, #tpu.memory_space<vmem>>, vector<512x512xbf16>
    %cst = arith.constant dense<0.000000e+00> : vector<128x512xf32>
    %7 = tpu.matmul %2, %6, %cst {dimension_numbers = #tpu.dot_dimension_numbers<[1], [0], [0], [1], [0, 0, 1, 1], [], []>} : vector<128x512xbf16>, vector<512x512xbf16>, vector<128x512xf32> -> vector<128x512xf32>
    %c0_4 = arith.constant 0 : index
    %c0_5 = arith.constant 0 : index
    %8 = vector.load %arg4[%c0_4, %c0_5] : memref<512x512xbf16, #tpu.memory_space<vmem>>, vector<512x512xbf16>
    %cst_6 = arith.constant dense<0.000000e+00> : vector<128x512xf32>
    %9 = tpu.matmul %2, %8, %cst_6 {dimension_numbers = #tpu.dot_dimension_numbers<[1], [0], [0], [1], [0, 0, 1, 1], [], []>} : vector<128x512xbf16>, vector<512x512xbf16>, vector<128x512xf32> -> vector<128x512xf32>
    %10 = arith.addf %7, %9 : vector<128x512xf32>
    %c0_7 = arith.constant 0 : index
    %c0_8 = arith.constant 0 : index
    %11 = vector.load %arg3[%c0_7, %c0_8] : memref<512x512xbf16, #tpu.memory_space<vmem>>, vector<512x512xbf16>
    %cst_9 = arith.constant dense<0.000000e+00> : vector<128x512xf32>
    %12 = tpu.matmul %5, %11, %cst_9 {dimension_numbers = #tpu.dot_dimension_numbers<[1], [0], [0], [1], [0, 0, 1, 1], [], []>} : vector<128x512xbf16>, vector<512x512xbf16>, vector<128x512xf32> -> vector<128x512xf32>
    %13 = arith.addf %10, %12 : vector<128x512xf32>
    %14 = vector.extract_strided_slice %13 {offsets = [0, 0], sizes = [128, 256], strides = [1, 1]} : vector<128x512xf32> to vector<128x256xf32>
    %15 = vector.extract_strided_slice %13 {offsets = [0, 256], sizes = [128, 256], strides = [1, 1]} : vector<128x512xf32> to vector<128x256xf32>
    %16 = arith.mulf %14, %14 : vector<128x256xf32>
    %17 = arith.mulf %15, %15 : vector<128x256xf32>
    %18 = arith.addf %16, %17 : vector<128x256xf32>
    %c0_10 = arith.constant 0 : index
    %c0_11 = arith.constant 0 : index
    %19 = vector.load %arg5[%c0_10, %c0_11] : memref<256x128xf32, #tpu.memory_space<vmem>>, vector<256x128xf32>
    %cst_12 = arith.constant dense<0.000000e+00> : vector<128x128xf32>
    %20 = tpu.matmul %18, %19, %cst_12 {dimension_numbers = #tpu.dot_dimension_numbers<[1], [0], [0], [1], [0, 0, 1, 1], [], []>} : vector<128x256xf32>, vector<256x128xf32>, vector<128x128xf32> -> vector<128x128xf32>
    %cst_13 = arith.constant 1.000000e-10 : f32
    %21 = vector.broadcast %cst_13 : f32 to vector<128x128xf32>
    %22 = arith.maximumf %20, %21 : vector<128x128xf32>
    %23 = math.log %22 : vector<128x128xf32>
    %cst_14 = arith.constant 0.434294492 : f32
    %24 = vector.broadcast %cst_14 : f32 to vector<128x128xf32>
    %25 = arith.mulf %23, %24 : vector<128x128xf32>
    %cst_15 = arith.constant 1.000000e+01 : f32
    %26 = vector.broadcast %cst_15 : f32 to vector<128x128xf32>
    %27 = arith.mulf %26, %25 : vector<128x128xf32>
    %28 = tpu.transpose %27, [1, 0] : vector<128x128xf32> -> vector<128x128xf32>
    %c0_16 = arith.constant 0 : index
    %c0_17 = arith.constant 0 : index
    %c0_18 = arith.constant 0 : index
    %29 = vector.load %arg6[%c0_16, %c0_17, %c0_18] : memref<1x128x128xf32, #tpu.memory_space<vmem>>, vector<1x128x128xf32>
    %30 = vector.shape_cast %29 : vector<1x128x128xf32> to vector<128x128xf32>
    %31 = vector.shape_cast %28 : vector<128x128xf32> to vector<1x128x128xf32>
    tpu.vector_store %arg6[%c0_16, %c0_17, %c0_18], %31 {strides = array<i32>} : memref<1x128x128xf32, #tpu.memory_space<vmem>>, vector<1x128x128xf32>,
    return
  }
  func.func @transform_0(%arg0: i32, %arg1: i32) -> (i32, i32, i32) {
    %c0_i32 = arith.constant 0 : i32
    %c0_i32_0 = arith.constant 0 : i32
    return %arg0, %arg1, %c0_i32 : i32, i32, i32
  }
  func.func @transform_1(%arg0: i32, %arg1: i32) -> (i32, i32) {
    %c0_i32 = arith.constant 0 : i32
    %c0_i32_0 = arith.constant 0 : i32
    %c0_i32_1 = arith.constant 0 : i32
    return %c0_i32, %c0_i32_0 : i32, i32
  }
  func.func @transform_2(%arg0: i32, %arg1: i32) -> (i32, i32) {
    %c0_i32 = arith.constant 0 : i32
    %c0_i32_0 = arith.constant 0 : i32
    %c0_i32_1 = arith.constant 0 : i32
    return %c0_i32, %c0_i32_0 : i32, i32
  }
  func.func @transform_3(%arg0: i32, %arg1: i32) -> (i32, i32) {
    %c0_i32 = arith.constant 0 : i32
    %c0_i32_0 = arith.constant 0 : i32
    %c0_i32_1 = arith.constant 0 : i32
    return %c0_i32, %c0_i32_0 : i32, i32
  }
  func.func @transform_4(%arg0: i32, %arg1: i32) -> (i32, i32, i32) {
    %c0_i32 = arith.constant 0 : i32
    %c0_i32_0 = arith.constant 0 : i32
    return %arg0, %c0_i32, %arg1 : i32, i32, i32
  }
}

</mosaic_0001>

<bundles_post_ra>
// kernel: librosa_mel_spectrogram.1
= control target key start
LH: loop header
LB: loop body
LE: loop exit
PB: predicated region body
PF: predicated region fallthrough
CT: control target
= control target key end

     0   :  { %s4892_s15 = smov 0   ;;  %s4894_s16 = smov 0   ;;  %s7355_s0 = inlined_call_operand.vmem [shape: f32[2,128,512], index: 0, kind: input, shape index: {}]   ;;  %s7356_s1 = inlined_call_operand.vmem [shape: bf16[512,512], index: 1, kind: input, shape index: {}]   ;;  %s7357_s2 = inlined_call_operand.vmem [shape: bf16[512,512], index: 2, kind: input, shape index: {}]   ;;  %s7358_s3 = inlined_call_operand.vmem [shape: f32[256,128], index: 3, kind: input, shape index: {}]   ;;  %s7359_s4 = inlined_call_operand.vmem [shape: f32[2,128,128], index: 4, kind: output, shape index: {}]  }
   0x1   :  { %s4896_s17 = smov 0  }
   0x2 LB: > { %s26_s18 = sadd.s32 1, %s4861_s16  ;;  %p3940_p0 = scmp.ge.s32.totalorder %s4865_s17, 1  ;;  %s4865_s17 = sphi %s4896_s17, %s14_s17   ;;  %s4861_s16 = sphi %s4894_s16, %s7745_s16   ;;  %s4857_s15 = sphi %s4892_s15, %s7744_s15  }
   0x3   : > { %p28_p1 = scmp.ge.s32.totalorder %s26_s18, 2  ;;  %p184_p2 = scmp.lt.s32.totalorder %s4865_s17, 3 }
   0x5   : > { %s7747_s18 = smov (%p28_p1, %s26_s18), 0  ;;  %p185_p3 = pnand %p3940_p0, %p184_p2 }
   0x7   : > { %188 = sbr.rel (%p185_p3) target bundleno = 1007 (0x3ef), region = 36 }
   0xc   : > { %v4341_v0 = vld [vmem:[%s7357_s2 + $0xe4] ss:$16 sps:$4 sm:$0xff]   ;;  %v4345_v2 = vld [vmem:[%s7357_s2 + $0xe0] ss:$16 sps:$4 sm:$0xff]   ;;  %p219_p4 = scmp.lt.s32.totalorder %s4857_s15, 1 }
   0xd   : > { %v4343_v1 = vld [vmem:[%s7357_s2 + $0x2e4] ss:$16 sps:$4 sm:$0xff]   ;;  %1389 = vmatprep.subr.bf16.mxu0 %v4341_v0  ;;  %v4346_v3 = vld [vmem:[%s7357_s2 + $0x2e0] ss:$16 sps:$4 sm:$0xff]  }
   0xe   : > { %1502 = vmatprep.subr.bf16.mxu1 %v4343_v1  ;;  %v4347_v4 = vld [vmem:[%s7357_s2 + $0xc4] ss:$16 sps:$4 sm:$0xff]   ;;  %1390 = vmatpush1.bf16.msra.mxu0 %v4345_v2  ;;  %v4351_v6 = vld [vmem:[%s7357_s2 + $0xc0] ss:$16 sps:$4 sm:$0xff]   ;;  %s7749_s15 = smov (!%p219_p4, %s4857_s15), 1 }
   0xf   : > { %1503 = vmatpush1.bf16.msra.mxu1 %v4346_v3  ;;  %v4349_v5 = vld [vmem:[%s7357_s2 + $0x2c4] ss:$16 sps:$4 sm:$0xff]   ;;  %1391 = vmatprep.subr.bf16.mxu0 %v4347_v4  ;;  %v4352_v7 = vld [vmem:[%s7357_s2 + $0x2c0] ss:$16 sps:$4 sm:$0xff]   ;;  %s4203_s9 = sshll.u32 %s7749_s15, 9  ;;  %s4204_s26 = sshll.u32 %s7749_s15, 7 }
  0x10   : > { %1504 = vmatprep.subr.bf16.mxu1 %v4349_v5  ;;  %v4353_v8 = vld [vmem:[%s7357_s2 + $0xa4] ss:$16 sps:$4 sm:$0xff]   ;;  %v4357_v10 = vld [vmem:[%s7357_s2 + $0xa0] ss:$16 sps:$4 sm:$0xff]   ;;  %s5052_s22 = scalar_lea.vmem %s7355_s0, %s4203_s9  ;;  %s7328_s28 = scalar_lea.vmem %s7359_s4, %s4204_s26 }
  0x11   : > { %v4355_v9 = vld [vmem:[%s7357_s2 + $0x2a4] ss:$16 sps:$4 sm:$0xff]   ;;  %v4358_v11 = vld [vmem:[%s7357_s2 + $0x2a0] ss:$16 sps:$4 sm:$0xff]   ;;  %v238_v46 = vld [vmem:[%s5052_s22 + $0x8] sm:$0xff] }
  0x12   : > { %1392 = vmatpush1.bf16.msra.mxu0 %v4351_v6  ;;  %v4359_v12 = vld [vmem:[%s7357_s2 + $0x84] ss:$16 sps:$4 sm:$0xff]   ;;  %v4363_v14 = vld [vmem:[%s7357_s2 + $0x80] ss:$16 sps:$4 sm:$0xff]   ;;  %v242_v47 = vld [vmem:[%s5052_s22 + $0x28] sm:$0xff] }
  0x13   : > { %1505 = vmatpush1.bf16.msra.mxu1 %v4352_v7  ;;  %1393 = vmatprep.subr.bf16.mxu0 %v4353_v8  ;;  %v4361_v13 = vld [vmem:[%s7357_s2 + $0x284] ss:$16 sps:$4 sm:$0xff]   ;;  %v4364_v15 = vld [vmem:[%s7357_s2 + $0x280] ss:$16 sps:$4 sm:$0xff]   ;;  %v240_v48 = vld [vmem:[%s5052_s22 + $0x18] sm:$0xff]  ;;  %v5073_v53 = vpack.c.bf16 %v242_v47, %v238_v46 }
  0x14   : > { %1506 = vmatprep.subr.bf16.mxu1 %v4355_v9  ;;  %v4365_v16 = vld [vmem:[%s7357_s2 + $0x64] ss:$16 sps:$4 sm:$0xff]   ;;  %v4369_v18 = vld [vmem:[%s7357_s2 + $0x60] ss:$16 sps:$4 sm:$0xff]   ;;  %v244_v49 = vld [vmem:[%s5052_s22 + $0x38] sm:$0xff] }
  0x15   : > { %v4367_v17 = vld [vmem:[%s7357_s2 + $0x264] ss:$16 sps:$4 sm:$0xff]   ;;  %v4370_v19 = vld [vmem:[%s7357_s2 + $0x260] ss:$16 sps:$4 sm:$0xff]   ;;  %v5075_v54 = vpack.c.bf16 %v244_v49, %v240_v48  ;;  %1421 = vmatprep.mubr.bf16.mxu0 %v5073_v53 }
  0x16   : > { %1394 = vmatpush1.bf16.msra.mxu0 %v4357_v10  ;;  %v4371_v20 = vld [vmem:[%s7357_s2 + $0x44] ss:$16 sps:$4 sm:$0xff]   ;;  %v4375_v22 = vld [vmem:[%s7357_s2 + $0x40] ss:$16 sps:$4 sm:$0xff]   ;;  %v4439_v10 = vld [vmem:[%s7357_s2 + $0xec] ss:$16 sps:$4 sm:$0xff]  }
  0x17   : > { %1507 = vmatpush1.bf16.msra.mxu1 %v4358_v11  ;;  %1395 = vmatprep.subr.bf16.mxu0 %v4359_v12  ;;  %v4373_v21 = vld [vmem:[%s7357_s2 + $0x244] ss:$16 sps:$4 sm:$0xff]   ;;  %v4376_v23 = vld [vmem:[%s7357_s2 + $0x240] ss:$16 sps:$4 sm:$0xff]   ;;  %v4442_v11 = vld [vmem:[%s7357_s2 + $0x2ec] ss:$16 sps:$4 sm:$0xff]  }
  0x18   : > { %1508 = vmatprep.subr.bf16.mxu1 %v4361_v13  ;;  %v4377_v24 = vld [vmem:[%s7357_s2 + $0x24] ss:$16 sps:$4 sm:$0xff]   ;;  %v4381_v26 = vld [vmem:[%s7357_s2 + $0x20] ss:$16 sps:$4 sm:$0xff]   ;;  %1534 = vmatprep.mubr.bf16.mxu1 %v5075_v54  ;;  %v4437_v12 = vld [vmem:[%s7357_s2 + $0xe8] ss:$16 sps:$4 sm:$0xff]  }
  0x19   : > { %v4379_v25 = vld [vmem:[%s7357_s2 + $0x224] ss:$16 sps:$4 sm:$0xff]   ;;  %v4382_v27 = vld [vmem:[%s7357_s2 + $0x220] ss:$16 sps:$4 sm:$0xff]   ;;  %v4440_v13 = vld [vmem:[%s7357_s2 + $0x2e8] ss:$16 sps:$4 sm:$0xff]  }
  0x1a   : > { %1396 = vmatpush1.bf16.msra.mxu0 %v4363_v14  ;;  %v4383_v28 = vld [vmem:[%s7357_s2 + $0x4] ss:$16 sps:$4 sm:$0xff]   ;;  %v4387_v30 = vld [vmem:[%s7357_s2] ss:$16 sps:$4 sm:$0xff]   ;;  %v246_v14 = vld [vmem:[%s5052_s22 + $0x48] sm:$0xff] }
  0x1b   : > { %1509 = vmatpush1.bf16.msra.mxu1 %v4364_v15  ;;  %1397 = vmatprep.subr.bf16.mxu0 %v4365_v16  ;;  %v4385_v29 = vld [vmem:[%s7357_s2 + $0x204] ss:$16 sps:$4 sm:$0xff]   ;;  %v4388_v31 = vld [vmem:[%s7357_s2 + $0x200] ss:$16 sps:$4 sm:$0xff]   ;;  %v250_v15 = vld [vmem:[%s5052_s22 + $0x68] sm:$0xff] }
  0x1c   : > { %1510 = vmatprep.subr.bf16.mxu1 %v4367_v17  ;;  %v4389_v32 = vld [vmem:[%s7357_s2 + $0x1e4] ss:$16 sps:$4 sm:$0xff]   ;;  %v4393_v34 = vld [vmem:[%s7357_s2 + $0x1e0] ss:$16 sps:$4 sm:$0xff]  }
  0x1d   : > { %v4391_v33 = vld [vmem:[%s7357_s2 + $0x3e4] ss:$16 sps:$4 sm:$0xff]   ;;  %v4394_v35 = vld [vmem:[%s7357_s2 + $0x3e0] ss:$16 sps:$4 sm:$0xff]  }
  0x1e   : > { %1398 = vmatpush1.bf16.msra.mxu0 %v4369_v18  ;;  %v4395_v36 = vld [vmem:[%s7357_s2 + $0x1c4] ss:$16 sps:$4 sm:$0xff]   ;;  %v4399_v38 = vld [vmem:[%s7357_s2 + $0x1c0] ss:$16 sps:$4 sm:$0xff]   ;;  %v248_v18 = vld [vmem:[%s5052_s22 + $0x58] sm:$0xff] }
  0x1f   : > { %1511 = vmatpush1.bf16.msra.mxu1 %v4370_v19  ;;  %1399 = vmatprep.subr.bf16.mxu0 %v4371_v20  ;;  %v4397_v37 = vld [vmem:[%s7357_s2 + $0x3c4] ss:$16 sps:$4 sm:$0xff]   ;;  %v4400_v39 = vld [vmem:[%s7357_s2 + $0x3c0] ss:$16 sps:$4 sm:$0xff]   ;;  %v252_v19 = vld [vmem:[%s5052_s22 + $0x78] sm:$0xff] }
  0x20   : > { %1512 = vmatprep.subr.bf16.mxu1 %v4373_v21  ;;  %v4401_v40 = vld [vmem:[%s7357_s2 + $0x1a4] ss:$16 sps:$4 sm:$0xff]   ;;  %v4405_v42 = vld [vmem:[%s7357_s2 + $0x1a0] ss:$16 sps:$4 sm:$0xff]   ;;  %v4445_v20 = vld [vmem:[%s7357_s2 + $0xcc] ss:$16 sps:$4 sm:$0xff]  }
  0x21   : > { %v4403_v41 = vld [vmem:[%s7357_s2 + $0x3a4] ss:$16 sps:$4 sm:$0xff]   ;;  %v4406_v43 = vld [vmem:[%s7357_s2 + $0x3a0] ss:$16 sps:$4 sm:$0xff]   ;;  %v4448_v21 = vld [vmem:[%s7357_s2 + $0x2cc] ss:$16 sps:$4 sm:$0xff]  }
  0x22   : > { %1400 = vmatpush1.bf16.msra.mxu0 %v4375_v22  ;;  %v4407_v44 = vld [vmem:[%s7357_s2 + $0x184] ss:$16 sps:$4 sm:$0xff]   ;;  %v4411_v50 = vld [vmem:[%s7357_s2 + $0x180] ss:$16 sps:$4 sm:$0xff]   ;;  %v4443_v22 = vld [vmem:[%s7357_s2 + $0xc8] ss:$16 sps:$4 sm:$0xff]  }
  0x23   : > { %1513 = vmatpush1.bf16.msra.mxu1 %v4376_v23  ;;  %1401 = vmatprep.subr.bf16.mxu0 %v4377_v24  ;;  %v4409_v45 = vld [vmem:[%s7357_s2 + $0x384] ss:$16 sps:$4 sm:$0xff]   ;;  %v4412_v51 = vld [vmem:[%s7357_s2 + $0x380] ss:$16 sps:$4 sm:$0xff]   ;;  %v5157_v23 = vpack.c.bf16 %v250_v15, %v246_v14  ;;  %v5159_v24 = vpack.c.bf16 %v252_v19, %v248_v18  ;;  %v272_v18 = vld [vmem:[%s5052_s22 + $0x118] sm:$0xff] }
  0x24   : > { %1514 = vmatprep.subr.bf16.mxu1 %v4379_v25  ;;  %v4413_v52 = vld [vmem:[%s7357_s2 + $0x164] ss:$16 sps:$4 sm:$0xff]   ;;  %v4417_v56 = vld [vmem:[%s7357_s2 + $0x160] ss:$16 sps:$4 sm:$0xff]   ;;  %v4446_v25 = vld [vmem:[%s7357_s2 + $0x2c8] ss:$16 sps:$4 sm:$0xff]  }
  0x25   : > { %v4415_v55 = vld [vmem:[%s7357_s2 + $0x364] ss:$16 sps:$4 sm:$0xff]   ;;  %v4418_v57 = vld [vmem:[%s7357_s2 + $0x360] ss:$16 sps:$4 sm:$0xff]   ;;  %v276_v19 = vld [vmem:[%s5052_s22 + $0x138] sm:$0xff] }
  0x26   : > { %1402 = vmatpush1.bf16.msra.mxu0 %v4381_v26  ;;  %v4419_v58 = vld [vmem:[%s7357_s2 + $0x144] ss:$16 sps:$4 sm:$0xff]   ;;  %v4423_v60 = vld [vmem:[%s7357_s2 + $0x140] ss:$16 sps:$4 sm:$0xff]  }
  0x27   : > { %1515 = vmatpush1.bf16.msra.mxu1 %v4382_v27  ;;  %1403 = vmatprep.subr.bf16.mxu0 %v4383_v28  ;;  %v4421_v59 = vld [vmem:[%s7357_s2 + $0x344] ss:$16 sps:$4 sm:$0xff]   ;;  %v4424_v61 = vld [vmem:[%s7357_s2 + $0x340] ss:$16 sps:$4 sm:$0xff]  }
  0x28   : > { %1516 = vmatprep.subr.bf16.mxu1 %v4385_v29  ;;  %v4425_v62 = vld [vmem:[%s7357_s2 + $0x124] ss:$16 sps:$4 sm:$0xff]   ;;  %v4429_v0 = vld [vmem:[%s7357_s2 + $0x120] ss:$16 sps:$4 sm:$0xff]  }
  0x29   : > { %v4427_v63 = vld [vmem:[%s7357_s2 + $0x324] ss:$16 sps:$4 sm:$0xff]   ;;  %v4430_v1 = vld [vmem:[%s7357_s2 + $0x320] ss:$16 sps:$4 sm:$0xff]  }
  0x2a   : > { %1404 = vmatpush1.bf16.msra.mxu0 %v4387_v30  ;;  %v4431_v2 = vld [vmem:[%s7357_s2 + $0x104] ss:$16 sps:$4 sm:$0xff]   ;;  %v4435_v4 = vld [vmem:[%s7357_s2 + $0x100] ss:$16 sps:$4 sm:$0xff]   ;;  %v4451_v30 = vld [vmem:[%s7357_s2 + $0xac] ss:$16 sps:$4 sm:$0xff]  }
  0x2b   : > { %1517 = vmatpush1.bf16.msra.mxu1 %v4388_v31  ;;  %1405 = vmatprep.subr.bf16.mxu0 %v4389_v32  ;;  %v4433_v3 = vld [vmem:[%s7357_s2 + $0x304] ss:$16 sps:$4 sm:$0xff]   ;;  %v4436_v5 = vld [vmem:[%s7357_s2 + $0x300] ss:$16 sps:$4 sm:$0xff]   ;;  %v4454_v31 = vld [vmem:[%s7357_s2 + $0x2ac] ss:$16 sps:$4 sm:$0xff]  }
  0x2c   : > { %1518 = vmatprep.subr.bf16.mxu1 %v4391_v33  ;;  %v237_v6 = vld [vmem:[%s5052_s22] sm:$0xff]  ;;  %v239_v8 = vld [vmem:[%s5052_s22 + $0x10] sm:$0xff]  ;;  %v4449_v32 = vld [vmem:[%s7357_s2 + $0xa8] ss:$16 sps:$4 sm:$0xff]  }
  0x2d   : > { %v241_v7 = vld [vmem:[%s5052_s22 + $0x20] sm:$0xff]  ;;  %v243_v9 = vld [vmem:[%s5052_s22 + $0x30] sm:$0xff]  ;;  %v4452_v33 = vld [vmem:[%s7357_s2 + $0x2a8] ss:$16 sps:$4 sm:$0xff]  }
  0x2e   : > { %1406 = vmatpush2.bf16.msra.mxu0 %v4393_v34  ;;  %v5142_v16 = vpack.c.bf16 %v241_v7, %v237_v6  ;;  %v5144_v17 = vpack.c.bf16 %v243_v9, %v239_v8  ;;  %v245_v26 = vld [vmem:[%s5052_s22 + $0x40] sm:$0xff]  ;;  %v247_v28 = vld [vmem:[%s5052_s22 + $0x50] sm:$0xff]  ;;  %v254_v34 = vld [vmem:[%s5052_s22 + $0x88] sm:$0xff] }
  0x2f   : > { %1519 = vmatpush2.bf16.msra.mxu1 %v4394_v35  ;;  %1407 = vmatprep.subr.bf16.mxu0 %v4395_v36  ;;  %v249_v27 = vld [vmem:[%s5052_s22 + $0x60] sm:$0xff]  ;;  %v251_v29 = vld [vmem:[%s5052_s22 + $0x70] sm:$0xff]  ;;  %v258_v35 = vld [vmem:[%s5052_s22 + $0xa8] sm:$0xff] }
  0x30   : > { %1520 = vmatprep.subr.bf16.mxu1 %v4397_v37  ;;  %v5186_v36 = vpack.c.bf16 %v249_v27, %v245_v26  ;;  %v5188_v37 = vpack.c.bf16 %v251_v29, %v247_v28  ;;  %v253_v46 = vld [vmem:[%s5052_s22 + $0x80] sm:$0xff]  ;;  %v255_v48 = vld [vmem:[%s5052_s22 + $0x90] sm:$0xff]  ;;  %v4475_v8 = vld [vmem:[%s7357_s2 + $0x2c] ss:$16 sps:$4 sm:$0xff]   ;;  %v5291_v26 = vpack.c.bf16 %v276_v19, %v272_v18 }
  0x31   : > { %v257_v47 = vld [vmem:[%s5052_s22 + $0xa0] sm:$0xff]  ;;  %v259_v49 = vld [vmem:[%s5052_s22 + $0xb0] sm:$0xff]  ;;  %v4478_v9 = vld [vmem:[%s7357_s2 + $0x22c] ss:$16 sps:$4 sm:$0xff]  }
  0x32   : > { %1408 = vmatpush2.bf16.msra.mxu0 %v4399_v38  ;;  %v256_v38 = vld [vmem:[%s5052_s22 + $0x98] sm:$0xff]  ;;  %v263_v6 = vld [vmem:[%s5052_s22 + $0xd0] sm:$0xff]  ;;  %v269_v28 = vld [vmem:[%s5052_s22 + $0x100] sm:$0xff] }
  0x33   : > { %1521 = vmatpush2.bf16.msra.mxu1 %v4400_v39  ;;  %1409 = vmatprep.subr.bf16.mxu0 %v4401_v40  ;;  %v260_v39 = vld [vmem:[%s5052_s22 + $0xb8] sm:$0xff]  ;;  %v267_v7 = vld [vmem:[%s5052_s22 + $0xf0] sm:$0xff]  ;;  %v273_v29 = vld [vmem:[%s5052_s22 + $0x120] sm:$0xff] }
  0x34   : > { %1522 = vmatprep.subr.bf16.mxu1 %v4403_v41  ;;  %v4457_v40 = vld [vmem:[%s7357_s2 + $0x8c] ss:$16 sps:$4 sm:$0xff]   ;;  %v5276_v15 = vpack.c.bf16 %v267_v7, %v263_v6  ;;  %v4482_v27 = vld [vmem:[%s7357_s2 + $0x208] ss:$16 sps:$4 sm:$0xff]   ;;  %v285_v18 = vld [vmem:[%s5052_s22 + $0x180] sm:$0xff] }
  0x35   : > { %v4460_v41 = vld [vmem:[%s7357_s2 + $0x28c] ss:$16 sps:$4 sm:$0xff]   ;;  %v289_v19 = vld [vmem:[%s5052_s22 + $0x1a0] sm:$0xff] }
  0x36   : > { %1410 = vmatpush2.bf16.msra.mxu0 %v4405_v42  ;;  %v4455_v42 = vld [vmem:[%s7357_s2 + $0x88] ss:$16 sps:$4 sm:$0xff]  }
  0x37   : > { %1523 = vmatpush2.bf16.msra.mxu1 %v4406_v43  ;;  %1411 = vmatprep.subr.bf16.mxu0 %v4407_v44  ;;  %v5201_v43 = vpack.c.bf16 %v258_v35, %v254_v34  ;;  %v5203_v44 = vpack.c.bf16 %v260_v39, %v256_v38  ;;  %v4485_v34 = vld [vmem:[%s7357_s2 + $0x1e8] ss:$16 sps:$4 sm:$0xff]  }
  0x38   : > { %1524 = vmatprep.subr.bf16.mxu1 %v4409_v45  ;;  %v4458_v45 = vld [vmem:[%s7357_s2 + $0x288] ss:$16 sps:$4 sm:$0xff]  }
  0x39   : > { %v4488_v35 = vld [vmem:[%s7357_s2 + $0x3e8] ss:$16 sps:$4 sm:$0xff]  }
  0x3a   : > { %1412 = vmatpush2.bf16.msra.mxu0 %v4411_v50  ;;  %v4463_v50 = vld [vmem:[%s7357_s2 + $0x6c] ss:$16 sps:$4 sm:$0xff]  }
  0x3b   : > { %1525 = vmatpush2.bf16.msra.mxu1 %v4412_v51  ;;  %1413 = vmatprep.subr.bf16.mxu0 %v4413_v52  ;;  %v4466_v51 = vld [vmem:[%s7357_s2 + $0x26c] ss:$16 sps:$4 sm:$0xff]   ;;  %v4461_v52 = vld [vmem:[%s7357_s2 + $0x68] ss:$16 sps:$4 sm:$0xff]  }
  0x3c   : > { %1526 = vmatprep.subr.bf16.mxu1 %v4415_v55  ;;  %v4464_v55 = vld [vmem:[%s7357_s2 + $0x268] ss:$16 sps:$4 sm:$0xff]  }
  0x3d   : > { %v278_v38 = vld [vmem:[%s5052_s22 + $0x148] sm:$0xff]  ;;  %v288_v6 = vld [vmem:[%s5052_s22 + $0x198] sm:$0xff] }
  0x3e   : > { %1414 = vmatpush2.bf16.msra.mxu0 %v4417_v56  ;;  %v262_v56 = vld [vmem:[%s5052_s22 + $0xc8] sm:$0xff]  ;;  %v292_v7 = vld [vmem:[%s5052_s22 + $0x1b8] sm:$0xff] }
  0x3f   : > { %1527 = vmatpush2.bf16.msra.mxu1 %v4418_v57  ;;  %1415 = vmatprep.subr.bf16.mxu0 %v4419_v58  ;;  %v266_v57 = vld [vmem:[%s5052_s22 + $0xe8] sm:$0xff]  ;;  %v5230_v58 = vpack.c.bf16 %v257_v47, %v253_v46 }
  0x40   : > { %1528 = vmatprep.subr.bf16.mxu1 %v4421_v59  ;;  %v5232_v59 = vpack.c.bf16 %v259_v49, %v255_v48  ;;  %v282_v39 = vld [vmem:[%s5052_s22 + $0x168] sm:$0xff] }
  0x41   : > { %v4493_v46 = vld [vmem:[%s7357_s2 + $0x1cc] ss:$16 sps:$4 sm:$0xff]   ;;  %v4491_v48 = vld [vmem:[%s7357_s2 + $0x1c8] ss:$16 sps:$4 sm:$0xff]   ;;  %v5333_v49 = vpack.c.bf16 %v282_v39, %v278_v38 }
  0x42   : > { %1416 = vmatpush2.bf16.msra.mxu0 %v4423_v60  ;;  %v264_v60 = vld [vmem:[%s5052_s22 + $0xd8] sm:$0xff] }
  0x43   : > { %1529 = vmatpush2.bf16.msra.mxu1 %v4424_v61  ;;  %1417 = vmatprep.subr.bf16.mxu0 %v4425_v62  ;;  %v268_v61 = vld [vmem:[%s5052_s22 + $0xf8] sm:$0xff] }
  0x44   : > { %1530 = vmatprep.subr.bf16.mxu1 %v4427_v63  ;;  %v4469_v62 = vld [vmem:[%s7357_s2 + $0x4c] ss:$16 sps:$4 sm:$0xff]  }
  0x45   : > { %v4472_v63 = vld [vmem:[%s7357_s2 + $0x24c] ss:$16 sps:$4 sm:$0xff]  }
  0x46   : > { %1418 = vmatpush2.bf16.msra.mxu0 %v4429_v0  ;;  %v4467_v0 = vld [vmem:[%s7357_s2 + $0x48] ss:$16 sps:$4 sm:$0xff]   ;;  %v4496_v47 = vld [vmem:[%s7357_s2 + $0x3cc] ss:$16 sps:$4 sm:$0xff]  }
  0x47   : > { %1531 = vmatpush2.bf16.msra.mxu1 %v4430_v1  ;;  %1419 = vmatprep.subr.bf16.mxu0 %v4431_v2  ;;  %v5245_v1 = vpack.c.bf16 %v266_v57, %v262_v56  ;;  %v5247_v2 = vpack.c.bf16 %v268_v61, %v264_v60  ;;  %v279_v56 = vld [vmem:[%s5052_s22 + $0x150] sm:$0xff]  ;;  %v4499_v60 = vld [vmem:[%s7357_s2 + $0x1ac] ss:$16 sps:$4 sm:$0xff]  }
  0x48   : > { %1532 = vmatprep.subr.bf16.mxu1 %v4433_v3  ;;  %v4470_v3 = vld [vmem:[%s7357_s2 + $0x248] ss:$16 sps:$4 sm:$0xff]   ;;  %v283_v57 = vld [vmem:[%s5052_s22 + $0x170] sm:$0xff]  ;;  %v4502_v61 = vld [vmem:[%s7357_s2 + $0x3ac] ss:$16 sps:$4 sm:$0xff]  }
  0x49   : > { %v4517_v38 = vld [vmem:[%s7357_s2 + $0x14c] ss:$16 sps:$4 sm:$0xff]  }
  0x4a   : > { %1420 = vmatpush2.bf16.msra.mxu0 %v4435_v4  ;;  %v261_v4 = vld [vmem:[%s5052_s22 + $0xc0] sm:$0xff]  ;;  %v4520_v39 = vld [vmem:[%s7357_s2 + $0x34c] ss:$16 sps:$4 sm:$0xff]  }
  0x4b   : > { %1533 = vmatpush2.bf16.msra.mxu1 %v4436_v5  ;;  %1615 = vmatprep.subr.bf16.mxu0 %v4439_v10  ;;  %v265_v5 = vld [vmem:[%s5052_s22 + $0xe0] sm:$0xff]  ;;  %v4473_v10 = vld [vmem:[%s7357_s2 + $0x28] ss:$16 sps:$4 sm:$0xff]  }
  0x4c   : > { %1728 = vmatprep.subr.bf16.mxu1 %v4442_v11  ;;  %v4476_v11 = vld [vmem:[%s7357_s2 + $0x228] ss:$16 sps:$4 sm:$0xff]   ;;  %v5274_v14 = vpack.c.bf16 %v265_v5, %v261_v4  ;;  %v5364_v5 = vpack.c.bf16 %v283_v57, %v279_v56  ;;  %v4523_v56 = vld [vmem:[%s7357_s2 + $0x12c] ss:$16 sps:$4 sm:$0xff]  }
  0x4d   : > { %1422 = vmatmul.mubr.bf16.vlgmr.msra.gmra.mxu0 %v5142_v16  ;;  %v4526_v57 = vld [vmem:[%s7357_s2 + $0x32c] ss:$16 sps:$4 sm:$0xff]  }
  0x4e   : > { %1535 = vmatmul.mubr.bf16.vlgmr.msra.gmra.mxu1 %v5144_v17  ;;  %1616 = vmatpush1.bf16.msra.mxu0 %v4437_v12  ;;  %v270_v12 = vld [vmem:[%s5052_s22 + $0x108] sm:$0xff] }
  0x4f   : > { %1729 = vmatpush1.bf16.msra.mxu1 %v4440_v13  ;;  %1617 = vmatprep.subr.bf16.mxu0 %v4445_v20  ;;  %v274_v13 = vld [vmem:[%s5052_s22 + $0x128] sm:$0xff] }
  0x50   : > { %1730 = vmatprep.subr.bf16.mxu1 %v4448_v21  ;;  %1431 = vmatprep.mubr.bf16.mxu0 %v5157_v23  ;;  %v4481_v20 = vld [vmem:[%s7357_s2 + $0xc] ss:$16 sps:$4 sm:$0xff]  }
  0x51   : > { %1544 = vmatprep.mubr.bf16.mxu1 %v5159_v24  ;;  %v4484_v21 = vld [vmem:[%s7357_s2 + $0x20c] ss:$16 sps:$4 sm:$0xff]  }
  0x52   : > { %1618 = vmatpush1.bf16.msra.mxu0 %v4443_v22  ;;  %v4479_v22 = vld [vmem:[%s7357_s2 + $0x8] ss:$16 sps:$4 sm:$0xff]  }
  0x53   : > { %1731 = vmatpush1.bf16.msra.mxu1 %v4446_v25  ;;  %1619 = vmatprep.subr.bf16.mxu0 %v4451_v30  ;;  %v5289_v25 = vpack.c.bf16 %v274_v13, %v270_v12  ;;  %v271_v30 = vld [vmem:[%s5052_s22 + $0x110] sm:$0xff]  ;;  %v5382_v13 = vpack.c.bf16 %v292_v7, %v288_v6  ;;  %v4527_v6 = vld [vmem:[%s7357_s2 + $0x108] ss:$16 sps:$4 sm:$0xff]  }
  0x54   : > { %1732 = vmatprep.subr.bf16.mxu1 %v4454_v31  ;;  %v275_v31 = vld [vmem:[%s5052_s22 + $0x130] sm:$0xff]  ;;  %v4530_v7 = vld [vmem:[%s7357_s2 + $0x308] ss:$16 sps:$4 sm:$0xff]  }
  0x55   : > { %1432 = vmatmul.mubr.bf16.gmra.mxu0 %v5186_v36 }
  0x56   : > { %1545 = vmatmul.mubr.bf16.gmra.mxu1 %v5188_v37  ;;  %1620 = vmatpush1.bf16.msra.mxu0 %v4449_v32  ;;  %v4487_v32 = vld [vmem:[%s7357_s2 + $0x1ec] ss:$16 sps:$4 sm:$0xff]  }
  0x57   : > { %1733 = vmatpush1.bf16.msra.mxu1 %v4452_v33  ;;  %1621 = vmatprep.subr.bf16.mxu0 %v4457_v40  ;;  %v4490_v33 = vld [vmem:[%s7357_s2 + $0x3ec] ss:$16 sps:$4 sm:$0xff]   ;;  %v5318_v40 = vpack.c.bf16 %v273_v29, %v269_v28  ;;  %v4509_v28 = vld [vmem:[%s7357_s2 + $0x168] ss:$16 sps:$4 sm:$0xff]  }
  0x58   : > { %1734 = vmatprep.subr.bf16.mxu1 %v4460_v41  ;;  %1441 = vmatprep.mubr.bf16.mxu0 %v5201_v43  ;;  %v5320_v41 = vpack.c.bf16 %v275_v31, %v271_v30  ;;  %v4512_v29 = vld [vmem:[%s7357_s2 + $0x368] ss:$16 sps:$4 sm:$0xff]  }
  0x59   : > { %1554 = vmatprep.mubr.bf16.mxu1 %v5203_v44  ;;  %v294_v30 = vld [vmem:[%s5052_s22 + $0x1c8] sm:$0xff] }
  0x5a   : > { %1622 = vmatpush1.bf16.msra.mxu0 %v4455_v42  ;;  %v280_v42 = vld [vmem:[%s5052_s22 + $0x158] sm:$0xff]  ;;  %v298_v31 = vld [vmem:[%s5052_s22 + $0x1e8] sm:$0xff] }
  0x5b   : > { %1735 = vmatpush1.bf16.msra.mxu1 %v4458_v45  ;;  %1623 = vmatprep.subr.bf16.mxu0 %v4463_v50  ;;  %v284_v45 = vld [vmem:[%s5052_s22 + $0x178] sm:$0xff] }
  0x5c   : > { %1736 = vmatprep.subr.bf16.mxu1 %v4466_v51  ;;  %v5335_v50 = vpack.c.bf16 %v284_v45, %v280_v42  ;;  %v4494_v51 = vld [vmem:[%s7357_s2 + $0x3c8] ss:$16 sps:$4 sm:$0xff]  }
  0x5d   : > { %1442 = vmatmul.mubr.bf16.gmra.mxu0 %v5230_v58  ;;  %v4515_v42 = vld [vmem:[%s7357_s2 + $0x148] ss:$16 sps:$4 sm:$0xff]  }
  0x5e   : > { %1555 = vmatmul.mubr.bf16.gmra.mxu1 %v5232_v59  ;;  %1624 = vmatpush1.bf16.msra.mxu0 %v4461_v52  ;;  %v277_v52 = vld [vmem:[%s5052_s22 + $0x140] sm:$0xff]  ;;  %v4518_v45 = vld [vmem:[%s7357_s2 + $0x348] ss:$16 sps:$4 sm:$0xff]  }
  0x5f   : > { %1737 = vmatpush1.bf16.msra.mxu1 %v4464_v55  ;;  %1625 = vmatprep.subr.bf16.mxu0 %v4469_v62  ;;  %v281_v55 = vld [vmem:[%s5052_s22 + $0x160] sm:$0xff]  ;;  %v4497_v62 = vld [vmem:[%s7357_s2 + $0x1a8] ss:$16 sps:$4 sm:$0xff]  }
  0x60   : > { %1738 = vmatprep.subr.bf16.mxu1 %v4472_v63  ;;  %1451 = vmatprep.mubr.bf16.mxu0 %v5245_v1  ;;  %v4500_v63 = vld [vmem:[%s7357_s2 + $0x3a8] ss:$16 sps:$4 sm:$0xff]   ;;  %v5362_v4 = vpack.c.bf16 %v281_v55, %v277_v52  ;;  %v295_v52 = vld [vmem:[%s5052_s22 + $0x1d0] sm:$0xff] }
  0x61   : > { %1564 = vmatprep.mubr.bf16.mxu1 %v5247_v2  ;;  %v299_v55 = vld [vmem:[%s5052_s22 + $0x1f0] sm:$0xff] }
  0x62   : > { %1626 = vmatpush1.bf16.msra.mxu0 %v4467_v0  ;;  %v286_v0 = vld [vmem:[%s5052_s22 + $0x188] sm:$0xff] }
  0x63   : > { %1739 = vmatpush1.bf16.msra.mxu1 %v4470_v3  ;;  %1627 = vmatprep.subr.bf16.mxu0 %v4475_v8  ;;  %v290_v3 = vld [vmem:[%s5052_s22 + $0x1a8] sm:$0xff] }
  0x64   : > { %1740 = vmatprep.subr.bf16.mxu1 %v4478_v9  ;;  %v4505_v8 = vld [vmem:[%s7357_s2 + $0x18c] ss:$16 sps:$4 sm:$0xff]   ;;  %v5380_v12 = vpack.c.bf16 %v290_v3, %v286_v0 }
  0x65   : > { %1452 = vmatmul.mubr.bf16.gmra.mxu0 %v5274_v14  ;;  %v4508_v9 = vld [vmem:[%s7357_s2 + $0x38c] ss:$16 sps:$4 sm:$0xff]  }
  0x66   : > { %1565 = vmatmul.mubr.bf16.gmra.mxu1 %v5276_v15  ;;  %1628 = vmatpush1.bf16.msra.mxu0 %v4473_v10  ;;  %v4503_v10 = vld [vmem:[%s7357_s2 + $0x188] ss:$16 sps:$4 sm:$0xff]   ;;  %v4529_v0 = vld [vmem:[%s7357_s2 + $0x10c] ss:$16 sps:$4 sm:$0xff]  }
  0x67   : > { %1741 = vmatpush1.bf16.msra.mxu1 %v4476_v11  ;;  %1629 = vmatprep.subr.bf16.mxu0 %v4481_v20  ;;  %v4506_v11 = vld [vmem:[%s7357_s2 + $0x388] ss:$16 sps:$4 sm:$0xff]   ;;  %v287_v20 = vld [vmem:[%s5052_s22 + $0x190] sm:$0xff]  ;;  %v4532_v3 = vld [vmem:[%s7357_s2 + $0x30c] ss:$16 sps:$4 sm:$0xff]  }
  0x68   : > { %1742 = vmatprep.subr.bf16.mxu1 %v4484_v21  ;;  %1461 = vmatprep.mubr.bf16.mxu0 %v5289_v25  ;;  %v291_v21 = vld [vmem:[%s5052_s22 + $0x1b0] sm:$0xff] }
  0x69   : > { %1574 = vmatprep.mubr.bf16.mxu1 %v5291_v26 }
  0x6a   : > { %1630 = vmatpush1.bf16.msra.mxu0 %v4479_v22  ;;  %v4511_v22 = vld [vmem:[%s7357_s2 + $0x16c] ss:$16 sps:$4 sm:$0xff]  }
  0x6b   : > { %1743 = vmatpush1.bf16.msra.mxu1 %v4482_v27  ;;  %1631 = vmatprep.subr.bf16.mxu0 %v4487_v32  ;;  %v4514_v27 = vld [vmem:[%s7357_s2 + $0x36c] ss:$16 sps:$4 sm:$0xff]   ;;  %v5406_v32 = vpack.c.bf16 %v289_v19, %v285_v18  ;;  %v5491_v18 = vld [vmem:[%s7356_s1 + $0xc4] ss:$16 sps:$4 sm:$0xff]  }
  0x6c   : > { %1744 = vmatprep.subr.bf16.mxu1 %v4490_v33  ;;  %v5408_v33 = vpack.c.bf16 %v291_v21, %v287_v20  ;;  %v5498_v19 = vld [vmem:[%s7356_s1 + $0x2c4] ss:$16 sps:$4 sm:$0xff]   ;;  %v5505_v20 = vld [vmem:[%s7356_s1 + $0xc0] ss:$16 sps:$4 sm:$0xff]  }
  0x6d   : > { %1462 = vmatmul.mubr.bf16.gmra.mxu0 %v5318_v40  ;;  %v5510_v21 = vld [vmem:[%s7356_s1 + $0x2c0] ss:$16 sps:$4 sm:$0xff]  }
  0x6e   : > { %1575 = vmatmul.mubr.bf16.gmra.mxu1 %v5320_v41  ;;  %1632 = vmatpush2.bf16.msra.mxu0 %v4485_v34  ;;  %v296_v34 = vld [vmem:[%s5052_s22 + $0x1d8] sm:$0xff] }
  0x6f   : > { %1745 = vmatpush2.bf16.msra.mxu1 %v4488_v35  ;;  %1633 = vmatprep.subr.bf16.mxu0 %v4493_v46  ;;  %v300_v35 = vld [vmem:[%s5052_s22 + $0x1f8] sm:$0xff]  ;;  %v5424_v46 = vpack.c.bf16 %v298_v31, %v294_v30  ;;  %v5543_v30 = vld [vmem:[%s7356_s1 + $0x84] ss:$16 sps:$4 sm:$0xff]  }
  0x70   : > { %1746 = vmatprep.subr.bf16.mxu1 %v4496_v47  ;;  %1471 = vmatprep.mubr.bf16.mxu0 %v5333_v49  ;;  %v5426_v47 = vpack.c.bf16 %v300_v35, %v296_v34  ;;  %v5550_v31 = vld [vmem:[%s7356_s1 + $0x284] ss:$16 sps:$4 sm:$0xff]   ;;  %v5557_v34 = vld [vmem:[%s7356_s1 + $0x80] ss:$16 sps:$4 sm:$0xff]  }
  0x71   : > { %1584 = vmatprep.mubr.bf16.mxu1 %v5335_v50  ;;  %v5562_v35 = vld [vmem:[%s7356_s1 + $0x280] ss:$16 sps:$4 sm:$0xff]  }
  0x72   : > { %1634 = vmatpush2.bf16.msra.mxu0 %v4491_v48  ;;  %v293_v48 = vld [vmem:[%s5052_s22 + $0x1c0] sm:$0xff] }
  0x73   : > { %1747 = vmatpush2.bf16.msra.mxu1 %v4494_v51  ;;  %1635 = vmatprep.subr.bf16.mxu0 %v4499_v60  ;;  %v297_v51 = vld [vmem:[%s5052_s22 + $0x1e0] sm:$0xff] }
  0x74   : > { %1748 = vmatprep.subr.bf16.mxu1 %v4502_v61  ;;  %v5442_v60 = vpack.c.bf16 %v297_v51, %v293_v48  ;;  %v5444_v61 = vpack.c.bf16 %v299_v55, %v295_v52  ;;  %v5595_v48 = vld [vmem:[%s7356_s1 + $0x44] ss:$16 sps:$4 sm:$0xff]   ;;  %v5609_v52 = vld [vmem:[%s7356_s1 + $0x40] ss:$16 sps:$4 sm:$0xff]  }
  0x75   : > { %1472 = vmatmul.mubr.bf16.gmra.mxu0 %v5362_v4  ;;  %v5602_v51 = vld [vmem:[%s7356_s1 + $0x244] ss:$16 sps:$4 sm:$0xff]   ;;  %v5614_v55 = vld [vmem:[%s7356_s1 + $0x240] ss:$16 sps:$4 sm:$0xff]  }
  0x76   : > { %1585 = vmatmul.mubr.bf16.gmra.mxu1 %v5364_v5  ;;  %1636 = vmatpush2.bf16.msra.mxu0 %v4497_v62  ;;  %v4521_v62 = vld [vmem:[%s7357_s2 + $0x128] ss:$16 sps:$4 sm:$0xff]  }
  0x77   : > { %1749 = vmatpush2.bf16.msra.mxu1 %v4500_v63  ;;  %1637 = vmatprep.subr.bf16.mxu0 %v4505_v8  ;;  %v4524_v63 = vld [vmem:[%s7357_s2 + $0x328] ss:$16 sps:$4 sm:$0xff]   ;;  %v5469_v8 = vld [vmem:[%s7356_s1 + $0xe4] ss:$16 sps:$4 sm:$0xff]  }
  0x78   : > { %1750 = vmatprep.subr.bf16.mxu1 %v4508_v9  ;;  %1481 = vmatprep.mubr.bf16.mxu0 %v5380_v12  ;;  %v5474_v9 = vld [vmem:[%s7356_s1 + $0x2e4] ss:$16 sps:$4 sm:$0xff]  }
  0x79   : > { %1594 = vmatprep.mubr.bf16.mxu1 %v5382_v13 }
  0x7a   : > { %1638 = vmatpush2.bf16.msra.mxu0 %v4503_v10  ;;  %v5481_v10 = vld [vmem:[%s7356_s1 + $0xe0] ss:$16 sps:$4 sm:$0xff]  }
  0x7b   : > { %1751 = vmatpush2.bf16.msra.mxu1 %v4506_v11  ;;  %1639 = vmatprep.subr.bf16.mxu0 %v4511_v22  ;;  %v5486_v11 = vld [vmem:[%s7356_s1 + $0x2e0] ss:$16 sps:$4 sm:$0xff]   ;;  %v5517_v22 = vld [vmem:[%s7356_s1 + $0xa4] ss:$16 sps:$4 sm:$0xff]  }
  0x7c   : > { %1752 = vmatprep.subr.bf16.mxu1 %v4514_v27  ;;  %v5524_v27 = vld [vmem:[%s7356_s1 + $0x2a4] ss:$16 sps:$4 sm:$0xff]  }
  0x7d   : > { %1482 = vmatmul.mubr.bf16.gmra.mxu0 %v5406_v32 }
  0x7e   : > { %1595 = vmatmul.mubr.bf16.gmra.mxu1 %v5408_v33  ;;  %1640 = vmatpush2.bf16.msra.mxu0 %v4509_v28  ;;  %v5531_v28 = vld [vmem:[%s7356_s1 + $0xa0] ss:$16 sps:$4 sm:$0xff]  }
  0x7f   : > { %1753 = vmatpush2.bf16.msra.mxu1 %v4512_v29  ;;  %1641 = vmatprep.subr.bf16.mxu0 %v4517_v38  ;;  %v5536_v29 = vld [vmem:[%s7356_s1 + $0x2a0] ss:$16 sps:$4 sm:$0xff]   ;;  %v5569_v38 = vld [vmem:[%s7356_s1 + $0x64] ss:$16 sps:$4 sm:$0xff]  }
  0x80   : > { %1754 = vmatprep.subr.bf16.mxu1 %v4520_v39  ;;  %1491 = vmatprep.mubr.bf16.mxu0 %v5424_v46  ;;  %v5576_v39 = vld [vmem:[%s7356_s1 + $0x264] ss:$16 sps:$4 sm:$0xff]  }
  0x81   : > { %1604 = vmatprep.mubr.bf16.mxu1 %v5426_v47 }
  0x82   : > { %1642 = vmatpush2.bf16.msra.mxu0 %v4515_v42  ;;  %v5583_v42 = vld [vmem:[%s7356_s1 + $0x60] ss:$16 sps:$4 sm:$0xff]  }
  0x83   : > { %1755 = vmatpush2.bf16.msra.mxu1 %v4518_v45  ;;  %1643 = vmatprep.subr.bf16.mxu0 %v4523_v56  ;;  %v5588_v45 = vld [vmem:[%s7356_s1 + $0x260] ss:$16 sps:$4 sm:$0xff]   ;;  %v5621_v56 = vld [vmem:[%s7356_s1 + $0x24] ss:$16 sps:$4 sm:$0xff]  }
  0x84   : > { %1756 = vmatprep.subr.bf16.mxu1 %v4526_v57  ;;  %7442 = vst [vmem:[#allocation2_spill] sm:$0xff] %v5621_v56  ;;  %v5628_v57 = vld [vmem:[%s7356_s1 + $0x224] ss:$16 sps:$4 sm:$0xff]  }
  0x85   : > { %1492 = vmatmul.mubr.bf16.gmra.mxu0 %v5442_v60  ;;  %7443 = vst [vmem:[#allocation3_spill] sm:$0xff] %v5628_v57 }
  0x86   : > { %1605 = vmatmul.mubr.bf16.gmra.mxu1 %v5444_v61  ;;  %1644 = vmatpush2.bf16.msra.mxu0 %v4521_v62  ;;  %v5635_v62 = vld [vmem:[%s7356_s1 + $0x20] ss:$16 sps:$4 sm:$0xff]  }
  0x87   : > { %1757 = vmatpush2.bf16.msra.mxu1 %v4524_v63  ;;  %1645 = vmatprep.subr.bf16.mxu0 %v4529_v0  ;;  %7444 = vst [vmem:[#allocation4_spill] sm:$0xff] %v5635_v62  ;;  %v5640_v63 = vld [vmem:[%s7356_s1 + $0x220] ss:$16 sps:$4 sm:$0xff]   ;;  %v5647_v0 = vld [vmem:[%s7356_s1 + $0x4] ss:$16 sps:$4 sm:$0xff]  }
  0x88   : > { %1758 = vmatprep.subr.bf16.mxu1 %v4532_v3  ;;  %1647 = vmatprep.mubr.bf16.mxu0 %v5073_v53  ;;  %7445 = vst [vmem:[#allocation5_spill] sm:$0xff] %v5640_v63  ;;  %7446 = vst [vmem:[#allocation6_spill] sm:$0xff] %v5647_v0  ;;  %v5654_v3 = vld [vmem:[%s7356_s1 + $0x204] ss:$16 sps:$4 sm:$0xff]  }
  0x89   : > { %1760 = vmatprep.mubr.bf16.mxu1 %v5075_v54  ;;  %7447 = vst [vmem:[#allocation7_spill] sm:$0xff] %v5654_v3 }
  0x8a   : > { %1646 = vmatpush2.bf16.msra.mxu0 %v4527_v6  ;;  %v5661_v6 = vld [vmem:[%s7356_s1] ss:$16 sps:$4 sm:$0xff]  }
  0x8b   : > { %1759 = vmatpush2.bf16.msra.mxu1 %v4530_v7  ;;  %2481 = vmatprep.subr.bf16.mxu0 %v5469_v8  ;;  %7448 = vst [vmem:[#allocation8_spill] sm:$0xff] %v5661_v6  ;;  %v5666_v7 = vld [vmem:[%s7356_s1 + $0x200] ss:$16 sps:$4 sm:$0xff]  }
  0x8c   : > { %2594 = vmatprep.subr.bf16.mxu1 %v5474_v9  ;;  %7449 = vst [vmem:[#allocation9_spill] sm:$0xff] %v5666_v7 }
  0x8d   : > { %1648 = vmatmul.mubr.bf16.vlgmr.msra.gmra.mxu0 %v5142_v16 }
  0x8e   : > { %1761 = vmatmul.mubr.bf16.vlgmr.msra.gmra.mxu1 %v5144_v17  ;;  %2482 = vmatpush1.bf16.msra.mxu0 %v5481_v10 }
  0x8f   : > { %2595 = vmatpush1.bf16.msra.mxu1 %v5486_v11  ;;  %2483 = vmatprep.subr.bf16.mxu0 %v5491_v18 }
  0x90   : > { %2596 = vmatprep.subr.bf16.mxu1 %v5498_v19  ;;  %1657 = vmatprep.mubr.bf16.mxu0 %v5157_v23 }
  0x91   : > { %1770 = vmatprep.mubr.bf16.mxu1 %v5159_v24 }
  0x92   : > { %2484 = vmatpush1.bf16.msra.mxu0 %v5505_v20 }
  0x93   : > { %2597 = vmatpush1.bf16.msra.mxu1 %v5510_v21  ;;  %2485 = vmatprep.subr.bf16.mxu0 %v5517_v22 }
  0x94   : > { %2598 = vmatprep.subr.bf16.mxu1 %v5524_v27 }
  0x95   : > { %1658 = vmatmul.mubr.bf16.gmra.mxu0 %v5186_v36 }
  0x96   : > { %1771 = vmatmul.mubr.bf16.gmra.mxu1 %v5188_v37  ;;  %2486 = vmatpush1.bf16.msra.mxu0 %v5531_v28 }
  0x97   : > { %2599 = vmatpush1.bf16.msra.mxu1 %v5536_v29  ;;  %2487 = vmatprep.subr.bf16.mxu0 %v5543_v30 }
  0x98   : > { %2600 = vmatprep.subr.bf16.mxu1 %v5550_v31  ;;  %1667 = vmatprep.mubr.bf16.mxu0 %v5201_v43 }
  0x99   : > { %1780 = vmatprep.mubr.bf16.mxu1 %v5203_v44 }
  0x9a   : > { %2488 = vmatpush1.bf16.msra.mxu0 %v5557_v34 }
  0x9b   : > { %2601 = vmatpush1.bf16.msra.mxu1 %v5562_v35  ;;  %2489 = vmatprep.subr.bf16.mxu0 %v5569_v38 }
  0x9c   : > { %2602 = vmatprep.subr.bf16.mxu1 %v5576_v39 }
  0x9d   : > { %1668 = vmatmul.mubr.bf16.gmra.mxu0 %v5230_v58 }
  0x9e   : > { %1781 = vmatmul.mubr.bf16.gmra.mxu1 %v5232_v59  ;;  %2490 = vmatpush1.bf16.msra.mxu0 %v5583_v42 }
  0x9f   : > { %2603 = vmatpush1.bf16.msra.mxu1 %v5588_v45  ;;  %2491 = vmatprep.subr.bf16.mxu0 %v5595_v48 }
  0xa0   : > { %2604 = vmatprep.subr.bf16.mxu1 %v5602_v51  ;;  %1677 = vmatprep.mubr.bf16.mxu0 %v5245_v1 }
  0xa1   : > { %1790 = vmatprep.mubr.bf16.mxu1 %v5247_v2 }
  0xa2   : > { %2492 = vmatpush1.bf16.msra.mxu0 %v5609_v52 }
  0xa3   : > { %2605 = vmatpush1.bf16.msra.mxu1 %v5614_v55  ;;  %2493 = vmatprep.subr.bf16.mxu0 %v5621_v56  ;;  %v5680_v56 = vld [vmem:[%s7356_s1 + $0x3e4] ss:$16 sps:$4 sm:$0xff]  }
  0xa4   : > { %2606 = vmatprep.subr.bf16.mxu1 %v5628_v57  ;;  %v5673_v57 = vld [vmem:[%s7356_s1 + $0x1e4] ss:$16 sps:$4 sm:$0xff]   ;;  %7451 = vst [vmem:[#allocation11_spill] sm:$0xff] %v5680_v56 }
  0xa5   : > { %1678 = vmatmul.mubr.bf16.gmra.mxu0 %v5274_v14  ;;  %7450 = vst [vmem:[#allocation10_spill] sm:$0xff] %v5673_v57 }
  0xa6   : > { %1791 = vmatmul.mubr.bf16.gmra.mxu1 %v5276_v15  ;;  %2494 = vmatpush1.bf16.msra.mxu0 %v5635_v62  ;;  %v5706_v62 = vld [vmem:[%s7356_s1 + $0x3c4] ss:$16 sps:$4 sm:$0xff]  }
  0xa7   : > { %2607 = vmatpush1.bf16.msra.mxu1 %v5640_v63  ;;  %2495 = vmatprep.subr.bf16.mxu0 %v5647_v0  ;;  %v5687_v63 = vld [vmem:[%s7356_s1 + $0x1e0] ss:$16 sps:$4 sm:$0xff]   ;;  %7455 = vst [vmem:[#allocation15_spill] sm:$0xff] %v5706_v62 }
  0xa8   : > { %2608 = vmatprep.subr.bf16.mxu1 %v5654_v3  ;;  %1687 = vmatprep.mubr.bf16.mxu0 %v5289_v25  ;;  %7452 = vst [vmem:[#allocation12_spill] sm:$0xff] %v5687_v63  ;;  %v5692_v0 = vld [vmem:[%s7356_s1 + $0x3e0] ss:$16 sps:$4 sm:$0xff]   ;;  %v5699_v3 = vld [vmem:[%s7356_s1 + $0x1c4] ss:$16 sps:$4 sm:$0xff]  }
  0xa9   : > { %1800 = vmatprep.mubr.bf16.mxu1 %v5291_v26  ;;  %7453 = vst [vmem:[#allocation13_spill] sm:$0xff] %v5692_v0  ;;  %7454 = vst [vmem:[#allocation14_spill] sm:$0xff] %v5699_v3 }
  0xaa   : > { %2496 = vmatpush1.bf16.msra.mxu0 %v5661_v6  ;;  %v5732_v6 = vld [vmem:[%s7356_s1 + $0x3a4] ss:$16 sps:$4 sm:$0xff]  }
  0xab   : > { %2609 = vmatpush1.bf16.msra.mxu1 %v5666_v7  ;;  %2497 = vmatprep.subr.bf16.mxu0 %v5673_v57  ;;  %v5713_v7 = vld [vmem:[%s7356_s1 + $0x1c0] ss:$16 sps:$4 sm:$0xff]   ;;  %7459 = vst [vmem:[#allocation19_spill] sm:$0xff] %v5732_v6 }
  0xac   : > { %2610 = vmatprep.subr.bf16.mxu1 %v5680_v56  ;;  %7456 = vst [vmem:[#allocation16_spill] sm:$0xff] %v5713_v7  ;;  %v5718_v57 = vld [vmem:[%s7356_s1 + $0x3c0] ss:$16 sps:$4 sm:$0xff]   ;;  %v5725_v56 = vld [vmem:[%s7356_s1 + $0x1a4] ss:$16 sps:$4 sm:$0xff]  }
  0xad   : > { %1688 = vmatmul.mubr.bf16.gmra.mxu0 %v5318_v40  ;;  %7457 = vst [vmem:[#allocation17_spill] sm:$0xff] %v5718_v57  ;;  %7458 = vst [vmem:[#allocation18_spill] sm:$0xff] %v5725_v56 }
  0xae   : > { %1801 = vmatmul.mubr.bf16.gmra.mxu1 %v5320_v41  ;;  %2498 = vmatpush2.bf16.msra.mxu0 %v5687_v63  ;;  %v5758_v63 = vld [vmem:[%s7356_s1 + $0x384] ss:$16 sps:$4 sm:$0xff]  }
  0xaf   : > { %2611 = vmatpush2.bf16.msra.mxu1 %v5692_v0  ;;  %2499 = vmatprep.subr.bf16.mxu0 %v5699_v3  ;;  %v5739_v0 = vld [vmem:[%s7356_s1 + $0x1a0] ss:$16 sps:$4 sm:$0xff]   ;;  %7463 = vst [vmem:[#allocation23_spill] sm:$0xff] %v5758_v63 }
  0xb0   : > { %2612 = vmatprep.subr.bf16.mxu1 %v5706_v62  ;;  %1697 = vmatprep.mubr.bf16.mxu0 %v5333_v49  ;;  %7460 = vst [vmem:[#allocation20_spill] sm:$0xff] %v5739_v0  ;;  %v5744_v3 = vld [vmem:[%s7356_s1 + $0x3a0] ss:$16 sps:$4 sm:$0xff]   ;;  %v5751_v62 = vld [vmem:[%s7356_s1 + $0x184] ss:$16 sps:$4 sm:$0xff]  }
  0xb1   : > { %1810 = vmatprep.mubr.bf16.mxu1 %v5335_v50  ;;  %7461 = vst [vmem:[#allocation21_spill] sm:$0xff] %v5744_v3  ;;  %7462 = vst [vmem:[#allocation22_spill] sm:$0xff] %v5751_v62 }
  0xb2   : > { %2500 = vmatpush2.bf16.msra.mxu0 %v5713_v7  ;;  %v5784_v7 = vld [vmem:[%s7356_s1 + $0x364] ss:$16 sps:$4 sm:$0xff]  }
  0xb3   : > { %2613 = vmatpush2.bf16.msra.mxu1 %v5718_v57  ;;  %2501 = vmatprep.subr.bf16.mxu0 %v5725_v56  ;;  %v5765_v57 = vld [vmem:[%s7356_s1 + $0x180] ss:$16 sps:$4 sm:$0xff]   ;;  %7467 = vst [vmem:[#allocation27_spill] sm:$0xff] %v5784_v7 }
  0xb4   : > { %2614 = vmatprep.subr.bf16.mxu1 %v5732_v6  ;;  %7464 = vst [vmem:[#allocation24_spill] sm:$0xff] %v5765_v57  ;;  %v5770_v56 = vld [vmem:[%s7356_s1 + $0x380] ss:$16 sps:$4 sm:$0xff]   ;;  %v5777_v6 = vld [vmem:[%s7356_s1 + $0x164] ss:$16 sps:$4 sm:$0xff]  }
  0xb5   : > { %1698 = vmatmul.mubr.bf16.gmra.mxu0 %v5362_v4  ;;  %7465 = vst [vmem:[#allocation25_spill] sm:$0xff] %v5770_v56  ;;  %7466 = vst [vmem:[#allocation26_spill] sm:$0xff] %v5777_v6 }
  0xb6   : > { %1811 = vmatmul.mubr.bf16.gmra.mxu1 %v5364_v5  ;;  %2502 = vmatpush2.bf16.msra.mxu0 %v5739_v0  ;;  %v5810_v0 = vld [vmem:[%s7356_s1 + $0x344] ss:$16 sps:$4 sm:$0xff]  }
  0xb7   : > { %2615 = vmatpush2.bf16.msra.mxu1 %v5744_v3  ;;  %2503 = vmatprep.subr.bf16.mxu0 %v5751_v62  ;;  %v5791_v3 = vld [vmem:[%s7356_s1 + $0x160] ss:$16 sps:$4 sm:$0xff]   ;;  %7471 = vst [vmem:[#allocation31_spill] sm:$0xff] %v5810_v0 }
  0xb8   : > { %2616 = vmatprep.subr.bf16.mxu1 %v5758_v63  ;;  %1707 = vmatprep.mubr.bf16.mxu0 %v5380_v12  ;;  %7468 = vst [vmem:[#allocation28_spill] sm:$0xff] %v5791_v3  ;;  %v5796_v62 = vld [vmem:[%s7356_s1 + $0x360] ss:$16 sps:$4 sm:$0xff]   ;;  %v5803_v63 = vld [vmem:[%s7356_s1 + $0x144] ss:$16 sps:$4 sm:$0xff]  }
  0xb9   : > { %1820 = vmatprep.mubr.bf16.mxu1 %v5382_v13  ;;  %7469 = vst [vmem:[#allocation29_spill] sm:$0xff] %v5796_v62  ;;  %7470 = vst [vmem:[#allocation30_spill] sm:$0xff] %v5803_v63 }
  0xba   : > { %2504 = vmatpush2.bf16.msra.mxu0 %v5765_v57  ;;  %v5836_v57 = vld [vmem:[%s7356_s1 + $0x324] ss:$16 sps:$4 sm:$0xff]  }
  0xbb   : > { %2617 = vmatpush2.bf16.msra.mxu1 %v5770_v56  ;;  %2505 = vmatprep.subr.bf16.mxu0 %v5777_v6  ;;  %v5817_v56 = vld [vmem:[%s7356_s1 + $0x140] ss:$16 sps:$4 sm:$0xff]   ;;  %7475 = vst [vmem:[#allocation35_spill] sm:$0xff] %v5836_v57 }
  0xbc   : > { %2618 = vmatprep.subr.bf16.mxu1 %v5784_v7  ;;  %7472 = vst [vmem:[#allocation32_spill] sm:$0xff] %v5817_v56  ;;  %v5822_v6 = vld [vmem:[%s7356_s1 + $0x340] ss:$16 sps:$4 sm:$0xff]   ;;  %v5829_v7 = vld [vmem:[%s7356_s1 + $0x124] ss:$16 sps:$4 sm:$0xff]  }
  0xbd   : > { %1708 = vmatmul.mubr.bf16.gmra.mxu0 %v5406_v32  ;;  %7473 = vst [vmem:[#allocation33_spill] sm:$0xff] %v5822_v6  ;;  %7474 = vst [vmem:[#allocation34_spill] sm:$0xff] %v5829_v7 }
  0xbe   : > { %1821 = vmatmul.mubr.bf16.gmra.mxu1 %v5408_v33  ;;  %2506 = vmatpush2.bf16.msra.mxu0 %v5791_v3  ;;  %v5862_v3 = vld [vmem:[%s7356_s1 + $0x304] ss:$16 sps:$4 sm:$0xff]  }
  0xbf   : > { %2619 = vmatpush2.bf16.msra.mxu1 %v5796_v62  ;;  %2507 = vmatprep.subr.bf16.mxu0 %v5803_v63  ;;  %v5843_v62 = vld [vmem:[%s7356_s1 + $0x120] ss:$16 sps:$4 sm:$0xff]   ;;  %7479 = vst [vmem:[#allocation39_spill] sm:$0xff] %v5862_v3 }
  0xc0   : > { %2620 = vmatprep.subr.bf16.mxu1 %v5810_v0  ;;  %1717 = vmatprep.mubr.bf16.mxu0 %v5424_v46  ;;  %7476 = vst [vmem:[#allocation36_spill] sm:$0xff] %v5843_v62  ;;  %v5848_v63 = vld [vmem:[%s7356_s1 + $0x320] ss:$16 sps:$4 sm:$0xff]   ;;  %v5855_v0 = vld [vmem:[%s7356_s1 + $0x104] ss:$16 sps:$4 sm:$0xff]  }
  0xc1   : > { %1830 = vmatprep.mubr.bf16.mxu1 %v5426_v47  ;;  %7477 = vst [vmem:[#allocation37_spill] sm:$0xff] %v5848_v63  ;;  %7478 = vst [vmem:[#allocation38_spill] sm:$0xff] %v5855_v0 }
  0xc2   : > { %2508 = vmatpush2.bf16.msra.mxu0 %v5817_v56  ;;  %v5888_v56 = vld [vmem:[%s7356_s1 + $0x2ec] ss:$16 sps:$4 sm:$0xff]  }
  0xc3   : > { %2621 = vmatpush2.bf16.msra.mxu1 %v5822_v6  ;;  %2509 = vmatprep.subr.bf16.mxu0 %v5829_v7  ;;  %v5869_v6 = vld [vmem:[%s7356_s1 + $0x100] ss:$16 sps:$4 sm:$0xff]   ;;  %7483 = vst [vmem:[#allocation43_spill] sm:$0xff] %v5888_v56 }
  0xc4   : > { %2622 = vmatprep.subr.bf16.mxu1 %v5836_v57  ;;  %7480 = vst [vmem:[#allocation40_spill] sm:$0xff] %v5869_v6  ;;  %v5874_v7 = vld [vmem:[%s7356_s1 + $0x300] ss:$16 sps:$4 sm:$0xff]   ;;  %v5881_v57 = vld [vmem:[%s7356_s1 + $0xec] ss:$16 sps:$4 sm:$0xff]  }
  0xc5   : > { %1718 = vmatmul.mubr.bf16.gmra.mxu0 %v5442_v60  ;;  %7481 = vst [vmem:[#allocation41_spill] sm:$0xff] %v5874_v7  ;;  %7482 = vst [vmem:[#allocation42_spill] sm:$0xff] %v5881_v57 }
  0xc6   : > { %1831 = vmatmul.mubr.bf16.gmra.mxu1 %v5444_v61  ;;  %2510 = vmatpush2.bf16.msra.mxu0 %v5843_v62  ;;  %v4706_v62 = vld [vmem:[%s7356_s1 + $0x36c] ss:$16 sps:$4 sm:$0xff]  }
  0xc7   : > { %2623 = vmatpush2.bf16.msra.mxu1 %v5848_v63  ;;  %2511 = vmatprep.subr.bf16.mxu0 %v5855_v0  ;;  %v5897_v63 = vld [vmem:[%s7356_s1 + $0xe8] ss:$16 sps:$4 sm:$0xff]   ;;  %v4697_v0 = vld [vmem:[%s7356_s1 + $0x18c] ss:$16 sps:$4 sm:$0xff]  }
  0xc8   : > { %2624 = vmatprep.subr.bf16.mxu1 %v5862_v3  ;;  %2513 = vmatprep.mubr.bf16.mxu0 %v5073_v53  ;;  %7484 = vst [vmem:[#allocation44_spill] sm:$0xff] %v5897_v63  ;;  %v5902_v3 = vld [vmem:[%s7356_s1 + $0x2e8] ss:$16 sps:$4 sm:$0xff]  }
  0xc9   : > { %2626 = vmatprep.mubr.bf16.mxu1 %v5075_v54  ;;  %7485 = vst [vmem:[#allocation45_spill] sm:$0xff] %v5902_v3 }
  0xca   : > { %2512 = vmatpush2.bf16.msra.mxu0 %v5869_v6  ;;  %v5909_v6 = vld [vmem:[%s7356_s1 + $0xcc] ss:$16 sps:$4 sm:$0xff]  }
  0xcb   : > { %2625 = vmatpush2.bf16.msra.mxu1 %v5874_v7  ;;  %2707 = vmatprep.subr.bf16.mxu0 %v5881_v57  ;;  %7486 = vst [vmem:[#allocation46_spill] sm:$0xff] %v5909_v6  ;;  %v5914_v7 = vld [vmem:[%s7356_s1 + $0x2cc] ss:$16 sps:$4 sm:$0xff]   ;;  %v5928_v57 = vld [vmem:[%s7356_s1 + $0x2c8] ss:$16 sps:$4 sm:$0xff]  }
  0xcc   : > { %2820 = vmatprep.subr.bf16.mxu1 %v5888_v56  ;;  %7487 = vst [vmem:[#allocation47_spill] sm:$0xff] %v5914_v7  ;;  %v5923_v56 = vld [vmem:[%s7356_s1 + $0xc8] ss:$16 sps:$4 sm:$0xff]   ;;  %7489 = vst [vmem:[#allocation49_spill] sm:$0xff] %v5928_v57 }
  0xcd   : > { %2514 = vmatmul.mubr.bf16.vlgmr.msra.gmra.mxu0 %v5142_v16  ;;  %7488 = vst [vmem:[#allocation48_spill] sm:$0xff] %v5923_v56 }
  0xce   : > { %2627 = vmatmul.mubr.bf16.vlgmr.msra.gmra.mxu1 %v5144_v17  ;;  %2708 = vmatpush1.bf16.msra.mxu0 %v5897_v63  ;;  %v5935_v63 = vld [vmem:[%s7356_s1 + $0xac] ss:$16 sps:$4 sm:$0xff]  }
  0xcf   : > { %2821 = vmatpush1.bf16.msra.mxu1 %v5902_v3  ;;  %2709 = vmatprep.subr.bf16.mxu0 %v5909_v6  ;;  %7490 = vst [vmem:[#allocation50_spill] sm:$0xff] %v5935_v63  ;;  %v5940_v3 = vld [vmem:[%s7356_s1 + $0x2ac] ss:$16 sps:$4 sm:$0xff]   ;;  %v5954_v6 = vld [vmem:[%s7356_s1 + $0x2a8] ss:$16 sps:$4 sm:$0xff]  }
  0xd0   : > { %2822 = vmatprep.subr.bf16.mxu1 %v5914_v7  ;;  %7491 = vst [vmem:[#allocation51_spill] sm:$0xff] %v5940_v3  ;;  %2523 = vmatprep.mubr.bf16.mxu0 %v5157_v23  ;;  %v5949_v7 = vld [vmem:[%s7356_s1 + $0xa8] ss:$16 sps:$4 sm:$0xff]   ;;  %7493 = vst [vmem:[#allocation53_spill] sm:$0xff] %v5954_v6 }
  0xd1   : > { %2636 = vmatprep.mubr.bf16.mxu1 %v5159_v24  ;;  %7492 = vst [vmem:[#allocation52_spill] sm:$0xff] %v5949_v7 }
  0xd2   : > { %2710 = vmatpush1.bf16.msra.mxu0 %v5923_v56  ;;  %v5961_v56 = vld [vmem:[%s7356_s1 + $0x8c] ss:$16 sps:$4 sm:$0xff]  }
  0xd3   : > { %2823 = vmatpush1.bf16.msra.mxu1 %v5928_v57  ;;  %2711 = vmatprep.subr.bf16.mxu0 %v5935_v63  ;;  %7494 = vst [vmem:[#allocation54_spill] sm:$0xff] %v5961_v56  ;;  %v5966_v57 = vld [vmem:[%s7356_s1 + $0x28c] ss:$16 sps:$4 sm:$0xff]   ;;  %v5980_v63 = vld [vmem:[%s7356_s1 + $0x288] ss:$16 sps:$4 sm:$0xff]  }
  0xd4   : > { %2824 = vmatprep.subr.bf16.mxu1 %v5940_v3  ;;  %7495 = vst [vmem:[#allocation55_spill] sm:$0xff] %v5966_v57  ;;  %v5975_v3 = vld [vmem:[%s7356_s1 + $0x88] ss:$16 sps:$4 sm:$0xff]   ;;  %7497 = vst [vmem:[#allocation57_spill] sm:$0xff] %v5980_v63 }
  0xd5   : > { %2524 = vmatmul.mubr.bf16.gmra.mxu0 %v5186_v36  ;;  %7496 = vst [vmem:[#allocation56_spill] sm:$0xff] %v5975_v3 }
  0xd6   : > { %2637 = vmatmul.mubr.bf16.gmra.mxu1 %v5188_v37  ;;  %2712 = vmatpush1.bf16.msra.mxu0 %v5949_v7  ;;  %v5987_v7 = vld [vmem:[%s7356_s1 + $0x6c] ss:$16 sps:$4 sm:$0xff]  }
  0xd7   : > { %2825 = vmatpush1.bf16.msra.mxu1 %v5954_v6  ;;  %2713 = vmatprep.subr.bf16.mxu0 %v5961_v56  ;;  %7498 = vst [vmem:[#allocation58_spill] sm:$0xff] %v5987_v7  ;;  %v5992_v6 = vld [vmem:[%s7356_s1 + $0x26c] ss:$16 sps:$4 sm:$0xff]   ;;  %v6006_v56 = vld [vmem:[%s7356_s1 + $0x268] ss:$16 sps:$4 sm:$0xff]  }
  0xd8   : > { %2826 = vmatprep.subr.bf16.mxu1 %v5966_v57  ;;  %7499 = vst [vmem:[#allocation59_spill] sm:$0xff] %v5992_v6  ;;  %2533 = vmatprep.mubr.bf16.mxu0 %v5201_v43  ;;  %v6001_v57 = vld [vmem:[%s7356_s1 + $0x68] ss:$16 sps:$4 sm:$0xff]   ;;  %7501 = vst [vmem:[#allocation61_spill] sm:$0xff] %v6006_v56 }
  0xd9   : > { %2646 = vmatprep.mubr.bf16.mxu1 %v5203_v44  ;;  %7500 = vst [vmem:[#allocation60_spill] sm:$0xff] %v6001_v57 }
  0xda   : > { %2714 = vmatpush1.bf16.msra.mxu0 %v5975_v3  ;;  %v6013_v3 = vld [vmem:[%s7356_s1 + $0x4c] ss:$16 sps:$4 sm:$0xff]  }
  0xdb   : > { %2827 = vmatpush1.bf16.msra.mxu1 %v5980_v63  ;;  %2715 = vmatprep.subr.bf16.mxu0 %v5987_v7  ;;  %7502 = vst [vmem:[#allocation62_spill] sm:$0xff] %v6013_v3  ;;  %v6018_v63 = vld [vmem:[%s7356_s1 + $0x24c] ss:$16 sps:$4 sm:$0xff]   ;;  %v6032_v7 = vld [vmem:[%s7356_s1 + $0x248] ss:$16 sps:$4 sm:$0xff]  }
  0xdc   : > { %2828 = vmatprep.subr.bf16.mxu1 %v5992_v6  ;;  %7503 = vst [vmem:[#allocation63_spill] sm:$0xff] %v6018_v63  ;;  %v6027_v6 = vld [vmem:[%s7356_s1 + $0x48] ss:$16 sps:$4 sm:$0xff]   ;;  %7505 = vst [vmem:[#allocation65_spill] sm:$0xff] %v6032_v7 }
  0xdd   : > { %2534 = vmatmul.mubr.bf16.gmra.mxu0 %v5230_v58  ;;  %7504 = vst [vmem:[#allocation64_spill] sm:$0xff] %v6027_v6 }
  0xde   : > { %2647 = vmatmul.mubr.bf16.gmra.mxu1 %v5232_v59  ;;  %2716 = vmatpush1.bf16.msra.mxu0 %v6001_v57  ;;  %v6039_v57 = vld [vmem:[%s7356_s1 + $0x2c] ss:$16 sps:$4 sm:$0xff]  }
  0xdf   : > { %2829 = vmatpush1.bf16.msra.mxu1 %v6006_v56  ;;  %2717 = vmatprep.subr.bf16.mxu0 %v6013_v3  ;;  %7506 = vst [vmem:[#allocation66_spill] sm:$0xff] %v6039_v57  ;;  %v6044_v56 = vld [vmem:[%s7356_s1 + $0x22c] ss:$16 sps:$4 sm:$0xff]   ;;  %v6058_v3 = vld [vmem:[%s7356_s1 + $0x228] ss:$16 sps:$4 sm:$0xff]  }
  0xe0   : > { %2830 = vmatprep.subr.bf16.mxu1 %v6018_v63  ;;  %7507 = vst [vmem:[#allocation67_spill] sm:$0xff] %v6044_v56  ;;  %2543 = vmatprep.mubr.bf16.mxu0 %v5245_v1  ;;  %v6053_v63 = vld [vmem:[%s7356_s1 + $0x28] ss:$16 sps:$4 sm:$0xff]   ;;  %7509 = vst [vmem:[#allocation69_spill] sm:$0xff] %v6058_v3 }
  0xe1   : > { %2656 = vmatprep.mubr.bf16.mxu1 %v5247_v2  ;;  %7508 = vst [vmem:[#allocation68_spill] sm:$0xff] %v6053_v63 }
  0xe2   : > { %2718 = vmatpush1.bf16.msra.mxu0 %v6027_v6  ;;  %v6065_v6 = vld [vmem:[%s7356_s1 + $0xc] ss:$16 sps:$4 sm:$0xff]  }
  0xe3   : > { %2831 = vmatpush1.bf16.msra.mxu1 %v6032_v7  ;;  %2719 = vmatprep.subr.bf16.mxu0 %v6039_v57  ;;  %7510 = vst [vmem:[#allocation70_spill] sm:$0xff] %v6065_v6  ;;  %v6070_v7 = vld [vmem:[%s7356_s1 + $0x20c] ss:$16 sps:$4 sm:$0xff]   ;;  %v6084_v57 = vld [vmem:[%s7356_s1 + $0x208] ss:$16 sps:$4 sm:$0xff]  }
  0xe4   : > { %2832 = vmatprep.subr.bf16.mxu1 %v6044_v56  ;;  %7511 = vst [vmem:[#allocation71_spill] sm:$0xff] %v6070_v7  ;;  %v6079_v56 = vld [vmem:[%s7356_s1 + $0x8] ss:$16 sps:$4 sm:$0xff]   ;;  %7513 = vst [vmem:[#allocation73_spill] sm:$0xff] %v6084_v57 }
  0xe5   : > { %2544 = vmatmul.mubr.bf16.gmra.mxu0 %v5274_v14  ;;  %7512 = vst [vmem:[#allocation72_spill] sm:$0xff] %v6079_v56 }
  0xe6   : > { %2657 = vmatmul.mubr.bf16.gmra.mxu1 %v5276_v15  ;;  %2720 = vmatpush1.bf16.msra.mxu0 %v6053_v63  ;;  %v6091_v63 = vld [vmem:[%s7356_s1 + $0x1ec] ss:$16 sps:$4 sm:$0xff]  }
  0xe7   : > { %2833 = vmatpush1.bf16.msra.mxu1 %v6058_v3  ;;  %2721 = vmatprep.subr.bf16.mxu0 %v6065_v6  ;;  %7514 = vst [vmem:[#allocation74_spill] sm:$0xff] %v6091_v63  ;;  %v6096_v3 = vld [vmem:[%s7356_s1 + $0x3ec] ss:$16 sps:$4 sm:$0xff]   ;;  %v6110_v6 = vld [vmem:[%s7356_s1 + $0x3e8] ss:$16 sps:$4 sm:$0xff]  }
  0xe8   : > { %2834 = vmatprep.subr.bf16.mxu1 %v6070_v7  ;;  %7515 = vst [vmem:[#allocation75_spill] sm:$0xff] %v6096_v3  ;;  %2553 = vmatprep.mubr.bf16.mxu0 %v5289_v25  ;;  %v6105_v7 = vld [vmem:[%s7356_s1 + $0x1e8] ss:$16 sps:$4 sm:$0xff]   ;;  %7517 = vst [vmem:[#allocation77_spill] sm:$0xff] %v6110_v6 }
  0xe9   : > { %2666 = vmatprep.mubr.bf16.mxu1 %v5291_v26  ;;  %7516 = vst [vmem:[#allocation76_spill] sm:$0xff] %v6105_v7 }
  0xea   : > { %2722 = vmatpush1.bf16.msra.mxu0 %v6079_v56  ;;  %v6117_v56 = vld [vmem:[%s7356_s1 + $0x1cc] ss:$16 sps:$4 sm:$0xff]  }
  0xeb   : > { %2835 = vmatpush1.bf16.msra.mxu1 %v6084_v57  ;;  %2723 = vmatprep.subr.bf16.mxu0 %v6091_v63  ;;  %7518 = vst [vmem:[#allocation78_spill] sm:$0xff] %v6117_v56  ;;  %v6122_v57 = vld [vmem:[%s7356_s1 + $0x3cc] ss:$16 sps:$4 sm:$0xff]   ;;  %v6136_v63 = vld [vmem:[%s7356_s1 + $0x3c8] ss:$16 sps:$4 sm:$0xff]  }
  0xec   : > { %2836 = vmatprep.subr.bf16.mxu1 %v6096_v3  ;;  %7519 = vst [vmem:[#allocation79_spill] sm:$0xff] %v6122_v57  ;;  %v6131_v3 = vld [vmem:[%s7356_s1 + $0x1c8] ss:$16 sps:$4 sm:$0xff]   ;;  %7521 = vst [vmem:[#allocation81_spill] sm:$0xff] %v6136_v63 }
  0xed   : > { %2554 = vmatmul.mubr.bf16.gmra.mxu0 %v5318_v40  ;;  %7520 = vst [vmem:[#allocation80_spill] sm:$0xff] %v6131_v3 }
  0xee   : > { %2667 = vmatmul.mubr.bf16.gmra.mxu1 %v5320_v41  ;;  %2724 = vmatpush2.bf16.msra.mxu0 %v6105_v7  ;;  %v6143_v7 = vld [vmem:[%s7356_s1 + $0x1ac] ss:$16 sps:$4 sm:$0xff]  }
  0xef   : > { %2837 = vmatpush2.bf16.msra.mxu1 %v6110_v6  ;;  %2725 = vmatprep.subr.bf16.mxu0 %v6117_v56  ;;  %7522 = vst [vmem:[#allocation82_spill] sm:$0xff] %v6143_v7  ;;  %v6148_v6 = vld [vmem:[%s7356_s1 + $0x3ac] ss:$16 sps:$4 sm:$0xff]   ;;  %v4692_v56 = vld [vmem:[%s7356_s1 + $0x3a8] ss:$16 sps:$4 sm:$0xff]  }
  0xf0   : > { %2838 = vmatprep.subr.bf16.mxu1 %v6122_v57  ;;  %7523 = vst [vmem:[#allocation83_spill] sm:$0xff] %v6148_v6  ;;  %2563 = vmatprep.mubr.bf16.mxu0 %v5333_v49  ;;  %v4689_v57 = vld [vmem:[%s7356_s1 + $0x1a8] ss:$16 sps:$4 sm:$0xff]  }
  0xf1   : > { %2676 = vmatprep.mubr.bf16.mxu1 %v5335_v50 }
  0xf2   : > { %2726 = vmatpush2.bf16.msra.mxu0 %v6131_v3  ;;  %v4703_v3 = vld [vmem:[%s7356_s1 + $0x16c] ss:$16 sps:$4 sm:$0xff]  }
  0xf3   : > { %2839 = vmatpush2.bf16.msra.mxu1 %v6136_v63  ;;  %2727 = vmatprep.subr.bf16.mxu0 %v6143_v7  ;;  %v4700_v63 = vld [vmem:[%s7356_s1 + $0x38c] ss:$16 sps:$4 sm:$0xff]   ;;  %v4695_v7 = vld [vmem:[%s7356_s1 + $0x188] ss:$16 sps:$4 sm:$0xff]  }
  0xf4   : > { %2840 = vmatprep.subr.bf16.mxu1 %v6148_v6  ;;  %v4698_v6 = vld [vmem:[%s7356_s1 + $0x388] ss:$16 sps:$4 sm:$0xff]  }
  0xf5   : > { %2564 = vmatmul.mubr.bf16.gmra.mxu0 %v5362_v4 }
  0xf6   : > { %2677 = vmatmul.mubr.bf16.gmra.mxu1 %v5364_v5  ;;  %2728 = vmatpush2.bf16.msra.mxu0 %v4689_v57  ;;  %v4704_v57 = vld [vmem:[%s7356_s1 + $0x368] ss:$16 sps:$4 sm:$0xff]  }
  0xf7   : > { %2841 = vmatpush2.bf16.msra.mxu1 %v4692_v56  ;;  %2729 = vmatprep.subr.bf16.mxu0 %v4697_v0  ;;  %v4701_v56 = vld [vmem:[%s7356_s1 + $0x168] ss:$16 sps:$4 sm:$0xff]   ;;  %v4712_v0 = vld [vmem:[%s7356_s1 + $0x34c] ss:$16 sps:$4 sm:$0xff]  }
  0xf8   : > { %2842 = vmatprep.subr.bf16.mxu1 %v4700_v63  ;;  %2573 = vmatprep.mubr.bf16.mxu0 %v5380_v12  ;;  %v4709_v63 = vld [vmem:[%s7356_s1 + $0x14c] ss:$16 sps:$4 sm:$0xff]  }
  0xf9   : > { %2686 = vmatprep.mubr.bf16.mxu1 %v5382_v13 }
  0xfa   : > { %2730 = vmatpush2.bf16.msra.mxu0 %v4695_v7  ;;  %v4718_v7 = vld [vmem:[%s7356_s1 + $0x32c] ss:$16 sps:$4 sm:$0xff]  }
  0xfb   : > { %2843 = vmatpush2.bf16.msra.mxu1 %v4698_v6  ;;  %2731 = vmatprep.subr.bf16.mxu0 %v4703_v3  ;;  %v4707_v6 = vld [vmem:[%s7356_s1 + $0x148] ss:$16 sps:$4 sm:$0xff]   ;;  %v4715_v3 = vld [vmem:[%s7356_s1 + $0x12c] ss:$16 sps:$4 sm:$0xff]  }
  0xfc   : > { %2844 = vmatprep.subr.bf16.mxu1 %v4706_v62  ;;  %v4710_v62 = vld [vmem:[%s7356_s1 + $0x348] ss:$16 sps:$4 sm:$0xff]  }
  0xfd   : > { %2574 = vmatmul.mubr.bf16.gmra.mxu0 %v5406_v32 }
  0xfe   : > { %2687 = vmatmul.mubr.bf16.gmra.mxu1 %v5408_v33  ;;  %2732 = vmatpush2.bf16.msra.mxu0 %v4701_v56  ;;  %v4713_v56 = vld [vmem:[%s7356_s1 + $0x128] ss:$16 sps:$4 sm:$0xff]  }
  0xff   : > { %2845 = vmatpush2.bf16.msra.mxu1 %v4704_v57  ;;  %2733 = vmatprep.subr.bf16.mxu0 %v4709_v63  ;;  %v4716_v57 = vld [vmem:[%s7356_s1 + $0x328] ss:$16 sps:$4 sm:$0xff]   ;;  %v4721_v63 = vld [vmem:[%s7356_s1 + $0x10c] ss:$16 sps:$4 sm:$0xff]  }
 0x100   : > { %2846 = vmatprep.subr.bf16.mxu1 %v4712_v0  ;;  %2583 = vmatprep.mubr.bf16.mxu0 %v5424_v46  ;;  %v4724_v0 = vld [vmem:[%s7356_s1 + $0x30c] ss:$16 sps:$4 sm:$0xff]  }
 0x101   : > { %2696 = vmatprep.mubr.bf16.mxu1 %v5426_v47 }
 0x102   : > { %2734 = vmatpush2.bf16.msra.mxu0 %v4707_v6  ;;  %v4719_v6 = vld [vmem:[%s7356_s1 + $0x108] ss:$16 sps:$4 sm:$0xff]  }
 0x103   : > { %2847 = vmatpush2.bf16.msra.mxu1 %v4710_v62  ;;  %2735 = vmatprep.subr.bf16.mxu0 %v4715_v3  ;;  %v4722_v62 = vld [vmem:[%s7356_s1 + $0x308] ss:$16 sps:$4 sm:$0xff]  }
 0x104   : > { %2848 = vmatprep.subr.bf16.mxu1 %v4718_v7 }
 0x105   : > { %2584 = vmatmul.mubr.bf16.gmra.mxu0 %v5442_v60 }
 0x106   : > { %2697 = vmatmul.mubr.bf16.gmra.mxu1 %v5444_v61  ;;  %2736 = vmatpush2.bf16.msra.mxu0 %v4713_v56 }
 0x107   : > { %2849 = vmatpush2.bf16.msra.mxu1 %v4716_v57  ;;  %2737 = vmatprep.subr.bf16.mxu0 %v4721_v63 }
 0x108   : > { %2850 = vmatprep.subr.bf16.mxu1 %v4724_v0  ;;  %2739 = vmatprep.mubr.bf16.mxu0 %v5073_v53 }
 0x109   : > { %2852 = vmatprep.mubr.bf16.mxu1 %v5075_v54 }
 0x10a   : > { %2738 = vmatpush2.bf16.msra.mxu0 %v4719_v6 }
 0x10b   : > { %2851 = vmatpush2.bf16.msra.mxu1 %v4722_v62  ;;  %2933 = vmatprep.subr.bf16.mxu0 %v5469_v8 }
 0x10c   : > { %3046 = vmatprep.subr.bf16.mxu1 %v5474_v9 }
 0x10d   : > { %v1423_v3 = vpop.f32.mrf.mxu0  ;;  %2740 = vmatmul.mubr.bf16.vlgmr.msra.gmra.mxu0 %v5142_v16 }
 0x10e   : > { %v1536_v7 = vpop.f32.mrf.mxu1  ;;  %2853 = vmatmul.mubr.bf16.vlgmr.msra.gmra.mxu1 %v5144_v17  ;;  %2934 = vmatpush1.bf16.msra.mxu0 %v5481_v10 }
 0x10f   : > { %v6238_v56 = vadd.f32 %v1536_v7, %v1423_v3  ;;  %3047 = vmatpush1.bf16.msra.mxu1 %v5486_v11  ;;  %v1425_v57 = vpop.f32.mrf.mxu0  ;;  %2935 = vmatprep.subr.bf16.mxu0 %v5491_v18 }
 0x110   : > { %v1538_v63 = vpop.f32.mrf.mxu1  ;;  %3048 = vmatprep.subr.bf16.mxu1 %v5498_v19  ;;  %2749 = vmatprep.mubr.bf16.mxu0 %v5157_v23 }
 0x111   : > { %v6244_v8 = vadd.f32 %v1538_v63, %v1425_v57  ;;  %2862 = vmatprep.mubr.bf16.mxu1 %v5159_v24  ;;  %v1427_v9 = vpop.f32.mrf.mxu0 }
 0x112   : > { %v1540_v0 = vpop.f32.mrf.mxu1  ;;  %2936 = vmatpush1.bf16.msra.mxu0 %v5505_v20 }
 0x113   : > { %v6248_v6 = vadd.f32 %v1540_v0, %v1427_v9  ;;  %3049 = vmatpush1.bf16.msra.mxu1 %v5510_v21  ;;  %v1429_v10 = vpop.f32.mrf.mxu0  ;;  %2937 = vmatprep.subr.bf16.mxu0 %v5517_v22 }
 0x114   : > { %v1542_v11 = vpop.f32.mrf.mxu1  ;;  %3050 = vmatprep.subr.bf16.mxu1 %v5524_v27 }
 0x115   : > { %v6254_v18 = vadd.f32 %v1542_v11, %v1429_v10  ;;  %v1433_v19 = vpop.f32.mrf.mxu0  ;;  %2750 = vmatmul.mubr.bf16.gmra.mxu0 %v5186_v36  ;;  %v7524_v11 = vld [vmem:[#allocation2_spill] sm:$0xff] }
 0x116   : > { %v1546_v62 = vpop.f32.mrf.mxu1  ;;  %2863 = vmatmul.mubr.bf16.gmra.mxu1 %v5188_v37  ;;  %2938 = vmatpush1.bf16.msra.mxu0 %v5531_v28 }
 0x117   : > { %v6258_v3 = vadd.f32 %v1546_v62, %v1433_v19  ;;  %3051 = vmatpush1.bf16.msra.mxu1 %v5536_v29  ;;  %v1435_v20 = vpop.f32.mrf.mxu0  ;;  %2939 = vmatprep.subr.bf16.mxu0 %v5543_v30 }
 0x118   : > { %v1548_v21 = vpop.f32.mrf.mxu1  ;;  %3052 = vmatprep.subr.bf16.mxu1 %v5550_v31  ;;  %2759 = vmatprep.mubr.bf16.mxu0 %v5201_v43 }
 0x119   : > { %v6264_v22 = vadd.f32 %v1548_v21, %v1435_v20  ;;  %2872 = vmatprep.mubr.bf16.mxu1 %v5203_v44  ;;  %v1437_v27 = vpop.f32.mrf.mxu0  ;;  %v7527_v21 = vld [vmem:[#allocation4_spill] sm:$0xff] }
 0x11a   : > { %v1550_v7 = vpop.f32.mrf.mxu1  ;;  %2940 = vmatpush1.bf16.msra.mxu0 %v5557_v34 }
 0x11b   : > { %v6268_v57 = vadd.f32 %v1550_v7, %v1437_v27  ;;  %3053 = vmatpush1.bf16.msra.mxu1 %v5562_v35  ;;  %v1439_v28 = vpop.f32.mrf.mxu0  ;;  %2941 = vmatprep.subr.bf16.mxu0 %v5569_v38  ;;  %v7529_v7 = vld [vmem:[#allocation6_spill] sm:$0xff] }
 0x11c   : > { %v1552_v29 = vpop.f32.mrf.mxu1  ;;  %3054 = vmatprep.subr.bf16.mxu1 %v5576_v39 }
 0x11d   : > { %v6274_v30 = vadd.f32 %v1552_v29, %v1439_v28  ;;  %v1443_v31 = vpop.f32.mrf.mxu0  ;;  %2760 = vmatmul.mubr.bf16.gmra.mxu0 %v5230_v58  ;;  %v7530_v28 = vld [vmem:[#allocation7_spill] sm:$0xff] }
 0x11e   : > { %v1556_v63 = vpop.f32.mrf.mxu1  ;;  %2873 = vmatmul.mubr.bf16.gmra.mxu1 %v5232_v59  ;;  %2942 = vmatpush1.bf16.msra.mxu0 %v5583_v42 }
 0x11f   : > { %v6278_v9 = vadd.f32 %v1556_v63, %v1443_v31  ;;  %3055 = vmatpush1.bf16.msra.mxu1 %v5588_v45  ;;  %v1445_v34 = vpop.f32.mrf.mxu0  ;;  %2943 = vmatprep.subr.bf16.mxu0 %v5595_v48  ;;  %v7525_v48 = vld [vmem:[#allocation3_spill] sm:$0xff] }
 0x120   : > { %v1558_v35 = vpop.f32.mrf.mxu1  ;;  %3056 = vmatprep.subr.bf16.mxu1 %v5602_v51  ;;  %2769 = vmatprep.mubr.bf16.mxu0 %v5245_v1 }
 0x121   : > { %v6284_v38 = vadd.f32 %v1558_v35, %v1445_v34  ;;  %2882 = vmatprep.mubr.bf16.mxu1 %v5247_v2  ;;  %v1447_v39 = vpop.f32.mrf.mxu0  ;;  %v7533_v35 = vld [vmem:[#allocation8_spill] sm:$0xff] }
 0x122   : > { %v1560_v0 = vpop.f32.mrf.mxu1  ;;  %2944 = vmatpush1.bf16.msra.mxu0 %v5609_v52  ;;  %v7528_v52 = vld [vmem:[#allocation5_spill] sm:$0xff] }
 0x123   : > { %v6288_v10 = vadd.f32 %v1560_v0, %v1447_v39  ;;  %3057 = vmatpush1.bf16.msra.mxu1 %v5614_v55  ;;  %v1449_v42 = vpop.f32.mrf.mxu0  ;;  %2945 = vmatprep.subr.bf16.mxu0 %v7524_v11  ;;  %v7534_v39 = vld [vmem:[#allocation9_spill] sm:$0xff]  ;;  %v7536_v11 = vld [vmem:[#allocation11_spill] sm:$0xff] }
 0x124   : > { %v1562_v45 = vpop.f32.mrf.mxu1  ;;  %3058 = vmatprep.subr.bf16.mxu1 %v7525_v48 }
 0x125   : > { %v6294_v51 = vadd.f32 %v1562_v45, %v1449_v42  ;;  %v1453_v19 = vpop.f32.mrf.mxu0  ;;  %2770 = vmatmul.mubr.bf16.gmra.mxu0 %v5274_v14  ;;  %v7535_v45 = vld [vmem:[#allocation10_spill] sm:$0xff] }
 0x126   : > { %v1566_v62 = vpop.f32.mrf.mxu1  ;;  %2883 = vmatmul.mubr.bf16.gmra.mxu1 %v5276_v15  ;;  %2946 = vmatpush1.bf16.msra.mxu0 %v7527_v21 }
 0x127   : > { %v6298_v20 = vadd.f32 %v1566_v62, %v1453_v19  ;;  %3059 = vmatpush1.bf16.msra.mxu1 %v7528_v52  ;;  %v1455_v55 = vpop.f32.mrf.mxu0  ;;  %2947 = vmatprep.subr.bf16.mxu0 %v7529_v7  ;;  %v7539_v52 = vld [vmem:[#allocation12_spill] sm:$0xff] }
 0x128   : > { %v1568_v27 = vpop.f32.mrf.mxu1  ;;  %3060 = vmatprep.subr.bf16.mxu1 %v7530_v28  ;;  %2779 = vmatprep.mubr.bf16.mxu0 %v5289_v25  ;;  %v7541_v28 = vld [vmem:[#allocation14_spill] sm:$0xff] }
 0x129   : > { %7526 = vst [vmem:[#allocation2_spill] sm:$0xff] %v6298_v20  ;;  %v6304_v29 = vadd.f32 %v1568_v27, %v1455_v55  ;;  %2892 = vmatprep.mubr.bf16.mxu1 %v5291_v26  ;;  %v1457_v31 = vpop.f32.mrf.mxu0  ;;  %v7540_v55 = vld [vmem:[#allocation13_spill] sm:$0xff]  ;;  %v7590_v20 = vld [vmem:[#allocation47_spill] sm:$0xff] }
 0x12a   : > { %v1570_v63 = vpop.f32.mrf.mxu1  ;;  %2948 = vmatpush1.bf16.msra.mxu0 %v7533_v35 }
 0x12b   : > { %7531 = vst [vmem:[#allocation3_spill] sm:$0xff] %v6304_v29  ;;  %v6308_v34 = vadd.f32 %v1570_v63, %v1457_v31  ;;  %3061 = vmatpush1.bf16.msra.mxu1 %v7534_v39  ;;  %v1459_v0 = vpop.f32.mrf.mxu0  ;;  %2949 = vmatprep.subr.bf16.mxu0 %v7535_v45  ;;  %v7542_v31 = vld [vmem:[#allocation15_spill] sm:$0xff]  ;;  %v7546_v45 = vld [vmem:[#allocation17_spill] sm:$0xff] }
 0x12c   : > { %v1572_v42 = vpop.f32.mrf.mxu1  ;;  %3062 = vmatprep.subr.bf16.mxu1 %v7536_v11  ;;  %v4765_v29 = vld [vmem:[%s5052_s22 + $0x48] sm:$0xff] }
 0x12d   : > { %7532 = vst [vmem:[#allocation4_spill] sm:$0xff] %v6308_v34  ;;  %v6314_v48 = vadd.f32 %v1572_v42, %v1459_v0  ;;  %v1463_v19 = vpop.f32.mrf.mxu0  ;;  %2780 = vmatmul.mubr.bf16.gmra.mxu0 %v5318_v40  ;;  %v7545_v42 = vld [vmem:[#allocation16_spill] sm:$0xff] }
 0x12e   : > { %v1576_v62 = vpop.f32.mrf.mxu1  ;;  %2893 = vmatmul.mubr.bf16.gmra.mxu1 %v5320_v41  ;;  %2950 = vmatpush2.bf16.msra.mxu0 %v7539_v52  ;;  %v7548_v52 = vld [vmem:[#allocation19_spill] sm:$0xff] }
 0x12f   : > { %7537 = vst [vmem:[#allocation5_spill] sm:$0xff] %v6314_v48  ;;  %v6318_v21 = vadd.f32 %v1576_v62, %v1463_v19  ;;  %3063 = vmatpush2.bf16.msra.mxu1 %v7540_v55  ;;  %v1465_v27 = vpop.f32.mrf.mxu0  ;;  %2951 = vmatprep.subr.bf16.mxu0 %v7541_v28  ;;  %v7547_v62 = vld [vmem:[#allocation18_spill] sm:$0xff] }
 0x130   : > { %v1578_v7 = vpop.f32.mrf.mxu1  ;;  %3064 = vmatprep.subr.bf16.mxu1 %v7542_v31  ;;  %2789 = vmatprep.mubr.bf16.mxu0 %v5333_v49  ;;  %v7551_v31 = vld [vmem:[#allocation20_spill] sm:$0xff] }
 0x131   : > { %7538 = vst [vmem:[#allocation6_spill] sm:$0xff] %v6318_v21  ;;  %v6324_v63 = vadd.f32 %v1578_v7, %v1465_v27  ;;  %2902 = vmatprep.mubr.bf16.mxu1 %v5335_v50  ;;  %v1467_v35 = vpop.f32.mrf.mxu0 }
 0x132   : > { %v1580_v39 = vpop.f32.mrf.mxu1  ;;  %2952 = vmatpush2.bf16.msra.mxu0 %v7545_v42 }
 0x133   : > { %7543 = vst [vmem:[#allocation7_spill] sm:$0xff] %v6324_v63  ;;  %v6328_v0 = vadd.f32 %v1580_v39, %v1467_v35  ;;  %3065 = vmatpush2.bf16.msra.mxu1 %v7546_v45  ;;  %v1469_v11 = vpop.f32.mrf.mxu0  ;;  %2953 = vmatprep.subr.bf16.mxu0 %v7547_v62  ;;  %v7552_v35 = vld [vmem:[#allocation21_spill] sm:$0xff]  ;;  %v7553_v45 = vld [vmem:[#allocation22_spill] sm:$0xff]  ;;  %v7554_v62 = vld [vmem:[#allocation23_spill] sm:$0xff] }
 0x134   : > { %v1582_v19 = vpop.f32.mrf.mxu1  ;;  %3066 = vmatprep.subr.bf16.mxu1 %v7548_v52  ;;  %v7559_v63 = vld [vmem:[#allocation26_spill] sm:$0xff] }
 0x135   : > { %7544 = vst [vmem:[#allocation8_spill] sm:$0xff] %v6328_v0  ;;  %v6334_v55 = vadd.f32 %v1582_v19, %v1469_v11  ;;  %v1473_v27 = vpop.f32.mrf.mxu0  ;;  %2790 = vmatmul.mubr.bf16.gmra.mxu0 %v5362_v4  ;;  %v4758_v0 = vld [vmem:[%s5052_s22 + $0x28] sm:$0xff] }
 0x136   : > { %v1586_v7 = vpop.f32.mrf.mxu1  ;;  %2903 = vmatmul.mubr.bf16.gmra.mxu1 %v5364_v5  ;;  %2954 = vmatpush2.bf16.msra.mxu0 %v7551_v31  ;;  %v7558_v31 = vld [vmem:[#allocation25_spill] sm:$0xff] }
 0x137   : > { %7549 = vst [vmem:[#allocation9_spill] sm:$0xff] %v6334_v55  ;;  %v6338_v28 = vadd.f32 %v1586_v7, %v1473_v27  ;;  %3067 = vmatpush2.bf16.msra.mxu1 %v7552_v35  ;;  %v1475_v39 = vpop.f32.mrf.mxu0  ;;  %2955 = vmatprep.subr.bf16.mxu0 %v7553_v45  ;;  %v7557_v7 = vld [vmem:[#allocation24_spill] sm:$0xff]  ;;  %v7560_v45 = vld [vmem:[#allocation27_spill] sm:$0xff] }
 0x138   : > { %v1588_v42 = vpop.f32.mrf.mxu1  ;;  %3068 = vmatprep.subr.bf16.mxu1 %v7554_v62  ;;  %2799 = vmatprep.mubr.bf16.mxu0 %v5380_v12 }
 0x139   : > { %7550 = vst [vmem:[#allocation10_spill] sm:$0xff] %v6338_v28  ;;  %v6344_v11 = vadd.f32 %v1588_v42, %v1475_v39  ;;  %2912 = vmatprep.mubr.bf16.mxu1 %v5382_v13  ;;  %v1477_v19 = vpop.f32.mrf.mxu0  ;;  %v334_v39 = vunpack.c.l.bf16 %v5073_v53  ;;  %v338_v42 = vunpack.c.h.bf16 %v5073_v53  ;;  %v7564_v53 = vld [vmem:[#allocation29_spill] sm:$0xff] }
 0x13a   : > { %v1590_v52 = vpop.f32.mrf.mxu1  ;;  %2956 = vmatpush2.bf16.msra.mxu0 %v7557_v7 }
 0x13b   : > { %7555 = vst [vmem:[#allocation11_spill] sm:$0xff] %v6344_v11  ;;  %v6348_v27 = vadd.f32 %v1590_v52, %v1477_v19  ;;  %3069 = vmatpush2.bf16.msra.mxu1 %v7558_v31  ;;  %v1479_v35 = vpop.f32.mrf.mxu0  ;;  %2957 = vmatprep.subr.bf16.mxu0 %v7559_v63  ;;  %v336_v19 = vunpack.c.l.bf16 %v5075_v54  ;;  %v340_v52 = vunpack.c.h.bf16 %v5075_v54  ;;  %v7565_v11 = vld [vmem:[#allocation30_spill] sm:$0xff]  ;;  %v7566_v54 = vld [vmem:[#allocation31_spill] sm:$0xff]  ;;  %v402_v21 = vsub.f32 %v4758_v0, %v338_v42  ;;  %v7570_v42 = vld [vmem:[#allocation33_spill] sm:$0xff] }
 0x13c   : > { %v1592_v55 = vpop.f32.mrf.mxu1  ;;  %3070 = vmatprep.subr.bf16.mxu1 %v7560_v45  ;;  %v7563_v45 = vld [vmem:[#allocation28_spill] sm:$0xff]  ;;  %v339_v0 = vunpack.c.h.bf16 %v5144_v17 }
 0x13d   : > { %7556 = vst [vmem:[#allocation12_spill] sm:$0xff] %v6348_v27  ;;  %v6356_v62 = vadd.f32 %v1592_v55, %v1479_v35  ;;  %v1483_v7 = vpop.f32.mrf.mxu0  ;;  %2800 = vmatmul.mubr.bf16.gmra.mxu0 %v5406_v32  ;;  %v333_v55 = vunpack.c.l.bf16 %v5142_v16  ;;  %v4757_v27 = vld [vmem:[%s5052_s22 + $0x8] sm:$0xff] }
 0x13e   : > { %v1596_v31 = vpop.f32.mrf.mxu1  ;;  %2913 = vmatmul.mubr.bf16.gmra.mxu1 %v5408_v33  ;;  %2958 = vmatpush2.bf16.msra.mxu0 %v7563_v45  ;;  %v398_v28 = vsub.f32 %v4757_v27, %v334_v39  ;;  %v4759_v45 = vld [vmem:[%s5052_s22 + $0x18] sm:$0xff]  ;;  %v335_v27 = vunpack.c.l.bf16 %v5144_v17 }
 0x13f   : > { %7561 = vst [vmem:[#allocation13_spill] sm:$0xff] %v6356_v62  ;;  %v6362_v63 = vadd.f32 %v1596_v31, %v1483_v7  ;;  %3071 = vmatpush2.bf16.msra.mxu1 %v7564_v53  ;;  %v1485_v35 = vpop.f32.mrf.mxu0  ;;  %2959 = vmatprep.subr.bf16.mxu0 %v7565_v11  ;;  %v337_v7 = vunpack.c.h.bf16 %v5142_v16  ;;  %v400_v53 = vsub.f32 %v4759_v45, %v336_v19  ;;  %v7569_v16 = vld [vmem:[#allocation32_spill] sm:$0xff]  ;;  %v7571_v19 = vld [vmem:[#allocation34_spill] sm:$0xff] }
 0x140   : > { %v1598_v62 = vpop.f32.mrf.mxu1  ;;  %3072 = vmatprep.subr.bf16.mxu1 %v7566_v54  ;;  %2809 = vmatprep.mubr.bf16.mxu0 %v5424_v46  ;;  %v4762_v45 = vld [vmem:[%s5052_s22 + $0x20] sm:$0xff] }
 0x141   : > { %7562 = vst [vmem:[#allocation14_spill] sm:$0xff] %v6362_v63  ;;  %v6372_v31 = vadd.f32 %v1598_v62, %v1485_v35  ;;  %2922 = vmatprep.mubr.bf16.mxu1 %v5426_v47  ;;  %v4760_v63 = vld [vmem:[%s5052_s22 + $0x38] sm:$0xff]  ;;  %v1487_v48 = vpop.f32.mrf.mxu0  ;;  %v4761_v62 = vld [vmem:[%s5052_s22] sm:$0xff]  ;;  %v401_v17 = vsub.f32 %v4762_v45, %v337_v7  ;;  %v4764_v7 = vld [vmem:[%s5052_s22 + $0x30] sm:$0xff] }
 0x142   : > { %v404_v11 = vsub.f32 %v4760_v63, %v340_v52  ;;  %v1600_v54 = vpop.f32.mrf.mxu1  ;;  %2960 = vmatpush2.bf16.msra.mxu0 %v7569_v16  ;;  %v397_v35 = vsub.f32 %v4761_v62, %v333_v55  ;;  %v7572_v52 = vld [vmem:[#allocation35_spill] sm:$0xff]  ;;  %v6387_v63 = vpack.c.bf16 %v402_v21, %v398_v28  ;;  %v344_v55 = vunpack.c.l.bf16 %v5159_v24  ;;  %v4763_v21 = vld [vmem:[%s5052_s22 + $0x10] sm:$0xff]  ;;  %v7577_v45 = vld [vmem:[#allocation38_spill] sm:$0xff] }
 0x143   : > { %7567 = vst [vmem:[#allocation15_spill] sm:$0xff] %v6372_v31  ;;  %v6380_v39 = vadd.f32 %v1600_v54, %v1487_v48  ;;  %3073 = vmatpush2.bf16.msra.mxu1 %v7570_v42  ;;  %v1489_v31 = vpop.f32.mrf.mxu0  ;;  %2961 = vmatprep.subr.bf16.mxu0 %v7571_v19  ;;  %v342_v48 = vunpack.c.l.bf16 %v5157_v23  ;;  %v346_v54 = vunpack.c.h.bf16 %v5157_v23  ;;  %v348_v62 = vunpack.c.h.bf16 %v5159_v24 }
 0x144   : > { %v1602_v34 = vpop.f32.mrf.mxu1  ;;  %3074 = vmatprep.subr.bf16.mxu1 %v7572_v52  ;;  %v6394_v42 = vpack.c.bf16 %v404_v11, %v400_v53  ;;  %v399_v28 = vsub.f32 %v4763_v21, %v335_v27  ;;  %v403_v23 = vsub.f32 %v4764_v7, %v339_v0  ;;  %v7576_v53 = vld [vmem:[#allocation37_spill] sm:$0xff]  ;;  %v4766_v21 = vld [vmem:[%s5052_s22 + $0x68] sm:$0xff] }
 0x145   : > { %7568 = vst [vmem:[#allocation16_spill] sm:$0xff] %v6380_v39  ;;  %v6392_v16 = vadd.f32 %v1602_v34, %v1489_v31  ;;  %v1493_v19 = vpop.f32.mrf.mxu0  ;;  %2810 = vmatmul.mubr.bf16.gmra.mxu0 %v5442_v60  ;;  %v7575_v31 = vld [vmem:[#allocation36_spill] sm:$0xff]  ;;  %v6408_v39 = vpack.c.bf16 %v401_v17, %v397_v35  ;;  %v406_v27 = vsub.f32 %v4765_v29, %v342_v48  ;;  %v4767_v7 = vld [vmem:[%s5052_s22 + $0x58] sm:$0xff]  ;;  %v345_v29 = vunpack.c.h.bf16 %v5186_v36 }
 0x146   : > { %v1606_v52 = vpop.f32.mrf.mxu1  ;;  %2923 = vmatmul.mubr.bf16.gmra.mxu1 %v5444_v61  ;;  %2962 = vmatpush2.bf16.msra.mxu0 %v7575_v31  ;;  %v410_v0 = vsub.f32 %v4766_v21, %v346_v54  ;;  %v408_v31 = vsub.f32 %v4767_v7, %v344_v55  ;;  %v6419_v17 = vpack.c.bf16 %v403_v23, %v399_v28  ;;  %v343_v48 = vunpack.c.l.bf16 %v5188_v37  ;;  %v7582_v21 = vld [vmem:[#allocation41_spill] sm:$0xff] }
 0x147   : > { %7573 = vst [vmem:[#allocation17_spill] sm:$0xff] %v6392_v16  ;;  %v6402_v34 = vadd.f32 %v1606_v52, %v1493_v19  ;;  %3075 = vmatpush2.bf16.msra.mxu1 %v7576_v53  ;;  %v1495_v24 = vpop.f32.mrf.mxu0  ;;  %2963 = vmatprep.subr.bf16.mxu0 %v7577_v45  ;;  %v7578_v16 = vld [vmem:[#allocation39_spill] sm:$0xff]  ;;  %v341_v19 = vunpack.c.l.bf16 %v5186_v36  ;;  %v4768_v53 = vld [vmem:[%s5052_s22 + $0x78] sm:$0xff]  ;;  %v347_v54 = vunpack.c.h.bf16 %v5188_v37  ;;  %v4769_v36 = vld [vmem:[%s5052_s22 + $0x40] sm:$0xff]  ;;  %v350_v37 = vunpack.c.l.bf16 %v5201_v43 }
 0x148   : > { %v1608_v11 = vpop.f32.mrf.mxu1  ;;  %3076 = vmatprep.subr.bf16.mxu1 %v7578_v16  ;;  %2965 = vmatprep.mubr.bf16.mxu0 %v6387_v63  ;;  %v412_v45 = vsub.f32 %v4768_v53, %v348_v62  ;;  %v7584_v62 = vld [vmem:[#allocation43_spill] sm:$0xff]  ;;  %v6430_v28 = vpack.c.bf16 %v410_v0, %v406_v27  ;;  %v354_v53 = vunpack.c.h.bf16 %v5201_v43  ;;  %v4770_v27 = vld [vmem:[%s5052_s22 + $0x60] sm:$0xff] }
 0x149   : > { %7574 = vst [vmem:[#allocation18_spill] sm:$0xff] %v6402_v34  ;;  %v6413_v52 = vadd.f32 %v1608_v11, %v1495_v24  ;;  %3078 = vmatprep.mubr.bf16.mxu1 %v6394_v42  ;;  %v1497_v16 = vpop.f32.mrf.mxu0  ;;  %v7581_v11 = vld [vmem:[#allocation40_spill] sm:$0xff]  ;;  %v405_v23 = vsub.f32 %v4769_v36, %v341_v19  ;;  %v409_v0 = vsub.f32 %v4770_v27, %v345_v29  ;;  %v349_v36 = vunpack.c.l.bf16 %v5230_v58  ;;  %v7589_v34 = vld [vmem:[#allocation46_spill] sm:$0xff]  ;;  %v4773_v29 = vld [vmem:[%s5052_s22 + $0x88] sm:$0xff] }
 0x14a   : > { %v1610_v35 = vpop.f32.mrf.mxu1  ;;  %2964 = vmatpush2.bf16.msra.mxu0 %v7581_v11  ;;  %v352_v11 = vunpack.c.l.bf16 %v5203_v44  ;;  %v4771_v19 = vld [vmem:[%s5052_s22 + $0x50] sm:$0xff]  ;;  %v4774_v27 = vld [vmem:[%s5052_s22 + $0xa8] sm:$0xff] }
 0x14b   : > { %7579 = vst [vmem:[#allocation19_spill] sm:$0xff] %v6413_v52  ;;  %v6424_v24 = vadd.f32 %v1610_v35, %v1497_v16  ;;  %3077 = vmatpush2.bf16.msra.mxu1 %v7582_v21  ;;  %v1499_v55 = vpop.f32.mrf.mxu0  ;;  %v7583_v52 = vld [vmem:[#allocation42_spill] sm:$0xff]  ;;  %v6437_v35 = vpack.c.bf16 %v412_v45, %v408_v31  ;;  %v407_v43 = vsub.f32 %v4771_v19, %v343_v48  ;;  %v7587_v45 = vld [vmem:[#allocation44_spill] sm:$0xff]  ;;  %v4775_v19 = vld [vmem:[%s5052_s22 + $0x98] sm:$0xff] }
 0x14c   : > { %v1612_v7 = vpop.f32.mrf.mxu1  ;;  %3159 = vmatprep.subr.bf16.mxu0 %v7583_v52  ;;  %3272 = vmatprep.subr.bf16.mxu1 %v7584_v62  ;;  %v356_v52 = vunpack.c.h.bf16 %v5203_v44  ;;  %v7588_v44 = vld [vmem:[#allocation45_spill] sm:$0xff]  ;;  %v414_v48 = vsub.f32 %v4773_v29, %v350_v37 }
 0x14d   : > { %7580 = vst [vmem:[#allocation20_spill] sm:$0xff] %v6424_v24  ;;  %v6435_v16 = vadd.f32 %v1612_v7, %v1499_v55  ;;  %v1649_v21 = vpop.f32.mrf.mxu0  ;;  %2966 = vmatmul.mubr.bf16.vlgmr.msra.gmra.mxu0 %v6408_v39  ;;  %v4772_v55 = vld [vmem:[%s5052_s22 + $0x70] sm:$0xff]  ;;  %v7594_v29 = vld [vmem:[#allocation49_spill] sm:$0xff] }
 0x14e   : > { %v1762_v62 = vpop.f32.mrf.mxu1  ;;  %3079 = vmatmul.mubr.bf16.vlgmr.msra.gmra.mxu1 %v6419_v17  ;;  %v411_v7 = vsub.f32 %v4772_v55, %v347_v54  ;;  %3160 = vmatpush1.bf16.msra.mxu0 %v7587_v45  ;;  %v418_v54 = vsub.f32 %v4774_v27, %v354_v53  ;;  %v416_v55 = vsub.f32 %v4775_v19, %v352_v11  ;;  %v4776_v45 = vld [vmem:[%s5052_s22 + $0xb8] sm:$0xff]  ;;  %v4777_v11 = vld [vmem:[%s5052_s22 + $0x80] sm:$0xff] }
 0x14f   : > { %7585 = vst [vmem:[#allocation21_spill] sm:$0xff] %v6435_v16  ;;  %v6446_v31 = vadd.f32 %v1762_v62, %v1649_v21  ;;  %3273 = vmatpush1.bf16.msra.mxu1 %v7588_v44  ;;  %v1651_v16 = vpop.f32.mrf.mxu0  ;;  %3161 = vmatprep.subr.bf16.mxu0 %v7589_v34  ;;  %v353_v21 = vunpack.c.h.bf16 %v5230_v58  ;;  %v420_v44 = vsub.f32 %v4776_v45, %v356_v52  ;;  %v351_v58 = vunpack.c.l.bf16 %v5232_v59  ;;  %v7595_v45 = vld [vmem:[#allocation50_spill] sm:$0xff] }
 0x150   : > { %v1764_v24 = vpop.f32.mrf.mxu1  ;;  %3274 = vmatprep.subr.bf16.mxu1 %v7590_v20  ;;  %2975 = vmatprep.mubr.bf16.mxu0 %v6430_v28  ;;  %v6464_v37 = vpack.c.bf16 %v411_v7, %v407_v43  ;;  %v413_v27 = vsub.f32 %v4777_v11, %v349_v36  ;;  %v4778_v43 = vld [vmem:[%s5052_s22 + $0xa0] sm:$0xff]  ;;  %v358_v7 = vunpack.c.l.bf16 %v5245_v1  ;;  %v360_v36 = vunpack.c.l.bf16 %v5247_v2 }
 0x151   : > { %7586 = vst [vmem:[#allocation22_spill] sm:$0xff] %v6446_v31  ;;  %v6456_v62 = vadd.f32 %v1764_v24, %v1651_v16  ;;  %3088 = vmatprep.mubr.bf16.mxu1 %v6437_v35  ;;  %v1653_v34 = vpop.f32.mrf.mxu0  ;;  %v6462_v31 = vpack.c.bf16 %v409_v0, %v405_v23  ;;  %v355_v24 = vunpack.c.h.bf16 %v5232_v59  ;;  %v7593_v16 = vld [vmem:[#allocation48_spill] sm:$0xff]  ;;  %v7596_v23 = vld [vmem:[#allocation51_spill] sm:$0xff]  ;;  %v6475_v0 = vpack.c.bf16 %v418_v54, %v414_v48 }
 0x152   : > { %v1766_v20 = vpop.f32.mrf.mxu1  ;;  %3162 = vmatpush1.bf16.msra.mxu0 %v7593_v16  ;;  %v417_v59 = vsub.f32 %v4778_v43, %v353_v21  ;;  %v6482_v16 = vpack.c.bf16 %v420_v44, %v416_v55  ;;  %v4779_v48 = vld [vmem:[%s5052_s22 + $0x90] sm:$0xff]  ;;  %v7600_v44 = vld [vmem:[#allocation53_spill] sm:$0xff]  ;;  %v7602_v43 = vld [vmem:[#allocation55_spill] sm:$0xff] }
 0x153   : > { %7591 = vst [vmem:[#allocation23_spill] sm:$0xff] %v6456_v62  ;;  %v6468_v53 = vadd.f32 %v1766_v20, %v1653_v34  ;;  %3275 = vmatpush1.bf16.msra.mxu1 %v7594_v29  ;;  %v1655_v52 = vpop.f32.mrf.mxu0  ;;  %3163 = vmatprep.subr.bf16.mxu0 %v7595_v45  ;;  %v362_v34 = vunpack.c.h.bf16 %v5245_v1  ;;  %v364_v29 = vunpack.c.h.bf16 %v5247_v2  ;;  %v415_v54 = vsub.f32 %v4779_v48, %v351_v58  ;;  %v4780_v21 = vld [vmem:[%s5052_s22 + $0xb0] sm:$0xff]  ;;  %v4782_v48 = vld [vmem:[%s5052_s22 + $0xe8] sm:$0xff] }
 0x154   : > { %v1768_v19 = vpop.f32.mrf.mxu1  ;;  %3276 = vmatprep.subr.bf16.mxu1 %v7596_v23  ;;  %v419_v1 = vsub.f32 %v4780_v21, %v355_v24  ;;  %v7599_v55 = vld [vmem:[#allocation52_spill] sm:$0xff]  ;;  %v7601_v23 = vld [vmem:[#allocation54_spill] sm:$0xff]  ;;  %v4783_v21 = vld [vmem:[%s5052_s22 + $0xd8] sm:$0xff] }
 0x155   : > { %7592 = vst [vmem:[#allocation24_spill] sm:$0xff] %v6468_v53  ;;  %v6480_v20 = vadd.f32 %v1768_v19, %v1655_v52  ;;  %v1659_v11 = vpop.f32.mrf.mxu0  ;;  %2976 = vmatmul.mubr.bf16.gmra.mxu0 %v6462_v31  ;;  %v4781_v53 = vld [vmem:[%s5052_s22 + $0xc8] sm:$0xff]  ;;  %v426_v24 = vsub.f32 %v4782_v48, %v362_v34  ;;  %v363_v34 = vunpack.c.h.bf16 %v5276_v15  ;;  %v7606_v48 = vld [vmem:[#allocation57_spill] sm:$0xff] }
 0x156   : > { %v1772_v45 = vpop.f32.mrf.mxu1  ;;  %3089 = vmatmul.mubr.bf16.gmra.mxu1 %v6464_v37  ;;  %3164 = vmatpush1.bf16.msra.mxu0 %v7599_v55  ;;  %v422_v58 = vsub.f32 %v4781_v53, %v358_v7  ;;  %v424_v55 = vsub.f32 %v4783_v21, %v360_v36  ;;  %v361_v53 = vunpack.c.h.bf16 %v5274_v14  ;;  %v359_v7 = vunpack.c.l.bf16 %v5276_v15  ;;  %v7614_v62 = vld [vmem:[#allocation63_spill] sm:$0xff] }
 0x157   : > { %7597 = vst [vmem:[#allocation25_spill] sm:$0xff] %v6480_v20  ;;  %v6490_v52 = vadd.f32 %v1772_v45, %v1659_v11  ;;  %3277 = vmatpush1.bf16.msra.mxu1 %v7600_v44  ;;  %v1661_v2 = vpop.f32.mrf.mxu0  ;;  %3165 = vmatprep.subr.bf16.mxu0 %v7601_v23  ;;  %v6496_v20 = vpack.c.bf16 %v417_v59, %v413_v27  ;;  %v357_v11 = vunpack.c.l.bf16 %v5274_v14  ;;  %v4784_v44 = vld [vmem:[%s5052_s22 + $0xf8] sm:$0xff]  ;;  %v4785_v14 = vld [vmem:[%s5052_s22 + $0xc0] sm:$0xff]  ;;  %v366_v15 = vunpack.c.l.bf16 %v5289_v25 }
 0x158   : > { %v1774_v19 = vpop.f32.mrf.mxu1  ;;  %3278 = vmatprep.subr.bf16.mxu1 %v7602_v43  ;;  %2985 = vmatprep.mubr.bf16.mxu0 %v6475_v0  ;;  %v428_v23 = vsub.f32 %v4784_v44, %v364_v29  ;;  %v6507_v59 = vpack.c.bf16 %v419_v1, %v415_v54  ;;  %v7608_v29 = vld [vmem:[#allocation59_spill] sm:$0xff]  ;;  %v6518_v54 = vpack.c.bf16 %v426_v24, %v422_v58  ;;  %v370_v44 = vunpack.c.h.bf16 %v5289_v25  ;;  %v4786_v58 = vld [vmem:[%s5052_s22 + $0xe0] sm:$0xff] }
 0x159   : > { %7598 = vst [vmem:[#allocation26_spill] sm:$0xff] %v6490_v52  ;;  %v6501_v45 = vadd.f32 %v1774_v19, %v1661_v2  ;;  %3098 = vmatprep.mubr.bf16.mxu1 %v6482_v16  ;;  %v1663_v43 = vpop.f32.mrf.mxu0  ;;  %v7605_v19 = vld [vmem:[#allocation56_spill] sm:$0xff]  ;;  %v421_v1 = vsub.f32 %v4785_v14, %v357_v11  ;;  %v425_v24 = vsub.f32 %v4786_v58, %v361_v53  ;;  %v365_v14 = vunpack.c.l.bf16 %v5318_v40  ;;  %v7613_v52 = vld [vmem:[#allocation62_spill] sm:$0xff]  ;;  %v4789_v53 = vld [vmem:[%s5052_s22 + $0x108] sm:$0xff] }
 0x15a   : > { %v1776_v27 = vpop.f32.mrf.mxu1  ;;  %3166 = vmatpush1.bf16.msra.mxu0 %v7605_v19  ;;  %v368_v19 = vunpack.c.l.bf16 %v5291_v26  ;;  %v4787_v11 = vld [vmem:[%s5052_s22 + $0xd0] sm:$0xff]  ;;  %v4790_v58 = vld [vmem:[%s5052_s22 + $0x128] sm:$0xff] }
 0x15b   : > { %7603 = vst [vmem:[#allocation27_spill] sm:$0xff] %v6501_v45  ;;  %v6512_v2 = vadd.f32 %v1776_v27, %v1663_v43  ;;  %3279 = vmatpush1.bf16.msra.mxu1 %v7606_v48  ;;  %v1665_v36 = vpop.f32.mrf.mxu0  ;;  %v7607_v45 = vld [vmem:[#allocation58_spill] sm:$0xff]  ;;  %v6525_v27 = vpack.c.bf16 %v428_v23, %v424_v55  ;;  %v423_v25 = vsub.f32 %v4787_v11, %v359_v7  ;;  %v7611_v23 = vld [vmem:[#allocation60_spill] sm:$0xff]  ;;  %v4791_v11 = vld [vmem:[%s5052_s22 + $0x118] sm:$0xff] }
 0x15c   : > { %v1778_v21 = vpop.f32.mrf.mxu1  ;;  %3167 = vmatprep.subr.bf16.mxu0 %v7607_v45  ;;  %3280 = vmatprep.subr.bf16.mxu1 %v7608_v29  ;;  %v372_v45 = vunpack.c.h.bf16 %v5291_v26  ;;  %v7612_v26 = vld [vmem:[#allocation61_spill] sm:$0xff]  ;;  %v430_v7 = vsub.f32 %v4789_v53, %v366_v15 }
 0x15d   : > { %7604 = vst [vmem:[#allocation28_spill] sm:$0xff] %v6512_v2  ;;  %v6523_v43 = vadd.f32 %v1778_v21, %v1665_v36  ;;  %v1669_v48 = vpop.f32.mrf.mxu0  ;;  %2986 = vmatmul.mubr.bf16.gmra.mxu0 %v6496_v20  ;;  %v4788_v36 = vld [vmem:[%s5052_s22 + $0xf0] sm:$0xff]  ;;  %v7618_v53 = vld [vmem:[#allocation65_spill] sm:$0xff] }
 0x15e   : > { %v1782_v29 = vpop.f32.mrf.mxu1  ;;  %3099 = vmatmul.mubr.bf16.gmra.mxu1 %v6507_v59  ;;  %v427_v21 = vsub.f32 %v4788_v36, %v363_v34  ;;  %3168 = vmatpush1.bf16.msra.mxu0 %v7611_v23  ;;  %v434_v34 = vsub.f32 %v4790_v58, %v370_v44  ;;  %v432_v36 = vsub.f32 %v4791_v11, %v368_v19  ;;  %v4792_v23 = vld [vmem:[%s5052_s22 + $0x138] sm:$0xff]  ;;  %v4793_v19 = vld [vmem:[%s5052_s22 + $0x100] sm:$0xff] }
 0x15f   : > { %7609 = vst [vmem:[#allocation29_spill] sm:$0xff] %v6523_v43  ;;  %v6534_v55 = vadd.f32 %v1782_v29, %v1669_v48  ;;  %3281 = vmatpush1.bf16.msra.mxu1 %v7612_v26  ;;  %v1671_v43 = vpop.f32.mrf.mxu0  ;;  %3169 = vmatprep.subr.bf16.mxu0 %v7613_v52  ;;  %v369_v48 = vunpack.c.h.bf16 %v5318_v40  ;;  %v436_v26 = vsub.f32 %v4792_v23, %v372_v45  ;;  %v367_v40 = vunpack.c.l.bf16 %v5320_v41  ;;  %v7619_v23 = vld [vmem:[#allocation66_spill] sm:$0xff] }
 0x160   : > { %v1784_v2 = vpop.f32.mrf.mxu1  ;;  %3282 = vmatprep.subr.bf16.mxu1 %v7614_v62  ;;  %2995 = vmatprep.mubr.bf16.mxu0 %v6518_v54  ;;  %v6552_v15 = vpack.c.bf16 %v427_v21, %v423_v25  ;;  %v429_v58 = vsub.f32 %v4793_v19, %v365_v14  ;;  %v4794_v25 = vld [vmem:[%s5052_s22 + $0x120] sm:$0xff]  ;;  %v374_v21 = vunpack.c.l.bf16 %v5333_v49  ;;  %v376_v14 = vunpack.c.l.bf16 %v5335_v50 }
 0x161   : > { %7610 = vst [vmem:[#allocation30_spill] sm:$0xff] %v6534_v55  ;;  %v6544_v29 = vadd.f32 %v1784_v2, %v1671_v43  ;;  %3108 = vmatprep.mubr.bf16.mxu1 %v6525_v27  ;;  %v1673_v52 = vpop.f32.mrf.mxu0  ;;  %v6550_v55 = vpack.c.bf16 %v425_v24, %v421_v1  ;;  %v371_v2 = vunpack.c.h.bf16 %v5320_v41  ;;  %v7617_v43 = vld [vmem:[#allocation64_spill] sm:$0xff]  ;;  %v7620_v1 = vld [vmem:[#allocation67_spill] sm:$0xff]  ;;  %v6563_v24 = vpack.c.bf16 %v434_v34, %v430_v7 }
 0x162   : > { %v1786_v62 = vpop.f32.mrf.mxu1  ;;  %3170 = vmatpush1.bf16.msra.mxu0 %v7617_v43  ;;  %v433_v41 = vsub.f32 %v4794_v25, %v369_v48  ;;  %v6570_v43 = vpack.c.bf16 %v436_v26, %v432_v36  ;;  %v4795_v7 = vld [vmem:[%s5052_s22 + $0x110] sm:$0xff]  ;;  %v7624_v26 = vld [vmem:[#allocation69_spill] sm:$0xff]  ;;  %v7626_v25 = vld [vmem:[#allocation71_spill] sm:$0xff] }
 0x163   : > { %7615 = vst [vmem:[#allocation31_spill] sm:$0xff] %v6544_v29  ;;  %v6556_v44 = vadd.f32 %v1786_v62, %v1673_v52  ;;  %3283 = vmatpush1.bf16.msra.mxu1 %v7618_v53  ;;  %v1675_v45 = vpop.f32.mrf.mxu0  ;;  %3171 = vmatprep.subr.bf16.mxu0 %v7619_v23  ;;  %v378_v52 = vunpack.c.h.bf16 %v5333_v49  ;;  %v380_v53 = vunpack.c.h.bf16 %v5335_v50  ;;  %v431_v34 = vsub.f32 %v4795_v7, %v367_v40  ;;  %v4796_v48 = vld [vmem:[%s5052_s22 + $0x130] sm:$0xff]  ;;  %v4798_v7 = vld [vmem:[%s5052_s22 + $0x168] sm:$0xff] }
 0x164   : > { %v1788_v11 = vpop.f32.mrf.mxu1  ;;  %3284 = vmatprep.subr.bf16.mxu1 %v7620_v1  ;;  %v435_v49 = vsub.f32 %v4796_v48, %v371_v2  ;;  %v7623_v36 = vld [vmem:[#allocation68_spill] sm:$0xff]  ;;  %v7625_v1 = vld [vmem:[#allocation70_spill] sm:$0xff]  ;;  %v4799_v48 = vld [vmem:[%s5052_s22 + $0x158] sm:$0xff] }
 0x165   : > { %7616 = vst [vmem:[#allocation32_spill] sm:$0xff] %v6556_v44  ;;  %v6568_v62 = vadd.f32 %v1788_v11, %v1675_v45  ;;  %v1679_v19 = vpop.f32.mrf.mxu0  ;;  %2996 = vmatmul.mubr.bf16.gmra.mxu0 %v6550_v55  ;;  %v4797_v44 = vld [vmem:[%s5052_s22 + $0x148] sm:$0xff]  ;;  %v442_v2 = vsub.f32 %v4798_v7, %v378_v52  ;;  %v379_v52 = vunpack.c.h.bf16 %v5364_v5  ;;  %v7630_v7 = vld [vmem:[#allocation73_spill] sm:$0xff] }
 0x166   : > { %v1792_v23 = vpop.f32.mrf.mxu1  ;;  %3109 = vmatmul.mubr.bf16.gmra.mxu1 %v6552_v15  ;;  %3172 = vmatpush1.bf16.msra.mxu0 %v7623_v36  ;;  %v438_v40 = vsub.f32 %v4797_v44, %v374_v21  ;;  %v440_v36 = vsub.f32 %v4799_v48, %v376_v14  ;;  %v377_v44 = vunpack.c.h.bf16 %v5362_v4  ;;  %v375_v21 = vunpack.c.l.bf16 %v5364_v5  ;;  %v7638_v29 = vld [vmem:[#allocation79_spill] sm:$0xff] }
 0x167   : > { %7621 = vst [vmem:[#allocation33_spill] sm:$0xff] %v6568_v62  ;;  %v6578_v45 = vadd.f32 %v1792_v23, %v1679_v19  ;;  %3285 = vmatpush1.bf16.msra.mxu1 %v7624_v26  ;;  %v1681_v50 = vpop.f32.mrf.mxu0  ;;  %3173 = vmatprep.subr.bf16.mxu0 %v7625_v1  ;;  %v6584_v62 = vpack.c.bf16 %v433_v41, %v429_v58  ;;  %v373_v19 = vunpack.c.l.bf16 %v5362_v4  ;;  %v4800_v26 = vld [vmem:[%s5052_s22 + $0x178] sm:$0xff]  ;;  %v4801_v4 = vld [vmem:[%s5052_s22 + $0x140] sm:$0xff]  ;;  %v382_v5 = vunpack.c.l.bf16 %v5380_v12 }
 0x168   : > { %v1794_v11 = vpop.f32.mrf.mxu1  ;;  %3286 = vmatprep.subr.bf16.mxu1 %v7626_v25  ;;  %3005 = vmatprep.mubr.bf16.mxu0 %v6563_v24  ;;  %v444_v1 = vsub.f32 %v4800_v26, %v380_v53  ;;  %v6595_v41 = vpack.c.bf16 %v435_v49, %v431_v34  ;;  %v7632_v53 = vld [vmem:[#allocation75_spill] sm:$0xff]  ;;  %v6606_v34 = vpack.c.bf16 %v442_v2, %v438_v40  ;;  %v386_v26 = vunpack.c.h.bf16 %v5380_v12  ;;  %v4802_v40 = vld [vmem:[%s5052_s22 + $0x160] sm:$0xff] }
 0x169   : > { %7622 = vst [vmem:[#allocation34_spill] sm:$0xff] %v6578_v45  ;;  %v6589_v23 = vadd.f32 %v1794_v11, %v1681_v50  ;;  %3118 = vmatprep.mubr.bf16.mxu1 %v6570_v43  ;;  %v1683_v25 = vpop.f32.mrf.mxu0  ;;  %v7629_v11 = vld [vmem:[#allocation72_spill] sm:$0xff]  ;;  %v437_v49 = vsub.f32 %v4801_v4, %v373_v19  ;;  %v441_v2 = vsub.f32 %v4802_v40, %v377_v44  ;;  %v381_v4 = vunpack.c.l.bf16 %v5406_v32  ;;  %v7637_v45 = vld [vmem:[#allocation78_spill] sm:$0xff]  ;;  %v4805_v44 = vld [vmem:[%s5052_s22 + $0x188] sm:$0xff] }
 0x16a   : > { %v1796_v58 = vpop.f32.mrf.mxu1  ;;  %3174 = vmatpush1.bf16.msra.mxu0 %v7629_v11  ;;  %v384_v11 = vunpack.c.l.bf16 %v5382_v13  ;;  %v4803_v19 = vld [vmem:[%s5052_s22 + $0x150] sm:$0xff]  ;;  %v4806_v40 = vld [vmem:[%s5052_s22 + $0x1a8] sm:$0xff] }
 0x16b   : > { %7627 = vst [vmem:[#allocation35_spill] sm:$0xff] %v6589_v23  ;;  %v6600_v50 = vadd.f32 %v1796_v58, %v1683_v25  ;;  %3287 = vmatpush1.bf16.msra.mxu1 %v7630_v7  ;;  %v1685_v14 = vpop.f32.mrf.mxu0  ;;  %v7631_v23 = vld [vmem:[#allocation74_spill] sm:$0xff]  ;;  %v6613_v58 = vpack.c.bf16 %v444_v1, %v440_v36  ;;  %v439_v12 = vsub.f32 %v4803_v19, %v375_v21  ;;  %v7635_v1 = vld [vmem:[#allocation76_spill] sm:$0xff]  ;;  %v4807_v19 = vld [vmem:[%s5052_s22 + $0x198] sm:$0xff] }
 0x16c   : > { %v1798_v48 = vpop.f32.mrf.mxu1  ;;  %3175 = vmatprep.subr.bf16.mxu0 %v7631_v23  ;;  %3288 = vmatprep.subr.bf16.mxu1 %v7632_v53  ;;  %v388_v23 = vunpack.c.h.bf16 %v5382_v13  ;;  %v7636_v13 = vld [vmem:[#allocation77_spill] sm:$0xff]  ;;  %v446_v21 = vsub.f32 %v4805_v44, %v382_v5 }
 0x16d   : > { %7628 = vst [vmem:[#allocation36_spill] sm:$0xff] %v6600_v50  ;;  %v6611_v25 = vadd.f32 %v1798_v48, %v1685_v14  ;;  %v1689_v7 = vpop.f32.mrf.mxu0  ;;  %3006 = vmatmul.mubr.bf16.gmra.mxu0 %v6584_v62  ;;  %v4804_v14 = vld [vmem:[%s5052_s22 + $0x170] sm:$0xff]  ;;  %v7641_v44 = vld [vmem:[#allocation81_spill] sm:$0xff] }
 0x16e   : > { %v1802_v53 = vpop.f32.mrf.mxu1  ;;  %3119 = vmatmul.mubr.bf16.gmra.mxu1 %v6595_v41  ;;  %v443_v48 = vsub.f32 %v4804_v14, %v379_v52  ;;  %3176 = vmatpush2.bf16.msra.mxu0 %v7635_v1  ;;  %v450_v52 = vsub.f32 %v4806_v40, %v386_v26  ;;  %v448_v14 = vsub.f32 %v4807_v19, %v384_v11  ;;  %v4808_v1 = vld [vmem:[%s5052_s22 + $0x1b8] sm:$0xff]  ;;  %v4809_v11 = vld [vmem:[%s5052_s22 + $0x180] sm:$0xff] }
 0x16f   : > { %7633 = vst [vmem:[#allocation37_spill] sm:$0xff] %v6611_v25  ;;  %v6622_v36 = vadd.f32 %v1802_v53, %v1689_v7  ;;  %3289 = vmatpush2.bf16.msra.mxu1 %v7636_v13  ;;  %v1691_v25 = vpop.f32.mrf.mxu0  ;;  %3177 = vmatprep.subr.bf16.mxu0 %v7637_v45  ;;  %v385_v7 = vunpack.c.h.bf16 %v5406_v32  ;;  %v452_v13 = vsub.f32 %v4808_v1, %v388_v23  ;;  %v383_v32 = vunpack.c.l.bf16 %v5408_v33  ;;  %v7642_v1 = vld [vmem:[#allocation82_spill] sm:$0xff] }
 0x170   : > { %v1804_v50 = vpop.f32.mrf.mxu1  ;;  %3290 = vmatprep.subr.bf16.mxu1 %v7638_v29  ;;  %3015 = vmatprep.mubr.bf16.mxu0 %v6606_v34  ;;  %v6640_v5 = vpack.c.bf16 %v443_v48, %v439_v12  ;;  %v445_v40 = vsub.f32 %v4809_v11, %v381_v4  ;;  %v4810_v12 = vld [vmem:[%s5052_s22 + $0x1a0] sm:$0xff]  ;;  %v390_v48 = vunpack.c.l.bf16 %v5424_v46  ;;  %v392_v4 = vunpack.c.l.bf16 %v5426_v47 }
 0x171   : > { %7634 = vst [vmem:[#allocation38_spill] sm:$0xff] %v6622_v36  ;;  %v6632_v53 = vadd.f32 %v1804_v50, %v1691_v25  ;;  %3128 = vmatprep.mubr.bf16.mxu1 %v6613_v58  ;;  %v1693_v45 = vpop.f32.mrf.mxu0  ;;  %v6638_v36 = vpack.c.bf16 %v441_v2, %v437_v49  ;;  %v387_v50 = vunpack.c.h.bf16 %v5408_v33  ;;  %v7640_v25 = vld [vmem:[#allocation80_spill] sm:$0xff]  ;;  %v7643_v49 = vld [vmem:[#allocation83_spill] sm:$0xff]  ;;  %v6651_v2 = vpack.c.bf16 %v450_v52, %v446_v21 }
 0x172   : > { %v1806_v29 = vpop.f32.mrf.mxu1  ;;  %3178 = vmatpush2.bf16.msra.mxu0 %v7640_v25  ;;  %v449_v33 = vsub.f32 %v4810_v12, %v385_v7  ;;  %v6658_v25 = vpack.c.bf16 %v452_v13, %v448_v14  ;;  %v4811_v21 = vld [vmem:[%s5052_s22 + $0x190] sm:$0xff]  ;;  %v4813_v14 = vld [vmem:[%s7356_s1 + $0x1a8] ss:$16 sps:$4 sm:$0xff]  }
 0x173   : > { %v6644_v26 = vadd.f32 %v1806_v29, %v1693_v45  ;;  %3291 = vmatpush2.bf16.msra.mxu1 %v7641_v44  ;;  %v1695_v23 = vpop.f32.mrf.mxu0  ;;  %3179 = vmatprep.subr.bf16.mxu0 %v7642_v1  ;;  %v394_v45 = vunpack.c.h.bf16 %v5424_v46  ;;  %v396_v44 = vunpack.c.h.bf16 %v5426_v47  ;;  %v447_v52 = vsub.f32 %v4811_v21, %v383_v32  ;;  %v4812_v7 = vld [vmem:[%s5052_s22 + $0x1b0] sm:$0xff]  ;;  %v4814_v47 = vld [vmem:[%s7356_s1 + $0x3a8] ss:$16 sps:$4 sm:$0xff]   ;;  %v4815_v32 = vld [vmem:[%s7356_s1 + $0x18c] ss:$16 sps:$4 sm:$0xff]  }
 0x174   : > { %v1808_v19 = vpop.f32.mrf.mxu1  ;;  %3292 = vmatprep.subr.bf16.mxu1 %v7643_v49  ;;  %v451_v46 = vsub.f32 %v4812_v7, %v387_v50  ;;  %v4816_v50 = vld [vmem:[%s7356_s1 + $0x38c] ss:$16 sps:$4 sm:$0xff]   ;;  %v6680_v49 = vpack.c.bf16 %v449_v33, %v445_v40  ;;  %v393_v33 = vunpack.c.h.bf16 %v5442_v60 }
 0x175   : > { %7639 = vst [vmem:[#allocation39_spill] sm:$0xff] %v6644_v26  ;;  %v6656_v29 = vadd.f32 %v1808_v19, %v1695_v23  ;;  %v1699_v11 = vpop.f32.mrf.mxu0  ;;  %3016 = vmatmul.mubr.bf16.gmra.mxu0 %v6638_v36  ;;  %v4817_v12 = vld [vmem:[%s5052_s22 + $0x1c8] sm:$0xff] }
 0x176   : > { %v1812_v1 = vpop.f32.mrf.mxu1  ;;  %3129 = vmatmul.mubr.bf16.gmra.mxu1 %v6640_v5  ;;  %3180 = vmatpush2.bf16.msra.mxu0 %v4813_v14  ;;  %v4819_v14 = vld [vmem:[%s5052_s22 + $0x1d8] sm:$0xff]  ;;  %v6691_v40 = vpack.c.bf16 %v451_v46, %v447_v52 }
 0x177   : > { %7644 = vst [vmem:[#allocation40_spill] sm:$0xff] %v6656_v29  ;;  %v6666_v23 = vadd.f32 %v1812_v1, %v1699_v11  ;;  %3293 = vmatpush2.bf16.msra.mxu1 %v4814_v47  ;;  %v1701_v13 = vpop.f32.mrf.mxu0  ;;  %3181 = vmatprep.subr.bf16.mxu0 %v4815_v32  ;;  %v454_v11 = vsub.f32 %v4817_v12, %v390_v48  ;;  %v4818_v1 = vld [vmem:[%s5052_s22 + $0x1e8] sm:$0xff]  ;;  %v4820_v32 = vld [vmem:[%s5052_s22 + $0x1f8] sm:$0xff]  ;;  %v389_v29 = vunpack.c.l.bf16 %v5442_v60  ;;  %v391_v48 = vunpack.c.l.bf16 %v5444_v61 }
 0x178   : > { %v1814_v19 = vpop.f32.mrf.mxu1  ;;  %3294 = vmatprep.subr.bf16.mxu1 %v4816_v50  ;;  %v458_v21 = vsub.f32 %v4818_v1, %v394_v45  ;;  %3025 = vmatprep.mubr.bf16.mxu0 %v6651_v2  ;;  %v456_v47 = vsub.f32 %v4819_v14, %v392_v4  ;;  %v395_v45 = vunpack.c.h.bf16 %v5444_v61  ;;  %v4821_v4 = vld [vmem:[%s7356_s1 + $0x188] ss:$16 sps:$4 sm:$0xff]   ;;  %v4823_v61 = vld [vmem:[%s7356_s1 + $0x16c] ss:$16 sps:$4 sm:$0xff]   ;;  %v4825_v1 = vld [vmem:[%s5052_s22 + $0x1c0] sm:$0xff] }
 0x179   : > { %7645 = vst [vmem:[#allocation41_spill] sm:$0xff] %v6666_v23  ;;  %v6684_v7 = vadd.f32 %v1814_v19, %v1701_v13  ;;  %3138 = vmatprep.mubr.bf16.mxu1 %v6658_v25  ;;  %v460_v23 = vsub.f32 %v4820_v32, %v396_v44  ;;  %v1703_v26 = vpop.f32.mrf.mxu0  ;;  %v4822_v44 = vld [vmem:[%s7356_s1 + $0x388] ss:$16 sps:$4 sm:$0xff]   ;;  %v453_v14 = vsub.f32 %v4825_v1, %v389_v29 }
 0x17a   : > { %v1816_v50 = vpop.f32.mrf.mxu1  ;;  %3182 = vmatpush2.bf16.msra.mxu0 %v4821_v4  ;;  %v6712_v19 = vpack.c.bf16 %v458_v21, %v454_v11  ;;  %v4826_v4 = vld [vmem:[%s5052_s22 + $0x1e0] sm:$0xff]  ;;  %v4830_v29 = vld [vmem:[%s7356_s1 + $0x368] ss:$16 sps:$4 sm:$0xff]  }
 0x17b   : > { %7646 = vst [vmem:[#allocation42_spill] sm:$0xff] %v6684_v7  ;;  %v6696_v13 = vadd.f32 %v1816_v50, %v1703_v26  ;;  %3295 = vmatpush2.bf16.msra.mxu1 %v4822_v44  ;;  %v1705_v52 = vpop.f32.mrf.mxu0  ;;  %3183 = vmatprep.subr.bf16.mxu0 %v4823_v61  ;;  %v4824_v26 = vld [vmem:[%s7356_s1 + $0x36c] ss:$16 sps:$4 sm:$0xff]   ;;  %v6714_v12 = vpack.c.bf16 %v460_v23, %v456_v47  ;;  %v4827_v61 = vld [vmem:[%s5052_s22 + $0x1d0] sm:$0xff]  ;;  %v4829_v23 = vld [vmem:[%s7356_s1 + $0x168] ss:$16 sps:$4 sm:$0xff]  }
 0x17c   : > { %v1818_v60 = vpop.f32.mrf.mxu1  ;;  %3296 = vmatprep.subr.bf16.mxu1 %v4824_v26  ;;  %v457_v44 = vsub.f32 %v4826_v4, %v393_v33  ;;  %v4828_v7 = vld [vmem:[%s5052_s22 + $0x1f0] sm:$0xff]  ;;  %v4831_v47 = vld [vmem:[%s7356_s1 + $0x14c] ss:$16 sps:$4 sm:$0xff]   ;;  %v4834_v4 = vld [vmem:[%s7356_s1 + $0x348] ss:$16 sps:$4 sm:$0xff]  }
 0x17d   : > { %7647 = vst [vmem:[#allocation43_spill] sm:$0xff] %v6696_v13  ;;  %v6710_v46 = vadd.f32 %v1818_v60, %v1705_v52  ;;  %v1709_v32 = vpop.f32.mrf.mxu0  ;;  %3026 = vmatmul.mubr.bf16.gmra.mxu0 %v6680_v49  ;;  %v455_v13 = vsub.f32 %v4827_v61, %v391_v48  ;;  %v459_v26 = vsub.f32 %v4828_v7, %v395_v45  ;;  %v4832_v7 = vld [vmem:[%s7356_s1 + $0x34c] ss:$16 sps:$4 sm:$0xff]  }
 0x17e   : > { %v1822_v50 = vpop.f32.mrf.mxu1  ;;  %3139 = vmatmul.mubr.bf16.gmra.mxu1 %v6691_v40  ;;  %3184 = vmatpush2.bf16.msra.mxu0 %v4829_v23  ;;  %v6740_v60 = vpack.c.bf16 %v457_v44, %v453_v14  ;;  %v4835_v14 = vld [vmem:[%s7356_s1 + $0x12c] ss:$16 sps:$4 sm:$0xff]  }
 0x17f   : > { %v6722_v52 = vadd.f32 %v1822_v50, %v1709_v32  ;;  %3297 = vmatpush2.bf16.msra.mxu1 %v4830_v29  ;;  %v1711_v11 = vpop.f32.mrf.mxu0  ;;  %3185 = vmatprep.subr.bf16.mxu0 %v4831_v47  ;;  %v6742_v1 = vpack.c.bf16 %v459_v26, %v455_v13  ;;  %v4833_v50 = vld [vmem:[%s7356_s1 + $0x148] ss:$16 sps:$4 sm:$0xff]   ;;  %v4836_v13 = vld [vmem:[%s7356_s1 + $0x32c] ss:$16 sps:$4 sm:$0xff]  }
 0x180   : > { %v1824_v21 = vpop.f32.mrf.mxu1  ;;  %3298 = vmatprep.subr.bf16.mxu1 %v4832_v7  ;;  %3035 = vmatprep.mubr.bf16.mxu0 %v6712_v19  ;;  %v4838_v47 = vld [vmem:[%s7356_s1 + $0x328] ss:$16 sps:$4 sm:$0xff]  }
 0x181   : > { %v6736_v33 = vadd.f32 %v1824_v21, %v1711_v11  ;;  %3148 = vmatprep.mubr.bf16.mxu1 %v6714_v12  ;;  %v1713_v48 = vpop.f32.mrf.mxu0  ;;  %v4837_v21 = vld [vmem:[%s7356_s1 + $0x128] ss:$16 sps:$4 sm:$0xff]  }
 0x182   : > { %v1826_v45 = vpop.f32.mrf.mxu1  ;;  %3186 = vmatpush2.bf16.msra.mxu0 %v4833_v50  ;;  %v4840_v50 = vld [vmem:[%s7356_s1 + $0x30c] ss:$16 sps:$4 sm:$0xff]  }
 0x183   : > { %v6744_v32 = vadd.f32 %v1826_v45, %v1713_v48  ;;  %3299 = vmatpush2.bf16.msra.mxu1 %v4834_v4  ;;  %v1715_v61 = vpop.f32.mrf.mxu0  ;;  %3187 = vmatprep.subr.bf16.mxu0 %v4835_v14  ;;  %v4839_v45 = vld [vmem:[%s7356_s1 + $0x10c] ss:$16 sps:$4 sm:$0xff]  }
 0x184   : > { %v1828_v23 = vpop.f32.mrf.mxu1  ;;  %3300 = vmatprep.subr.bf16.mxu1 %v4836_v13  ;;  %v4841_v13 = vld [vmem:[%s7356_s1 + $0x108] ss:$16 sps:$4 sm:$0xff]  }
 0x185   : > { %v6758_v44 = vadd.f32 %v1828_v23, %v1715_v61  ;;  %v1719_v26 = vpop.f32.mrf.mxu0  ;;  %3036 = vmatmul.mubr.bf16.gmra.mxu0 %v6740_v60 }
 0x186   : > { %v1832_v29 = vpop.f32.mrf.mxu1  ;;  %3149 = vmatmul.mubr.bf16.gmra.mxu1 %v6742_v1  ;;  %3188 = vmatpush2.bf16.msra.mxu0 %v4837_v21 }
 0x187   : > { %v6762_v11 = vadd.f32 %v1832_v29, %v1719_v26  ;;  %3301 = vmatpush2.bf16.msra.mxu1 %v4838_v47  ;;  %v1721_v7 = vpop.f32.mrf.mxu0  ;;  %3189 = vmatprep.subr.bf16.mxu0 %v4839_v45  ;;  %v4842_v26 = vld [vmem:[%s7356_s1 + $0x308] ss:$16 sps:$4 sm:$0xff]  }
 0x188   : > { %v1834_v48 = vpop.f32.mrf.mxu1  ;;  %3302 = vmatprep.subr.bf16.mxu1 %v4840_v50  ;;  %3191 = vmatprep.mubr.bf16.mxu0 %v6387_v63 }
 0x189   : > { %v6776_v4 = vadd.f32 %v1834_v48, %v1721_v7  ;;  %3304 = vmatprep.mubr.bf16.mxu1 %v6394_v42  ;;  %v1723_v61 = vpop.f32.mrf.mxu0 }
 0x18a   : > { %v1836_v23 = vpop.f32.mrf.mxu1  ;;  %3190 = vmatpush2.bf16.msra.mxu0 %v4841_v13 }
 0x18b   : > { %v6780_v14 = vadd.f32 %v1836_v23, %v1723_v61  ;;  %3303 = vmatpush2.bf16.msra.mxu1 %v4842_v26  ;;  %v1725_v29 = vpop.f32.mrf.mxu0 }
 0x18c   : > { %v1838_v21 = vpop.f32.mrf.mxu1 }
 0x18d   : > { %v6788_v47 = vadd.f32 %v1838_v21, %v1725_v29  ;;  %v2515_v63 = vpop.f32.mrf.mxu0  ;;  %3192 = vmatmul.mubr.bf16.vlgmr.msra.gmra.mxu0 %v6408_v39 }
 0x18e   : > { %v2628_v42 = vpop.f32.mrf.mxu1  ;;  %3305 = vmatmul.mubr.bf16.vlgmr.msra.gmra.mxu1 %v6419_v17  ;;  %v2516_v7 = vadd.f32 %v2515_v63, %v6238_v56  ;;  %3201 = vmatprep.mubr.bf16.mxu0 %v6430_v28 }
 0x18f   : > { %3314 = vmatprep.mubr.bf16.mxu1 %v6437_v35  ;;  %v2517_v48 = vpop.f32.mrf.mxu0 }
 0x190   : > { %v2630_v45 = vpop.f32.mrf.mxu1  ;;  %v6795_v50 = vadd.f32 %v2628_v42, %v2516_v7  ;;  %v2518_v61 = vadd.f32 %v2517_v48, %v6244_v8 }
 0x191   : > { %v2519_v23 = vpop.f32.mrf.mxu0 }
 0x192   : > { %v2632_v13 = vpop.f32.mrf.mxu1  ;;  %v6798_v26 = vadd.f32 %v2630_v45, %v2518_v61  ;;  %v2520_v39 = vadd.f32 %v2519_v23, %v6248_v6 }
 0x193   : > { %v2521_v29 = vpop.f32.mrf.mxu0 }
 0x194   : > { %v2634_v17 = vpop.f32.mrf.mxu1  ;;  %v6801_v21 = vadd.f32 %v2632_v13, %v2520_v39  ;;  %v2522_v56 = vadd.f32 %v2521_v29, %v6254_v18 }
 0x195   : > { %v2525_v28 = vpop.f32.mrf.mxu0  ;;  %3202 = vmatmul.mubr.bf16.gmra.mxu0 %v6462_v31 }
 0x196   : > { %v2638_v35 = vpop.f32.mrf.mxu1  ;;  %3315 = vmatmul.mubr.bf16.gmra.mxu1 %v6464_v37  ;;  %v6806_v63 = vadd.f32 %v2634_v17, %v2522_v56  ;;  %v2526_v8 = vadd.f32 %v2525_v28, %v6258_v3  ;;  %3211 = vmatprep.mubr.bf16.mxu0 %v6475_v0  ;;  %v3575_v28 = vld [vmem:[%s7358_s3 + $0xf0] sm:$0xff] }
 0x197   : > { %3324 = vmatprep.mubr.bf16.mxu1 %v6482_v16  ;;  %v2527_v6 = vpop.f32.mrf.mxu0 }
 0x198   : > { %v2640_v42 = vpop.f32.mrf.mxu1  ;;  %v6811_v7 = vadd.f32 %v2638_v35, %v2526_v8  ;;  %v2528_v18 = vadd.f32 %v2527_v6, %v6264_v22  ;;  %v3559_v35 = vld [vmem:[%s7358_s3 + $0x70] sm:$0xff] }
 0x199   : > { %v2529_v48 = vpop.f32.mrf.mxu0 }
 0x19a   : > { %v2642_v45 = vpop.f32.mrf.mxu1  ;;  %v6814_v61 = vadd.f32 %v2640_v42, %v2528_v18  ;;  %v2530_v31 = vadd.f32 %v2529_v48, %v6268_v57  ;;  %v3576_v57 = vld [vmem:[%s7358_s3 + $0xf8] sm:$0xff] }
 0x19b   : > { %v2531_v37 = vpop.f32.mrf.mxu0  ;;  %4205 = vmatprep.subr.mxu0 %v3576_v57  ;;  %4285 = vmatprep.subr.mxu1 %v3576_v57 }
 0x19c   : > { %v2644_v23 = vpop.f32.mrf.mxu1  ;;  %v6817_v13 = vadd.f32 %v2642_v45, %v2530_v31  ;;  %v2532_v3 = vadd.f32 %v2531_v37, %v6274_v30  ;;  %v3560_v30 = vld [vmem:[%s7358_s3 + $0x78] sm:$0xff]  ;;  %v7648_v45 = vld [vmem:[#allocation2_spill] sm:$0xff]  ;;  %v3558_v37 = vld [vmem:[%s7358_s3 + $0x68] sm:$0xff] }
 0x19d   : > { %v2535_v0 = vpop.f32.mrf.mxu0  ;;  %3212 = vmatmul.mubr.bf16.gmra.mxu0 %v6496_v20  ;;  %4301 = vmatpush3.msra.mxu1 %v3560_v30 }
 0x19e   : > { %v2648_v16 = vpop.f32.mrf.mxu1  ;;  %3325 = vmatmul.mubr.bf16.gmra.mxu1 %v6507_v59  ;;  %v6822_v39 = vadd.f32 %v2644_v23, %v2532_v3  ;;  %v2536_v22 = vadd.f32 %v2535_v0, %v6278_v9  ;;  %3221 = vmatprep.mubr.bf16.mxu0 %v6518_v54  ;;  %v7649_v3 = vld [vmem:[#allocation3_spill] sm:$0xff] }
 0x19f   : > { %3334 = vmatprep.mubr.bf16.mxu1 %v6525_v27  ;;  %v2537_v29 = vpop.f32.mrf.mxu0  ;;  %4206 = vmatpush3.msra.mxu0 %v3560_v30  ;;  %v3573_v30 = vld [vmem:[%s7358_s3 + $0xe0] sm:$0xff] }
 0x1a0   : > { %v2650_v20 = vpop.f32.mrf.mxu1  ;;  %v6833_v59 = vadd.f32 %v2648_v16, %v2536_v22  ;;  %v2538_v9 = vadd.f32 %v2537_v29, %v6284_v38  ;;  %4207 = vmatprep.subr.mxu0 %v3575_v28  ;;  %4286 = vmatprep.subr.mxu1 %v3575_v28  ;;  %v7650_v22 = vld [vmem:[#allocation4_spill] sm:$0xff]  ;;  %v3557_v29 = vld [vmem:[%s7358_s3 + $0x60] sm:$0xff] }
 0x1a1   : > { %v2539_v54 = vpop.f32.mrf.mxu0  ;;  %4208 = vmatpush3.msra.mxu0 %v3559_v35  ;;  %4302 = vmatpush3.msra.mxu1 %v3559_v35 }
 0x1a2   : > { %v2652_v27 = vpop.f32.mrf.mxu1  ;;  %v6836_v17 = vadd.f32 %v2650_v20, %v2538_v9  ;;  %v2540_v56 = vadd.f32 %v2539_v54, %v6288_v10 }
 0x1a3   : > { %v2541_v8 = vpop.f32.mrf.mxu0 }
 0x1a4   : > { %v2654_v6 = vpop.f32.mrf.mxu1  ;;  %v6845_v38 = vadd.f32 %v2652_v27, %v2540_v56  ;;  %v2542_v42 = vadd.f32 %v2541_v8, %v6294_v51  ;;  %v3574_v51 = vld [vmem:[%s7358_s3 + $0xe8] sm:$0xff]  ;;  %v7651_v27 = vld [vmem:[#allocation5_spill] sm:$0xff] }
 0x1a5   : > { %v2545_v18 = vpop.f32.mrf.mxu0  ;;  %3222 = vmatmul.mubr.bf16.gmra.mxu0 %v6550_v55  ;;  %4209 = vmatprep.subr.mxu0 %v3574_v51 }
 0x1a6   : > { %v2658_v10 = vpop.f32.mrf.mxu1  ;;  %3335 = vmatmul.mubr.bf16.gmra.mxu1 %v6552_v15  ;;  %v6850_v48 = vadd.f32 %v2654_v6, %v2542_v42  ;;  %v2546_v31 = vadd.f32 %v2545_v18, %v7648_v45  ;;  %3231 = vmatprep.mubr.bf16.mxu0 %v6563_v24  ;;  %v7652_v6 = vld [vmem:[#allocation6_spill] sm:$0xff]  ;;  %v3572_v18 = vld [vmem:[%s7358_s3 + $0xd8] sm:$0xff] }
 0x1a7   : > { %3344 = vmatprep.mubr.bf16.mxu1 %v6570_v43  ;;  %v2547_v23 = vpop.f32.mrf.mxu0  ;;  %4287 = vmatprep.subr.mxu1 %v3574_v51 }
 0x1a8   : > { %v2660_v55 = vpop.f32.mrf.mxu1  ;;  %v6861_v15 = vadd.f32 %v2658_v10, %v2546_v31  ;;  %v2548_v0 = vadd.f32 %v2547_v23, %v7649_v3  ;;  %4210 = vmatpush3.msra.mxu0 %v3558_v37  ;;  %4303 = vmatpush3.msra.mxu1 %v3558_v37  ;;  %v3556_v10 = vld [vmem:[%s7358_s3 + $0x58] sm:$0xff]  ;;  %v7653_v31 = vld [vmem:[#allocation8_spill] sm:$0xff] }
 0x1a9   : > { %v2549_v24 = vpop.f32.mrf.mxu0  ;;  %4211 = vmatprep.subr.mxu0 %v3573_v30  ;;  %4288 = vmatprep.subr.mxu1 %v3573_v30  ;;  %v3571_v37 = vld [vmem:[%s7358_s3 + $0xd0] sm:$0xff]  ;;  %v3570_v30 = vld [vmem:[%s7358_s3 + $0xc8] sm:$0xff] }
 0x1aa   : > { %v2662_v43 = vpop.f32.mrf.mxu1  ;;  %v6864_v16 = vadd.f32 %v2660_v55, %v2548_v0  ;;  %v2550_v57 = vadd.f32 %v2549_v24, %v7650_v22  ;;  %4212 = vmatpush3.msra.mxu0 %v3557_v29  ;;  %4304 = vmatpush3.msra.mxu1 %v3557_v29  ;;  %v3555_v23 = vld [vmem:[%s7358_s3 + $0x50] sm:$0xff]  ;;  %v7654_v22 = vld [vmem:[#allocation10_spill] sm:$0xff]  ;;  %v3554_v29 = vld [vmem:[%s7358_s3 + $0x48] sm:$0xff] }
 0x1ab   : > { %v2551_v20 = vpop.f32.mrf.mxu0  ;;  %4213 = vmatprep.subr.mxu0 %v3572_v18  ;;  %4289 = vmatprep.subr.mxu1 %v3572_v18 }
 0x1ac   : > { %v2664_v9 = vpop.f32.mrf.mxu1  ;;  %v6873_v54 = vadd.f32 %v2662_v43, %v2550_v57  ;;  %v2552_v56 = vadd.f32 %v2551_v20, %v7651_v27  ;;  %4214 = vmatpush3.msra.mxu0 %v3556_v10  ;;  %4305 = vmatpush3.msra.mxu1 %v3556_v10 }
 0x1ad   : > { %v2555_v28 = vpop.f32.mrf.mxu0  ;;  %3232 = vmatmul.mubr.bf16.gmra.mxu0 %v6584_v62  ;;  %4215 = vmatprep.subr.mxu0 %v3571_v37 }
 0x1ae   : > { %v2668_v35 = vpop.f32.mrf.mxu1  ;;  %3345 = vmatmul.mubr.bf16.gmra.mxu1 %v6595_v41  ;;  %v6878_v8 = vadd.f32 %v2664_v9, %v2552_v56  ;;  %v2556_v42 = vadd.f32 %v2555_v28, %v7652_v6  ;;  %3241 = vmatprep.mubr.bf16.mxu0 %v6606_v34  ;;  %v3569_v56 = vld [vmem:[%s7358_s3 + $0xc0] sm:$0xff] }
 0x1af   : > { %3354 = vmatprep.mubr.bf16.mxu1 %v6613_v58  ;;  %v6889_v45 = vpop.f32.mrf.mxu0  ;;  %4290 = vmatprep.subr.mxu1 %v3571_v37  ;;  %v3553_v28 = vld [vmem:[%s7358_s3 + $0x40] sm:$0xff] }
 0x1b0   : > { %v6891_v62 = vpop.f32.mrf.mxu1  ;;  %v6893_v41 = vadd.f32 %v2668_v35, %v2556_v42  ;;  %4216 = vmatpush3.msra.mxu0 %v3555_v23  ;;  %4306 = vmatpush3.msra.mxu1 %v3555_v23 }
 0x1b1   : > { %v2559_v34 = vpop.f32.mrf.mxu0  ;;  %4217 = vmatprep.subr.mxu0 %v3570_v30  ;;  %4291 = vmatprep.subr.mxu1 %v3570_v30 }
 0x1b2   : > { %v2672_v58 = vpop.f32.mrf.mxu1  ;;  %v2560_v51 = vadd.f32 %v2559_v34, %v7653_v31  ;;  %4218 = vmatpush3.msra.mxu0 %v3554_v29  ;;  %4307 = vmatpush3.msra.mxu1 %v3554_v29  ;;  %v7656_v34 = vld [vmem:[#allocation14_spill] sm:$0xff]  ;;  %v3568_v31 = vld [vmem:[%s7358_s3 + $0xb8] sm:$0xff] }
 0x1b3   : > { %v6902_v55 = vpop.f32.mrf.mxu0  ;;  %4219 = vmatprep.subr.mxu0 %v3569_v56  ;;  %4292 = vmatprep.subr.mxu1 %v3569_v56  ;;  %v3566_v56 = vld [vmem:[%s7358_s3 + $0xa8] sm:$0xff] }
 0x1b4   : > { %v6904_v3 = vpop.f32.mrf.mxu1  ;;  %v6906_v0 = vadd.f32 %v2672_v58, %v2560_v51  ;;  %4220 = vmatpush3.msra.mxu0 %v3553_v28  ;;  %4308 = vmatpush3.msra.mxu1 %v3553_v28  ;;  %v3552_v51 = vld [vmem:[%s7358_s3 + $0x38] sm:$0xff]  ;;  %v3550_v28 = vld [vmem:[%s7358_s3 + $0x28] sm:$0xff] }
 0x1b5   : > { %v2565_v24 = vpop.f32.mrf.mxu0  ;;  %3242 = vmatmul.mubr.bf16.gmra.mxu0 %v6638_v36  ;;  %4221 = vmatprep.subr.mxu0 %v3568_v31 }
 0x1b6   : > { %v2678_v43 = vpop.f32.mrf.mxu1  ;;  %3355 = vmatmul.mubr.bf16.gmra.mxu1 %v6640_v5  ;;  %v2566_v57 = vadd.f32 %v2565_v24, %v7654_v22  ;;  %3251 = vmatprep.mubr.bf16.mxu0 %v6651_v2  ;;  %v3551_v22 = vld [vmem:[%s7358_s3 + $0x30] sm:$0xff] }
 0x1b7   : > { %3364 = vmatprep.mubr.bf16.mxu1 %v6658_v25  ;;  %v6919_v20 = vpop.f32.mrf.mxu0  ;;  %v7655_v25 = vld [vmem:[#allocation12_spill] sm:$0xff]  ;;  %4293 = vmatprep.subr.mxu1 %v3568_v31 }
 0x1b8   : > { %v6921_v9 = vpop.f32.mrf.mxu1  ;;  %v6923_v36 = vadd.f32 %v2678_v43, %v2566_v57  ;;  %4222 = vmatpush3.msra.mxu0 %v3552_v51  ;;  %4309 = vmatpush3.msra.mxu1 %v3552_v51  ;;  %v3567_v43 = vld [vmem:[%s7358_s3 + $0xb0] sm:$0xff]  ;;  %v3565_v51 = vld [vmem:[%s7358_s3 + $0xa0] sm:$0xff] }
 0x1b9   : > { %v2569_v5 = vpop.f32.mrf.mxu0  ;;  %4223 = vmatprep.subr.mxu0 %v3567_v43  ;;  %4294 = vmatprep.subr.mxu1 %v3567_v43 }
 0x1ba   : > { %v2682_v2 = vpop.f32.mrf.mxu1  ;;  %v2570_v27 = vadd.f32 %v2569_v5, %v7655_v25  ;;  %4224 = vmatpush3.msra.mxu0 %v3551_v22  ;;  %4310 = vmatpush3.msra.mxu1 %v3551_v22  ;;  %v7659_v25 = vld [vmem:[#allocation18_spill] sm:$0xff] }
 0x1bb   : > { %v6932_v35 = vpop.f32.mrf.mxu0  ;;  %4225 = vmatprep.subr.mxu0 %v3566_v56  ;;  %4295 = vmatprep.subr.mxu1 %v3566_v56 }
 0x1bc   : > { %v6934_v6 = vpop.f32.mrf.mxu1  ;;  %v6936_v42 = vadd.f32 %v2682_v2, %v2570_v27  ;;  %4226 = vmatpush3.msra.mxu0 %v3550_v28  ;;  %4311 = vmatpush3.msra.mxu1 %v3550_v28 }
 0x1bd   : > { %v2575_v18 = vpop.f32.mrf.mxu0  ;;  %3252 = vmatmul.mubr.bf16.gmra.mxu0 %v6680_v49  ;;  %4227 = vmatprep.subr.mxu0 %v3565_v51 }
 0x1be   : > { %v2688_v10 = vpop.f32.mrf.mxu1  ;;  %3365 = vmatmul.mubr.bf16.gmra.mxu1 %v6691_v40  ;;  %v2576_v58 = vadd.f32 %v2575_v18, %v7656_v34  ;;  %3261 = vmatprep.mubr.bf16.mxu0 %v6712_v19 }
 0x1bf   : > { %3374 = vmatprep.mubr.bf16.mxu1 %v6714_v12  ;;  %v6949_v37 = vpop.f32.mrf.mxu0  ;;  %v7657_v12 = vld [vmem:[#allocation16_spill] sm:$0xff]  ;;  %4296 = vmatprep.subr.mxu1 %v3565_v51 }
 0x1c0   : > { %v6951_v23 = vpop.f32.mrf.mxu1  ;;  %v6953_v49 = vadd.f32 %v2688_v10, %v2576_v58  ;;  %v7662_v58 = vld [vmem:[#allocation20_spill] sm:$0xff] }
 0x1c1   : > { %v2579_v40 = vpop.f32.mrf.mxu0 }
 0x1c2   : > { %v2692_v19 = vpop.f32.mrf.mxu1  ;;  %v2580_v24 = vadd.f32 %v2579_v40, %v7657_v12  ;;  %v3549_v40 = vld [vmem:[%s7358_s3 + $0x20] sm:$0xff] }
 0x1c3   : > { %v6962_v57 = vpop.f32.mrf.mxu0  ;;  %4228 = vmatpush3.msra.mxu0 %v3549_v40  ;;  %4312 = vmatpush3.msra.mxu1 %v3549_v40 }
 0x1c4   : > { %v6964_v30 = vpop.f32.mrf.mxu1  ;;  %v6966_v29 = vadd.f32 %v2692_v19, %v2580_v24 }
 0x1c5   : > { %v2585_v5 = vpop.f32.mrf.mxu0  ;;  %3262 = vmatmul.mubr.bf16.gmra.mxu0 %v6740_v60 }
 0x1c6   : > { %7658 = vst [vmem:[#allocation44_spill] sm:$0xff] %v6966_v29  ;;  %v2698_v2 = vpop.f32.mrf.mxu1  ;;  %3375 = vmatmul.mubr.bf16.gmra.mxu1 %v6742_v1  ;;  %v2586_v27 = vadd.f32 %v2585_v5, %v7659_v25  ;;  %v7666_v5 = vld [vmem:[#allocation22_spill] sm:$0xff]  ;;  %v3564_v25 = vld [vmem:[%s7358_s3 + $0x98] sm:$0xff] }
 0x1c7   : > { %v6977_v18 = vpop.f32.mrf.mxu0  ;;  %4229 = vmatprep.subr.mxu0 %v3564_v25  ;;  %4297 = vmatprep.subr.mxu1 %v3564_v25  ;;  %v7672_v25 = vld [vmem:[#allocation25_spill] sm:$0xff] }
 0x1c8   : > { %v6979_v10 = vpop.f32.mrf.mxu1  ;;  %v6981_v34 = vadd.f32 %v2698_v2, %v2586_v27  ;;  %v3548_v27 = vld [vmem:[%s7358_s3 + $0x18] sm:$0xff] }
 0x1c9   : > { %7660 = vst [vmem:[#allocation45_spill] sm:$0xff] %v6979_v10  ;;  %v2589_v60 = vpop.f32.mrf.mxu0  ;;  %4230 = vmatpush3.msra.mxu0 %v3548_v27  ;;  %4313 = vmatpush3.msra.mxu1 %v3548_v27 }
 0x1ca   : > { %7661 = vst [vmem:[#allocation46_spill] sm:$0xff] %v6981_v34  ;;  %v2702_v1 = vpop.f32.mrf.mxu1  ;;  %v2590_v31 = vadd.f32 %v2589_v60, %v7662_v58 }
 0x1cb   : > { %v6990_v19 = vpop.f32.mrf.mxu0 }
 0x1cc   : > { %7663 = vst [vmem:[#allocation47_spill] sm:$0xff] %v6990_v19  ;;  %v6992_v12 = vpop.f32.mrf.mxu1  ;;  %v6994_v24 = vadd.f32 %v2702_v1, %v2590_v31  ;;  %v7668_v1 = vld [vmem:[#allocation23_spill] sm:$0xff]  ;;  %v7680_v19 = vld [vmem:[#allocation29_spill] sm:$0xff] }
 0x1cd   : > { %7664 = vst [vmem:[#allocation48_spill] sm:$0xff] %v6992_v12  ;;  %v2741_v43 = vpop.f32.mrf.mxu0 }
 0x1ce   : > { %7665 = vst [vmem:[#allocation49_spill] sm:$0xff] %v6994_v24  ;;  %v2854_v22 = vpop.f32.mrf.mxu1  ;;  %v2742_v2 = vadd.f32 %v2741_v43, %v7666_v5  ;;  %v7670_v43 = vld [vmem:[#allocation24_spill] sm:$0xff] }
 0x1cf   : > { %v2743_v56 = vpop.f32.mrf.mxu0  ;;  %v3563_v24 = vld [vmem:[%s7358_s3 + $0x90] sm:$0xff] }
 0x1d0   : > { %v2856_v28 = vpop.f32.mrf.mxu1  ;;  %v7003_v60 = vadd.f32 %v2854_v22, %v2742_v2  ;;  %v2744_v58 = vadd.f32 %v2743_v56, %v7668_v1  ;;  %4231 = vmatprep.subr.mxu0 %v3563_v24  ;;  %v3547_v22 = vld [vmem:[%s7358_s3 + $0x10] sm:$0xff]  ;;  %4298 = vmatprep.subr.mxu1 %v3563_v24  ;;  %v3562_v56 = vld [vmem:[%s7358_s3 + $0x88] sm:$0xff]  ;;  %v7674_v24 = vld [vmem:[#allocation26_spill] sm:$0xff] }
 0x1d1   : > { %v2745_v31 = vpop.f32.mrf.mxu0  ;;  %4232 = vmatpush3.msra.mxu0 %v3547_v22  ;;  %4314 = vmatpush3.msra.mxu1 %v3547_v22  ;;  %v3545_v22 = vld [vmem:[%s7358_s3] sm:$0xff] }
 0x1d2   : > { %7667 = vst [vmem:[#allocation50_spill] sm:$0xff] %v7003_v60  ;;  %v2858_v51 = vpop.f32.mrf.mxu1  ;;  %v7006_v40 = vadd.f32 %v2856_v28, %v2744_v58  ;;  %v2746_v5 = vadd.f32 %v2745_v31, %v7670_v43  ;;  %4233 = vmatprep.subr.mxu0 %v3562_v56  ;;  %v3546_v58 = vld [vmem:[%s7358_s3 + $0x8] sm:$0xff]  ;;  %4299 = vmatprep.subr.mxu1 %v3562_v56 }
 0x1d3   : > { %v2747_v12 = vpop.f32.mrf.mxu0  ;;  %4234 = vmatpush3.msra.mxu0 %v3546_v58  ;;  %4315 = vmatpush3.msra.mxu1 %v3546_v58 }
 0x1d4   : > { %7669 = vst [vmem:[#allocation51_spill] sm:$0xff] %v7006_v40  ;;  %v2860_v34 = vpop.f32.mrf.mxu1  ;;  %v7015_v2 = vadd.f32 %v2858_v51, %v2746_v5  ;;  %v2748_v27 = vadd.f32 %v2747_v12, %v7672_v25  ;;  %v3561_v12 = vld [vmem:[%s7358_s3 + $0x80] sm:$0xff] }
 0x1d5   : > { %v2751_v28 = vpop.f32.mrf.mxu0  ;;  %4235 = vmatprep.subr.mxu0 %v3561_v12  ;;  %4300 = vmatprep.subr.mxu1 %v3561_v12 }
 0x1d6   : > { %7671 = vst [vmem:[#allocation52_spill] sm:$0xff] %v7015_v2  ;;  %v2864_v1 = vpop.f32.mrf.mxu1  ;;  %v7024_v31 = vadd.f32 %v2860_v34, %v2748_v27  ;;  %v2752_v51 = vadd.f32 %v2751_v28, %v7674_v24  ;;  %v7676_v34 = vld [vmem:[#allocation27_spill] sm:$0xff]  ;;  %4236 = vmatpush3.msra.mxu0 %v3545_v22  ;;  %4316 = vmatpush3.msra.mxu1 %v3545_v22 }
 0x1d7   : > { %v2753_v43 = vpop.f32.mrf.mxu0 }
 0x1d8   : > { %7673 = vst [vmem:[#allocation53_spill] sm:$0xff] %v7024_v31  ;;  %v2866_v5 = vpop.f32.mrf.mxu1  ;;  %v7033_v25 = vadd.f32 %v2864_v1, %v2752_v51  ;;  %v2754_v27 = vadd.f32 %v2753_v43, %v7676_v34  ;;  %v7678_v31 = vld [vmem:[#allocation28_spill] sm:$0xff]  ;;  %v7682_v51 = vld [vmem:[#allocation30_spill] sm:$0xff] }
 0x1d9   : > { %v2755_v56 = vpop.f32.mrf.mxu0 }
 0x1da   : > { %7675 = vst [vmem:[#allocation54_spill] sm:$0xff] %v7033_v25  ;;  %v2868_v28 = vpop.f32.mrf.mxu1  ;;  %v7036_v24 = vadd.f32 %v2866_v5, %v2754_v27  ;;  %v2756_v58 = vadd.f32 %v2755_v56, %v7678_v31  ;;  %v7684_v5 = vld [vmem:[#allocation31_spill] sm:$0xff] }
 0x1db   : > { %v2757_v2 = vpop.f32.mrf.mxu0 }
 0x1dc   : > { %7677 = vst [vmem:[#allocation55_spill] sm:$0xff] %v7036_v24  ;;  %v2870_v40 = vpop.f32.mrf.mxu1  ;;  %v7039_v60 = vadd.f32 %v2868_v28, %v2756_v58  ;;  %v2758_v10 = vadd.f32 %v2757_v2, %v7680_v19  ;;  %v7686_v28 = vld [vmem:[#allocation32_spill] sm:$0xff] }
 0x1dd   : > { %v2761_v29 = vpop.f32.mrf.mxu0 }
 0x1de   : > { %7679 = vst [vmem:[#allocation56_spill] sm:$0xff] %v7039_v60  ;;  %v2874_v12 = vpop.f32.mrf.mxu1  ;;  %v7042_v1 = vadd.f32 %v2870_v40, %v2758_v10  ;;  %v2762_v43 = vadd.f32 %v2761_v29, %v7682_v51  ;;  %v7688_v10 = vld [vmem:[#allocation33_spill] sm:$0xff] }
 0x1df   : > { %v2763_v34 = vpop.f32.mrf.mxu0 }
 0x1e0   : > { %7681 = vst [vmem:[#allocation57_spill] sm:$0xff] %v7042_v1  ;;  %v2876_v22 = vpop.f32.mrf.mxu1  ;;  %v7045_v25 = vadd.f32 %v2874_v12, %v2762_v43  ;;  %v2764_v27 = vadd.f32 %v2763_v34, %v7684_v5  ;;  %v7690_v12 = vld [vmem:[#allocation34_spill] sm:$0xff] }
 0x1e1   : > { %v2765_v24 = vpop.f32.mrf.mxu0 }
 0x1e2   : > { %7683 = vst [vmem:[#allocation58_spill] sm:$0xff] %v7045_v25  ;;  %v2878_v31 = vpop.f32.mrf.mxu1  ;;  %v7048_v56 = vadd.f32 %v2876_v22, %v2764_v27  ;;  %v2766_v58 = vadd.f32 %v2765_v24, %v7686_v28  ;;  %v7692_v22 = vld [vmem:[#allocation35_spill] sm:$0xff] }
 0x1e3   : > { %v2767_v60 = vpop.f32.mrf.mxu0 }
 0x1e4   : > { %7685 = vst [vmem:[#allocation59_spill] sm:$0xff] %v7048_v56  ;;  %v2880_v19 = vpop.f32.mrf.mxu1  ;;  %v7051_v2 = vadd.f32 %v2878_v31, %v2766_v58  ;;  %v2768_v40 = vadd.f32 %v2767_v60, %v7688_v10  ;;  %v7693_v31 = vld [vmem:[#allocation36_spill] sm:$0xff] }
 0x1e5   : > { %v2771_v1 = vpop.f32.mrf.mxu0 }
 0x1e6   : > { %7687 = vst [vmem:[#allocation60_spill] sm:$0xff] %v7051_v2  ;;  %v2884_v29 = vpop.f32.mrf.mxu1  ;;  %v7054_v51 = vadd.f32 %v2880_v19, %v2768_v40  ;;  %v2772_v43 = vadd.f32 %v2771_v1, %v7690_v12  ;;  %v7695_v19 = vld [vmem:[#allocation37_spill] sm:$0xff] }
 0x1e7   : > { %v2773_v25 = vpop.f32.mrf.mxu0 }
 0x1e8   : > { %7689 = vst [vmem:[#allocation61_spill] sm:$0xff] %v7054_v51  ;;  %v2886_v34 = vpop.f32.mrf.mxu1  ;;  %v7057_v5 = vadd.f32 %v2884_v29, %v2772_v43  ;;  %v2774_v27 = vadd.f32 %v2773_v25, %v7692_v22  ;;  %v7697_v29 = vld [vmem:[#allocation38_spill] sm:$0xff] }
 0x1e9   : > { %v2775_v56 = vpop.f32.mrf.mxu0 }
 0x1ea   : > { %7691 = vst [vmem:[#allocation62_spill] sm:$0xff] %v7057_v5  ;;  %v2888_v24 = vpop.f32.mrf.mxu1  ;;  %v7060_v28 = vadd.f32 %v2886_v34, %v2774_v27  ;;  %v2776_v58 = vadd.f32 %v2775_v56, %v7693_v31 }
 0x1eb   : > { %v2777_v2 = vpop.f32.mrf.mxu0 }
 0x1ec   : > { %v2890_v60 = vpop.f32.mrf.mxu1  ;;  %v7063_v10 = vadd.f32 %v2888_v24, %v2776_v58  ;;  %v2778_v40 = vadd.f32 %v2777_v2, %v7695_v19  ;;  %v7700_v24 = vld [vmem:[#allocation39_spill] sm:$0xff] }
 0x1ed   : > { %v2781_v51 = vpop.f32.mrf.mxu0 }
 0x1ee   : > { %7694 = vst [vmem:[#allocation63_spill] sm:$0xff] %v7063_v10  ;;  %v2894_v1 = vpop.f32.mrf.mxu1  ;;  %v7066_v12 = vadd.f32 %v2890_v60, %v2778_v40  ;;  %v2782_v43 = vadd.f32 %v2781_v51, %v7697_v29  ;;  %v7702_v60 = vld [vmem:[#allocation40_spill] sm:$0xff] }
 0x1ef   : > { %v2783_v5 = vpop.f32.mrf.mxu0 }
 0x1f0   : > { %7696 = vst [vmem:[#allocation64_spill] sm:$0xff] %v7066_v12  ;;  %v2896_v25 = vpop.f32.mrf.mxu1  ;;  %v7069_v22 = vadd.f32 %v2894_v1, %v2782_v43  ;;  %v2784_v34 = vadd.f32 %v2783_v5, %v6632_v53  ;;  %v7703_v1 = vld [vmem:[#allocation41_spill] sm:$0xff] }
 0x1f1   : > { %v2785_v27 = vpop.f32.mrf.mxu0 }
 0x1f2   : > { %7698 = vst [vmem:[#allocation65_spill] sm:$0xff] %v7069_v22  ;;  %v2898_v56 = vpop.f32.mrf.mxu1  ;;  %v7072_v31 = vadd.f32 %v2896_v25, %v2784_v34  ;;  %v2786_v58 = vadd.f32 %v2785_v27, %v7700_v24  ;;  %v7704_v25 = vld [vmem:[#allocation42_spill] sm:$0xff] }
 0x1f3   : > { %v2787_v10 = vpop.f32.mrf.mxu0 }
 0x1f4   : > { %7699 = vst [vmem:[#allocation66_spill] sm:$0xff] %v7072_v31  ;;  %v2900_v2 = vpop.f32.mrf.mxu1  ;;  %v7075_v19 = vadd.f32 %v2898_v56, %v2786_v58  ;;  %v2788_v40 = vadd.f32 %v2787_v10, %v7702_v60  ;;  %v7705_v56 = vld [vmem:[#allocation43_spill] sm:$0xff] }
 0x1f5   : > { %v2791_v12 = vpop.f32.mrf.mxu0 }
 0x1f6   : > { %7701 = vst [vmem:[#allocation67_spill] sm:$0xff] %v7075_v19  ;;  %v2904_v51 = vpop.f32.mrf.mxu1  ;;  %v7078_v29 = vadd.f32 %v2900_v2, %v2788_v40  ;;  %v2792_v43 = vadd.f32 %v2791_v12, %v7703_v1 }
 0x1f7   : > { %v2793_v22 = vpop.f32.mrf.mxu0 }
 0x1f8   : > { %v2906_v53 = vpop.f32.mrf.mxu1  ;;  %v7081_v5 = vadd.f32 %v2904_v51, %v2792_v43  ;;  %v2794_v34 = vadd.f32 %v2793_v22, %v7704_v25 }
 0x1f9   : > { %v2795_v31 = vpop.f32.mrf.mxu0 }
 0x1fa   : > { %v2908_v27 = vpop.f32.mrf.mxu1  ;;  %v7084_v24 = vadd.f32 %v2906_v53, %v2794_v34  ;;  %v2796_v58 = vadd.f32 %v2795_v31, %v7705_v56 }
 0x1fb   : > { %v2797_v19 = vpop.f32.mrf.mxu0 }
 0x1fc   : > { %v2910_v10 = vpop.f32.mrf.mxu1  ;;  %v7087_v60 = vadd.f32 %v2908_v27, %v2796_v58  ;;  %v2798_v2 = vadd.f32 %v2797_v19, %v6710_v46 }
 0x1fd   : > { %v2801_v40 = vpop.f32.mrf.mxu0 }
 0x1fe   : > { %v2914_v12 = vpop.f32.mrf.mxu1  ;;  %v7090_v1 = vadd.f32 %v2910_v10, %v2798_v2  ;;  %v2802_v51 = vadd.f32 %v2801_v40, %v6722_v52 }
 0x1ff   : > { %v2803_v43 = vpop.f32.mrf.mxu0 }
 0x200   : > { %v2916_v22 = vpop.f32.mrf.mxu1  ;;  %v7093_v25 = vadd.f32 %v2914_v12, %v2802_v51  ;;  %v2804_v53 = vadd.f32 %v2803_v43, %v6736_v33 }
 0x201   : > { %v2805_v34 = vpop.f32.mrf.mxu0 }
 0x202   : > { %v2918_v31 = vpop.f32.mrf.mxu1  ;;  %v7096_v56 = vadd.f32 %v2916_v22, %v2804_v53  ;;  %v2806_v27 = vadd.f32 %v2805_v34, %v6744_v32 }
 0x203   : > { %v2807_v58 = vpop.f32.mrf.mxu0 }
 0x204   : > { %v2920_v46 = vpop.f32.mrf.mxu1  ;;  %v7099_v19 = vadd.f32 %v2918_v31, %v2806_v27  ;;  %v2808_v10 = vadd.f32 %v2807_v58, %v6758_v44 }
 0x205   : > { %v2811_v2 = vpop.f32.mrf.mxu0 }
 0x206   : > { %v2924_v52 = vpop.f32.mrf.mxu1  ;;  %v7102_v40 = vadd.f32 %v2920_v46, %v2808_v10  ;;  %v2812_v12 = vadd.f32 %v2811_v2, %v6762_v11 }
 0x207   : > { %v2813_v51 = vpop.f32.mrf.mxu0 }
 0x208   : > { %v2926_v33 = vpop.f32.mrf.mxu1  ;;  %v7105_v43 = vadd.f32 %v2924_v52, %v2812_v12  ;;  %v2814_v22 = vadd.f32 %v2813_v51, %v6776_v4 }
 0x209   : > { %v2815_v53 = vpop.f32.mrf.mxu0 }
 0x20a   : > { %7706 = vst [vmem:[#allocation68_spill] sm:$0xff] %v7105_v43  ;;  %v2928_v32 = vpop.f32.mrf.mxu1  ;;  %v7108_v34 = vadd.f32 %v2926_v33, %v2814_v22  ;;  %v2816_v31 = vadd.f32 %v2815_v53, %v6780_v14 }
 0x20b   : > { %v2817_v27 = vpop.f32.mrf.mxu0 }
 0x20c   : > { %v2930_v44 = vpop.f32.mrf.mxu1  ;;  %v7111_v58 = vadd.f32 %v2928_v32, %v2816_v31  ;;  %v2818_v46 = vadd.f32 %v2817_v27, %v6788_v47 }
 0x20d   : > { %v2967_v10 = vpop.f32.mrf.mxu0 }
 0x20e   : > { %v3080_v11 = vpop.f32.mrf.mxu1  ;;  %v7114_v2 = vadd.f32 %v2930_v44, %v2818_v46 }
 0x20f   : > { %v3081_v52 = vadd.f32 %v3080_v11, %v2967_v10  ;;  %v2969_v12 = vpop.f32.mrf.mxu0 }
 0x210   : > { %7707 = vst [vmem:[#allocation69_spill] sm:$0xff] %v7114_v2  ;;  %v3082_v43 = vpop.f32.mrf.mxu1 }
 0x211   : > { %v7117_v4 = vadd.f32 %v3081_v52, %v6795_v50  ;;  %v3083_v51 = vadd.f32 %v3082_v43, %v2969_v12  ;;  %v2971_v33 = vpop.f32.mrf.mxu0 }
 0x212   : > { %v3084_v22 = vpop.f32.mrf.mxu1 }
 0x213   : > { %v7120_v14 = vadd.f32 %v3083_v51, %v6798_v26  ;;  %v3085_v53 = vadd.f32 %v3084_v22, %v2971_v33  ;;  %v2973_v32 = vpop.f32.mrf.mxu0 }
 0x214   : > { %v3086_v31 = vpop.f32.mrf.mxu1 }
 0x215   : > { %v7123_v47 = vadd.f32 %v3085_v53, %v6801_v21  ;;  %v3087_v27 = vadd.f32 %v3086_v31, %v2973_v32  ;;  %v2977_v44 = vpop.f32.mrf.mxu0 }
 0x216   : > { %v3090_v46 = vpop.f32.mrf.mxu1 }
 0x217   : > { %v7126_v10 = vadd.f32 %v3087_v27, %v6806_v63  ;;  %v3091_v50 = vadd.f32 %v3090_v46, %v2977_v44  ;;  %v2979_v11 = vpop.f32.mrf.mxu0 }
 0x218   : > { %v3092_v43 = vpop.f32.mrf.mxu1 }
 0x219   : > { %v7129_v52 = vadd.f32 %v3091_v50, %v6811_v7  ;;  %v3093_v26 = vadd.f32 %v3092_v43, %v2979_v11  ;;  %v2981_v12 = vpop.f32.mrf.mxu0 }
 0x21a   : > { %v3094_v51 = vpop.f32.mrf.mxu1 }
 0x21b   : > { %v7132_v33 = vadd.f32 %v3093_v26, %v6814_v61  ;;  %v3095_v21 = vadd.f32 %v3094_v51, %v2981_v12  ;;  %v2983_v22 = vpop.f32.mrf.mxu0 }
 0x21c   : > { %v3096_v53 = vpop.f32.mrf.mxu1 }
 0x21d   : > { %v7135_v32 = vadd.f32 %v3095_v21, %v6817_v13  ;;  %v3097_v63 = vadd.f32 %v3096_v53, %v2983_v22  ;;  %v2987_v31 = vpop.f32.mrf.mxu0 }
 0x21e   : > { %v3100_v27 = vpop.f32.mrf.mxu1 }
 0x21f   : > { %v7138_v44 = vadd.f32 %v3097_v63, %v6822_v39  ;;  %v3101_v7 = vadd.f32 %v3100_v27, %v2987_v31  ;;  %v2989_v46 = vpop.f32.mrf.mxu0 }
 0x220   : > { %v3102_v50 = vpop.f32.mrf.mxu1 }
 0x221   : > { %v7141_v11 = vadd.f32 %v3101_v7, %v6833_v59  ;;  %v3103_v61 = vadd.f32 %v3102_v50, %v2989_v46  ;;  %v2991_v43 = vpop.f32.mrf.mxu0 }
 0x222   : > { %v3104_v26 = vpop.f32.mrf.mxu1 }
 0x223   : > { %v7144_v12 = vadd.f32 %v3103_v61, %v6836_v17  ;;  %v3105_v13 = vadd.f32 %v3104_v26, %v2991_v43  ;;  %v2993_v51 = vpop.f32.mrf.mxu0 }
 0x224   : > { %v3106_v21 = vpop.f32.mrf.mxu1 }
 0x225   : > { %v7147_v22 = vadd.f32 %v3105_v13, %v6845_v38  ;;  %v3107_v39 = vadd.f32 %v3106_v21, %v2993_v51  ;;  %v2997_v53 = vpop.f32.mrf.mxu0  ;;  %v7708_v51 = vld [vmem:[#allocation7_spill] sm:$0xff] }
 0x226   : > { %v3110_v63 = vpop.f32.mrf.mxu1  ;;  %v2558_v21 = vadd.f32 %v6889_v45, %v7708_v51 }
 0x227   : > { %v7150_v31 = vadd.f32 %v3107_v39, %v6850_v48  ;;  %v3111_v59 = vadd.f32 %v3110_v63, %v2997_v53  ;;  %v2999_v27 = vpop.f32.mrf.mxu0 }
 0x228   : > { %v3112_v7 = vpop.f32.mrf.mxu1 }
 0x229   : > { %v7153_v46 = vadd.f32 %v3111_v59, %v6861_v15  ;;  %v3113_v17 = vadd.f32 %v3112_v7, %v2999_v27  ;;  %v3001_v50 = vpop.f32.mrf.mxu0 }
 0x22a   : > { %v3114_v61 = vpop.f32.mrf.mxu1 }
 0x22b   : > { %v7156_v43 = vadd.f32 %v3113_v17, %v6864_v16  ;;  %v3115_v38 = vadd.f32 %v3114_v61, %v3001_v50  ;;  %v3003_v26 = vpop.f32.mrf.mxu0  ;;  %v2671_v16 = vadd.f32 %v6891_v62, %v2558_v21  ;;  %v7709_v17 = vld [vmem:[#allocation9_spill] sm:$0xff] }
 0x22c   : > { %v3116_v13 = vpop.f32.mrf.mxu1  ;;  %v2562_v50 = vadd.f32 %v6902_v55, %v7709_v17 }
 0x22d   : > { %v7161_v48 = vadd.f32 %v3115_v38, %v6873_v54  ;;  %v3117_v39 = vadd.f32 %v3116_v13, %v3003_v26  ;;  %v3007_v53 = vpop.f32.mrf.mxu0 }
 0x22e   : > { %v3120_v63 = vpop.f32.mrf.mxu1 }
 0x22f   : > { %v7164_v15 = vadd.f32 %v3117_v39, %v6878_v8  ;;  %v3121_v59 = vadd.f32 %v3120_v63, %v3007_v53  ;;  %v3009_v27 = vpop.f32.mrf.mxu0  ;;  %v2675_v39 = vadd.f32 %v6904_v3, %v2562_v50  ;;  %v7710_v53 = vld [vmem:[#allocation11_spill] sm:$0xff] }
 0x230   : > { %v3122_v7 = vpop.f32.mrf.mxu1  ;;  %v2568_v63 = vadd.f32 %v6919_v20, %v7710_v53  ;;  %v7712_v53 = vld [vmem:[#allocation15_spill] sm:$0xff] }
 0x231   : > { %v7170_v61 = vadd.f32 %v3121_v59, %v6893_v41  ;;  %v3123_v45 = vadd.f32 %v3122_v7, %v3009_v27  ;;  %v3011_v54 = vpop.f32.mrf.mxu0 }
 0x232   : > { %v3124_v38 = vpop.f32.mrf.mxu1  ;;  %v2681_v17 = vadd.f32 %v6921_v9, %v2568_v63 }
 0x233   : > { %v7172_v26 = vadd.f32 %v3123_v45, %v2671_v16  ;;  %v3125_v13 = vadd.f32 %v3124_v38, %v3011_v54  ;;  %v3013_v51 = vpop.f32.mrf.mxu0  ;;  %v7711_v45 = vld [vmem:[#allocation13_spill] sm:$0xff] }
 0x234   : > { %v3126_v8 = vpop.f32.mrf.mxu1  ;;  %v2572_v54 = vadd.f32 %v6932_v35, %v7711_v45 }
 0x235   : > { %v7178_v62 = vadd.f32 %v3125_v13, %v6906_v0  ;;  %v3127_v55 = vadd.f32 %v3126_v8, %v3013_v51  ;;  %v3017_v21 = vpop.f32.mrf.mxu0 }
 0x236   : > { %v3130_v41 = vpop.f32.mrf.mxu1 }
 0x237   : > { %v7180_v59 = vadd.f32 %v3127_v55, %v2675_v39  ;;  %v3131_v27 = vadd.f32 %v3130_v41, %v3017_v21  ;;  %v3019_v7 = vpop.f32.mrf.mxu0  ;;  %v2685_v39 = vadd.f32 %v6934_v6, %v2572_v54  ;;  %v2578_v55 = vadd.f32 %v6949_v37, %v7712_v53 }
 0x238   : > { %v3132_v16 = vpop.f32.mrf.mxu1 }
 0x239   : > { %v7186_v3 = vadd.f32 %v3131_v27, %v6923_v36  ;;  %v3133_v20 = vadd.f32 %v3132_v16, %v3019_v7  ;;  %v3021_v50 = vpop.f32.mrf.mxu0  ;;  %v2691_v16 = vadd.f32 %v6951_v23, %v2578_v55  ;;  %v7715_v23 = vld [vmem:[#allocation44_spill] sm:$0xff] }
 0x23a   : > { %v3134_v0 = vpop.f32.mrf.mxu1 }
 0x23b   : > { %v7188_v38 = vadd.f32 %v3133_v20, %v2681_v17  ;;  %v3135_v13 = vadd.f32 %v3134_v0, %v3021_v50  ;;  %v3023_v51 = vpop.f32.mrf.mxu0  ;;  %v7713_v17 = vld [vmem:[#allocation17_spill] sm:$0xff] }
 0x23c   : > { %v3136_v8 = vpop.f32.mrf.mxu1  ;;  %v2582_v45 = vadd.f32 %v6962_v57, %v7713_v17  ;;  %v7718_v17 = vld [vmem:[#allocation47_spill] sm:$0xff] }
 0x23d   : > { %v7194_v9 = vadd.f32 %v3135_v13, %v6936_v42  ;;  %v3137_v35 = vadd.f32 %v3136_v8, %v3023_v51  ;;  %v3027_v63 = vpop.f32.mrf.mxu0  ;;  %v7714_v8 = vld [vmem:[#allocation19_spill] sm:$0xff] }
 0x23e   : > { %v3140_v36 = vpop.f32.mrf.mxu1  ;;  %v2695_v51 = vadd.f32 %v6964_v30, %v2582_v45  ;;  %v7719_v30 = vld [vmem:[#allocation46_spill] sm:$0xff] }
 0x23f   : > { %v7196_v21 = vadd.f32 %v3137_v35, %v2685_v39  ;;  %v3141_v41 = vadd.f32 %v3140_v36, %v3027_v63  ;;  %v3029_v27 = vpop.f32.mrf.mxu0  ;;  %v2588_v39 = vadd.f32 %v6977_v18, %v7714_v8  ;;  %v7720_v8 = vld [vmem:[#allocation48_spill] sm:$0xff] }
 0x240   : > { %v3142_v7 = vpop.f32.mrf.mxu1 }
 0x241   : > { %v7202_v6 = vadd.f32 %v3141_v41, %v6953_v49  ;;  %v3143_v37 = vadd.f32 %v3142_v7, %v3029_v27  ;;  %v3031_v54 = vpop.f32.mrf.mxu0  ;;  %v7716_v27 = vld [vmem:[#allocation45_spill] sm:$0xff] }
 0x242   : > { %v3144_v42 = vpop.f32.mrf.mxu1  ;;  %v2701_v7 = vadd.f32 %v7716_v27, %v2588_v39 }
 0x243   : > { %v7204_v20 = vadd.f32 %v3143_v37, %v2691_v16  ;;  %v3145_v50 = vadd.f32 %v3144_v42, %v3031_v54  ;;  %v3033_v0 = vpop.f32.mrf.mxu0  ;;  %v7717_v16 = vld [vmem:[#allocation21_spill] sm:$0xff] }
 0x244   : > { %v3146_v13 = vpop.f32.mrf.mxu1  ;;  %v2592_v37 = vadd.f32 %v7718_v17, %v7717_v16 }
 0x245   : > { %v7210_v53 = vadd.f32 %v3145_v50, %v7715_v23  ;;  %v3147_v57 = vadd.f32 %v3146_v13, %v3033_v0  ;;  %v3037_v55 = vpop.f32.mrf.mxu0 }
 0x246   : > { %v3150_v49 = vpop.f32.mrf.mxu1  ;;  %v2705_v23 = vadd.f32 %v7720_v8, %v2592_v37  ;;  %v7724_v8 = vld [vmem:[#allocation51_spill] sm:$0xff] }
 0x247   : > { %v7212_v35 = vadd.f32 %v3147_v57, %v2695_v51  ;;  %v3151_v63 = vadd.f32 %v3150_v49, %v3037_v55  ;;  %v3039_v36 = vpop.f32.mrf.mxu0  ;;  %v7721_v57 = vld [vmem:[#allocation49_spill] sm:$0xff] }
 0x248   : > { %v3152_v41 = vpop.f32.mrf.mxu1 }
 0x249   : > { %v7218_v45 = vadd.f32 %v3151_v63, %v7719_v30  ;;  %v3153_v18 = vadd.f32 %v3152_v41, %v3039_v36  ;;  %v3041_v54 = vpop.f32.mrf.mxu0  ;;  %v7723_v41 = vld [vmem:[#allocation50_spill] sm:$0xff] }
 0x24a   : > { %v3154_v42 = vpop.f32.mrf.mxu1 }
 0x24b   : > { %v7220_v50 = vadd.f32 %v3153_v18, %v2701_v7  ;;  %v3155_v0 = vadd.f32 %v3154_v42, %v3041_v54  ;;  %v3043_v13 = vpop.f32.mrf.mxu0  ;;  %v3449_v42 = vmul.f32 %v7117_v4, %v7117_v4 }
 0x24c   : > { %v3156_v51 = vpop.f32.mrf.mxu1 }
 0x24d   : > { %v7224_v55 = vadd.f32 %v3155_v0, %v7721_v57  ;;  %v3157_v39 = vadd.f32 %v3156_v51, %v3043_v13  ;;  %v3193_v49 = vpop.f32.mrf.mxu0  ;;  %v3450_v13 = vmul.f32 %v7120_v14, %v7120_v14  ;;  %v3452_v14 = vmul.f32 %v7126_v10, %v7126_v10 }
 0x24e   : > { %v3306_v27 = vpop.f32.mrf.mxu1  ;;  %v3454_v10 = vmul.f32 %v7132_v33, %v7132_v33  ;;  %v3456_v33 = vmul.f32 %v7138_v44, %v7138_v44  ;;  %v3458_v44 = vmul.f32 %v7144_v12, %v7144_v12  ;;  %v3460_v12 = vmul.f32 %v7150_v31, %v7150_v31 }
 0x24f   : > { %v7226_v16 = vadd.f32 %v3157_v39, %v2705_v23  ;;  %v3307_v63 = vadd.f32 %v3306_v27, %v3193_v49  ;;  %v3195_v17 = vpop.f32.mrf.mxu0  ;;  %v7725_v27 = vld [vmem:[#allocation52_spill] sm:$0xff]  ;;  %v3462_v31 = vmul.f32 %v7156_v43, %v7156_v43  ;;  %v3464_v43 = vmul.f32 %v7164_v15, %v7164_v15 }
 0x250   : > { %v3308_v36 = vpop.f32.mrf.mxu1  ;;  %v3466_v15 = vmul.f32 %v7172_v26, %v7172_v26  ;;  %v3468_v26 = vmul.f32 %v7180_v59, %v7180_v59  ;;  %v3470_v59 = vmul.f32 %v7188_v38, %v7188_v38  ;;  %v3472_v38 = vmul.f32 %v7196_v21, %v7196_v21 }
 0x251   : > { %7722 = vst [vmem:[#allocation70_spill] sm:$0xff] %v7226_v16  ;;  %v3387_v30 = vadd.f32 %v3307_v63, %v7723_v41  ;;  %v3309_v7 = vadd.f32 %v3308_v36, %v3195_v17  ;;  %v3197_v18 = vpop.f32.mrf.mxu0  ;;  %v3451_v17 = vmul.f32 %v7123_v47, %v7123_v47  ;;  %v3453_v47 = vmul.f32 %v7129_v52, %v7129_v52 }
 0x252   : > { %v3310_v54 = vpop.f32.mrf.mxu1  ;;  %v3455_v52 = vmul.f32 %v7135_v32, %v7135_v32  ;;  %v3457_v32 = vmul.f32 %v7141_v11, %v7141_v11  ;;  %v3459_v11 = vmul.f32 %v7147_v22, %v7147_v22  ;;  %v3461_v22 = vmul.f32 %v7153_v46, %v7153_v46 }
 0x253   : > { %v3481_v37 = vmul.f32 %v3387_v30, %v3387_v30  ;;  %v3388_v0 = vadd.f32 %v3309_v7, %v7724_v8  ;;  %v3311_v57 = vadd.f32 %v3310_v54, %v3197_v18  ;;  %v3199_v51 = vpop.f32.mrf.mxu0  ;;  %v7726_v30 = vld [vmem:[#allocation53_spill] sm:$0xff]  ;;  %v3463_v46 = vmul.f32 %v7161_v48, %v7161_v48 }
 0x254   : > { %v3312_v23 = vpop.f32.mrf.mxu1  ;;  %v3465_v48 = vmul.f32 %v7170_v61, %v7170_v61  ;;  %v3467_v61 = vmul.f32 %v7178_v62, %v7178_v62  ;;  %v3469_v62 = vmul.f32 %v7186_v3, %v7186_v3  ;;  %v3471_v3 = vmul.f32 %v7194_v9, %v7194_v9 }
 0x255   : > { %v3513_v39 = vadd.f32 %v3481_v37, %v3449_v42  ;;  %v3482_v49 = vmul.f32 %v3388_v0, %v3388_v0  ;;  %v3391_v16 = vadd.f32 %v3311_v57, %v7725_v27  ;;  %v3313_v63 = vadd.f32 %v3312_v23, %v3199_v51  ;;  %v3203_v36 = vpop.f32.mrf.mxu0  ;;  %v7727_v0 = vld [vmem:[#allocation54_spill] sm:$0xff] }
 0x256   : > { %v3316_v41 = vpop.f32.mrf.mxu1  ;;  %v3473_v9 = vmul.f32 %v7202_v6, %v7202_v6  ;;  %v3474_v21 = vmul.f32 %v7204_v20, %v7204_v20  ;;  %v3475_v6 = vmul.f32 %v7210_v53, %v7210_v53  ;;  %v3476_v20 = vmul.f32 %v7212_v35, %v7212_v35 }
 0x257   : > { %v3483_v4 = vmul.f32 %v3391_v16, %v3391_v16  ;;  %v3392_v2 = vadd.f32 %v3313_v63, %v7726_v30  ;;  %v3317_v7 = vadd.f32 %v3316_v41, %v3203_v36  ;;  %v3514_v18 = vadd.f32 %v3482_v49, %v3450_v13  ;;  %v3205_v54 = vpop.f32.mrf.mxu0  ;;  %v7728_v63 = vld [vmem:[#allocation55_spill] sm:$0xff]  ;;  %v7729_v30 = vld [vmem:[#allocation56_spill] sm:$0xff] }
 0x258   : > { %v3318_v8 = vpop.f32.mrf.mxu1  ;;  %v3477_v53 = vmul.f32 %v7218_v45, %v7218_v45  ;;  %v3478_v35 = vmul.f32 %v7220_v50, %v7220_v50  ;;  %v3479_v45 = vmul.f32 %v7224_v55, %v7224_v55 }
 0x259   : > { %v3515_v42 = vadd.f32 %v3483_v4, %v3451_v17  ;;  %v3484_v37 = vmul.f32 %v3392_v2, %v3392_v2  ;;  %v3395_v57 = vadd.f32 %v3317_v7, %v7727_v0  ;;  %v3319_v51 = vadd.f32 %v3318_v8, %v3205_v54  ;;  %3641 = vmatprep.mubr.f32.mxu0 %v3514_v18  ;;  %v3207_v23 = vpop.f32.mrf.mxu0  ;;  %v7730_v0 = vld [vmem:[#allocation57_spill] sm:$0xff] }
 0x25a   : > { %v3320_v16 = vpop.f32.mrf.mxu1  ;;  %3642 = vmatmul.mubr.f32.vlgmr.msra.gmra.mxu0 %v3513_v39 }
 0x25b   : > { %v3485_v27 = vmul.f32 %v3395_v57, %v3395_v57  ;;  %v3396_v13 = vadd.f32 %v3319_v51, %v7728_v63  ;;  %v3321_v49 = vadd.f32 %v3320_v16, %v3207_v23  ;;  %v3516_v36 = vadd.f32 %v3484_v37, %v3452_v14  ;;  %v3209_v17 = vpop.f32.mrf.mxu0 }
 0x25c   : > { %v3322_v2 = vpop.f32.mrf.mxu1 }
 0x25d   : > { %v3517_v41 = vadd.f32 %v3485_v27, %v3453_v47  ;;  %v3486_v4 = vmul.f32 %v3396_v13, %v3396_v13  ;;  %v3399_v7 = vadd.f32 %v3321_v49, %v7729_v30  ;;  %v3323_v18 = vadd.f32 %v3322_v2, %v3209_v17  ;;  %3646 = vmatprep.mubr.f32.mxu0 %v3516_v36  ;;  %v3213_v39 = vpop.f32.mrf.mxu0  ;;  %v7731_v27 = vld [vmem:[#allocation58_spill] sm:$0xff]  ;;  %v7732_v17 = vld [vmem:[#allocation59_spill] sm:$0xff] }
 0x25e   : > { %v3326_v54 = vpop.f32.mrf.mxu1  ;;  %3647 = vmatmul.mubr.f32.gmra.mxu0 %v3515_v42 }
 0x25f   : > { %v3487_v8 = vmul.f32 %v3399_v7, %v3399_v7  ;;  %v3400_v14 = vadd.f32 %v3323_v18, %v7730_v0  ;;  %v3327_v37 = vadd.f32 %v3326_v54, %v3213_v39  ;;  %v3518_v57 = vadd.f32 %v3486_v4, %v3454_v10  ;;  %v3215_v51 = vpop.f32.mrf.mxu0  ;;  %v7733_v39 = vld [vmem:[#allocation60_spill] sm:$0xff] }
 0x260   : > { %v3328_v47 = vpop.f32.mrf.mxu1 }
 0x261   : > { %v3519_v23 = vadd.f32 %v3487_v8, %v3455_v52  ;;  %v3488_v16 = vmul.f32 %v3400_v14, %v3400_v14  ;;  %v3403_v63 = vadd.f32 %v3327_v37, %v7731_v27  ;;  %v3329_v13 = vadd.f32 %v3328_v47, %v3215_v51  ;;  %3651 = vmatprep.mubr.f32.mxu0 %v3518_v57  ;;  %v3217_v42 = vpop.f32.mrf.mxu0  ;;  %v7734_v37 = vld [vmem:[#allocation61_spill] sm:$0xff] }
 0x262   : > { %v3330_v49 = vpop.f32.mrf.mxu1  ;;  %3652 = vmatmul.mubr.f32.gmra.mxu0 %v3517_v41 }
 0x263   : > { %v3489_v36 = vmul.f32 %v3403_v63, %v3403_v63  ;;  %v3404_v10 = vadd.f32 %v3329_v13, %v7732_v17  ;;  %v3331_v2 = vadd.f32 %v3330_v49, %v3217_v42  ;;  %v3520_v4 = vadd.f32 %v3488_v16, %v3456_v33  ;;  %v3219_v30 = vpop.f32.mrf.mxu0  ;;  %v7735_v13 = vld [vmem:[#allocation62_spill] sm:$0xff] }
 0x264   : > { %v3332_v7 = vpop.f32.mrf.mxu1 }
 0x265   : > { %v3521_v18 = vadd.f32 %v3489_v36, %v3457_v32  ;;  %v3490_v52 = vmul.f32 %v3404_v10, %v3404_v10  ;;  %v3407_v54 = vadd.f32 %v3331_v2, %v7733_v39  ;;  %v3333_v8 = vadd.f32 %v3332_v7, %v3219_v30  ;;  %3656 = vmatprep.mubr.f32.mxu0 %v3520_v4  ;;  %v3223_v41 = vpop.f32.mrf.mxu0 }
 0x266   : > { %v3336_v0 = vpop.f32.mrf.mxu1  ;;  %3657 = vmatmul.mubr.f32.gmra.mxu0 %v3519_v23 }
 0x267   : > { %v3491_v14 = vmul.f32 %v3407_v54, %v3407_v54  ;;  %v3408_v57 = vadd.f32 %v3333_v8, %v7734_v37  ;;  %v3337_v33 = vadd.f32 %v3336_v0, %v3223_v41  ;;  %v3522_v51 = vadd.f32 %v3490_v52, %v3458_v44  ;;  %v3225_v47 = vpop.f32.mrf.mxu0  ;;  %v7736_v52 = vld [vmem:[#allocation63_spill] sm:$0xff] }
 0x268   : > { %v3338_v16 = vpop.f32.mrf.mxu1 }
 0x269   : > { %v3523_v27 = vadd.f32 %v3491_v14, %v3459_v11  ;;  %v3492_v63 = vmul.f32 %v3408_v57, %v3408_v57  ;;  %v3411_v32 = vadd.f32 %v3337_v33, %v7735_v13  ;;  %v3339_v42 = vadd.f32 %v3338_v16, %v3225_v47  ;;  %3661 = vmatprep.mubr.f32.mxu0 %v3522_v51  ;;  %v3227_v23 = vpop.f32.mrf.mxu0  ;;  %v7737_v11 = vld [vmem:[#allocation64_spill] sm:$0xff] }
 0x26a   : > { %v3340_v49 = vpop.f32.mrf.mxu1  ;;  %3662 = vmatmul.mubr.f32.gmra.mxu0 %v3521_v18 }
 0x26b   : > { %v3493_v36 = vmul.f32 %v3411_v32, %v3411_v32  ;;  %v3412_v17 = vadd.f32 %v3339_v42, %v7060_v28  ;;  %v3341_v10 = vadd.f32 %v3340_v49, %v3227_v23  ;;  %v3524_v2 = vadd.f32 %v3492_v63, %v3460_v12  ;;  %v3229_v4 = vpop.f32.mrf.mxu0  ;;  %v7738_v12 = vld [vmem:[#allocation65_spill] sm:$0xff]  ;;  %v7739_v32 = vld [vmem:[#allocation66_spill] sm:$0xff] }
 0x26c   : > { %v3342_v44 = vpop.f32.mrf.mxu1 }
 0x26d   : > { %v3525_v30 = vadd.f32 %v3493_v36, %v3461_v22  ;;  %v3494_v7 = vmul.f32 %v3412_v17, %v3412_v17  ;;  %v3415_v39 = vadd.f32 %v3341_v10, %v7736_v52  ;;  %v3343_v54 = vadd.f32 %v3342_v44, %v3229_v4  ;;  %3666 = vmatprep.mubr.f32.mxu0 %v3524_v2  ;;  %v3233_v18 = vpop.f32.mrf.mxu0  ;;  %v7740_v2 = vld [vmem:[#allocation67_spill] sm:$0xff] }
 0x26e   : > { %v3346_v8 = vpop.f32.mrf.mxu1  ;;  %3667 = vmatmul.mubr.f32.gmra.mxu0 %v3523_v27 }
 0x26f   : > { %v3495_v28 = vmul.f32 %v3415_v39, %v3415_v39  ;;  %v3416_v41 = vadd.f32 %v3343_v54, %v7737_v11  ;;  %v3347_v0 = vadd.f32 %v3346_v8, %v3233_v18  ;;  %v3526_v14 = vadd.f32 %v3494_v7, %v3462_v31  ;;  %v3235_v37 = vpop.f32.mrf.mxu0 }
 0x270   : > { %v3348_v57 = vpop.f32.mrf.mxu1 }
 0x271   : > { %v3527_v33 = vadd.f32 %v3495_v28, %v3463_v46  ;;  %v3496_v51 = vmul.f32 %v3416_v41, %v3416_v41  ;;  %v3419_v47 = vadd.f32 %v3347_v0, %v7738_v12  ;;  %v3349_v16 = vadd.f32 %v3348_v57, %v3235_v37  ;;  %3671 = vmatprep.mubr.f32.mxu0 %v3526_v14  ;;  %v3237_v27 = vpop.f32.mrf.mxu0 }
 0x272   : > { %v3350_v63 = vpop.f32.mrf.mxu1  ;;  %3672 = vmatmul.mubr.f32.gmra.mxu0 %v3525_v30 }
 0x273   : > { %v3497_v13 = vmul.f32 %v3419_v47, %v3419_v47  ;;  %v3420_v42 = vadd.f32 %v3349_v16, %v7739_v32  ;;  %v3351_v22 = vadd.f32 %v3350_v63, %v3237_v27  ;;  %v3528_v23 = vadd.f32 %v3496_v51, %v3464_v43  ;;  %v3239_v49 = vpop.f32.mrf.mxu0 }
 0x274   : > { %v3352_v36 = vpop.f32.mrf.mxu1 }
 0x275   : > { %v3529_v17 = vadd.f32 %v3497_v13, %v3465_v48  ;;  %v3498_v10 = vmul.f32 %v3420_v42, %v3420_v42  ;;  %v3423_v31 = vadd.f32 %v3351_v22, %v7740_v2  ;;  %v3353_v4 = vadd.f32 %v3352_v36, %v3239_v49  ;;  %3676 = vmatprep.mubr.f32.mxu0 %v3528_v23  ;;  %v3243_v44 = vpop.f32.mrf.mxu0 }
 0x276   : > { %v3356_v30 = vpop.f32.mrf.mxu1  ;;  %3677 = vmatmul.mubr.f32.gmra.mxu0 %v3527_v33 }
 0x277   : > { %v3499_v7 = vmul.f32 %v3423_v31, %v3423_v31  ;;  %v3424_v52 = vadd.f32 %v3353_v4, %v7078_v29  ;;  %v3357_v39 = vadd.f32 %v3356_v30, %v3243_v44  ;;  %v3530_v54 = vadd.f32 %v3498_v10, %v3466_v15  ;;  %v3245_v46 = vpop.f32.mrf.mxu0 }
 0x278   : > { %v3358_v18 = vpop.f32.mrf.mxu1 }
 0x279   : > { %v3531_v8 = vadd.f32 %v3499_v7, %v3467_v61  ;;  %v3500_v28 = vmul.f32 %v3424_v52, %v3424_v52  ;;  %v3427_v11 = vadd.f32 %v3357_v39, %v7081_v5  ;;  %v3359_v41 = vadd.f32 %v3358_v18, %v3245_v46  ;;  %3681 = vmatprep.mubr.f32.mxu1 %v3530_v54  ;;  %v3247_v0 = vpop.f32.mrf.mxu0 }
 0x27a   : > { %v3360_v14 = vpop.f32.mrf.mxu1  ;;  %3682 = vmatmul.mubr.f32.vlgmr.msra.gmra.mxu1 %v3529_v17 }
 0x27b   : > { %v3501_v29 = vmul.f32 %v3427_v11, %v3427_v11  ;;  %v3428_v43 = vadd.f32 %v3359_v41, %v7084_v24  ;;  %v3361_v37 = vadd.f32 %v3360_v14, %v3247_v0  ;;  %v3532_v57 = vadd.f32 %v3500_v28, %v3468_v26  ;;  %v3249_v33 = vpop.f32.mrf.mxu0  ;;  %v7741_v11 = vld [vmem:[#allocation68_spill] sm:$0xff] }
 0x27c   : > { %v3362_v51 = vpop.f32.mrf.mxu1 }
 0x27d   : > { %v3533_v12 = vadd.f32 %v3501_v29, %v3469_v62  ;;  %v3502_v5 = vmul.f32 %v3428_v43, %v3428_v43  ;;  %v3431_v47 = vadd.f32 %v3361_v37, %v7087_v60  ;;  %v3363_v16 = vadd.f32 %v3362_v51, %v3249_v33  ;;  %3686 = vmatprep.mubr.f32.mxu1 %v3532_v57  ;;  %v3253_v48 = vpop.f32.mrf.mxu0 }
 0x27e   : > { %v3366_v27 = vpop.f32.mrf.mxu1  ;;  %3687 = vmatmul.mubr.f32.gmra.mxu1 %v3531_v8 }
 0x27f   : > { %v3503_v24 = vmul.f32 %v3431_v47, %v3431_v47  ;;  %v3432_v63 = vadd.f32 %v3363_v16, %v7090_v1  ;;  %v3367_v13 = vadd.f32 %v3366_v27, %v3253_v48  ;;  %v3534_v32 = vadd.f32 %v3502_v5, %v3470_v59  ;;  %v3255_v42 = vpop.f32.mrf.mxu0  ;;  %v7742_v16 = vld [vmem:[#allocation69_spill] sm:$0xff]  ;;  %v7743_v48 = vld [vmem:[#allocation70_spill] sm:$0xff] }
 0x280   : > { %v3368_v22 = vpop.f32.mrf.mxu1  ;;  %v3480_v27 = vmul.f32 %v7743_v48, %v7743_v48 }
 0x281   : > { %v3535_v23 = vadd.f32 %v3503_v24, %v3471_v3  ;;  %v3504_v60 = vmul.f32 %v3432_v63, %v3432_v63  ;;  %v3435_v15 = vadd.f32 %v3367_v13, %v7093_v25  ;;  %v3369_v49 = vadd.f32 %v3368_v22, %v3255_v42  ;;  %3691 = vmatprep.mubr.f32.mxu1 %v3534_v32  ;;  %v3257_v36 = vpop.f32.mrf.mxu0 }
 0x282   : > { %v3370_v17 = vpop.f32.mrf.mxu1  ;;  %3692 = vmatmul.mubr.f32.gmra.mxu1 %v3533_v12 }
 0x283   : > { %v3505_v1 = vmul.f32 %v3435_v15, %v3435_v15  ;;  %v3436_v10 = vadd.f32 %v3369_v49, %v7096_v56  ;;  %v3371_v2 = vadd.f32 %v3370_v17, %v3257_v36  ;;  %v3536_v31 = vadd.f32 %v3504_v60, %v3472_v38  ;;  %v3259_v4 = vpop.f32.mrf.mxu0 }
 0x284   : > { %v3372_v61 = vpop.f32.mrf.mxu1 }
 0x285   : > { %v3537_v44 = vadd.f32 %v3505_v1, %v3473_v9  ;;  %v3506_v25 = vmul.f32 %v3436_v10, %v3436_v10  ;;  %v3439_v30 = vadd.f32 %v3371_v2, %v7099_v19  ;;  %v3373_v7 = vadd.f32 %v3372_v61, %v3259_v4  ;;  %3696 = vmatprep.mubr.f32.mxu1 %v3536_v31  ;;  %v3263_v52 = vpop.f32.mrf.mxu0 }
 0x286   : > { %v3376_v39 = vpop.f32.mrf.mxu1  ;;  %3697 = vmatmul.mubr.f32.gmra.mxu1 %v3535_v23 }
 0x287   : > { %v3507_v56 = vmul.f32 %v3439_v30, %v3439_v30  ;;  %v3440_v54 = vadd.f32 %v3373_v7, %v7102_v40  ;;  %v3377_v26 = vadd.f32 %v3376_v39, %v3263_v52  ;;  %v3538_v46 = vadd.f32 %v3506_v25, %v3474_v21  ;;  %v3265_v18 = vpop.f32.mrf.mxu0 }
 0x288   : > { %v3378_v8 = vpop.f32.mrf.mxu1 }
 0x289   : > { %v3539_v28 = vadd.f32 %v3507_v56, %v3475_v6  ;;  %v3508_v19 = vmul.f32 %v3440_v54, %v3440_v54  ;;  %v3443_v41 = vadd.f32 %v3377_v26, %v7741_v11  ;;  %v3379_v62 = vadd.f32 %v3378_v8, %v3265_v18  ;;  %3701 = vmatprep.mubr.f32.mxu1 %v3538_v46  ;;  %v3267_v0 = vpop.f32.mrf.mxu0 }
 0x28a   : > { %v3380_v14 = vpop.f32.mrf.mxu1  ;;  %3702 = vmatmul.mubr.f32.gmra.mxu1 %v3537_v44 }
 0x28b   : > { %v3509_v40 = vmul.f32 %v3443_v41, %v3443_v41  ;;  %v3444_v29 = vadd.f32 %v3379_v62, %v7108_v34  ;;  %v3381_v43 = vadd.f32 %v3380_v14, %v3267_v0  ;;  %v3540_v37 = vadd.f32 %v3508_v19, %v3476_v20  ;;  %v3269_v57 = vpop.f32.mrf.mxu0 }
 0x28c   : > { %v3382_v59 = vpop.f32.mrf.mxu1 }
 0x28d   : > { %v3541_v33 = vadd.f32 %v3509_v40, %v3477_v53  ;;  %v3510_v51 = vmul.f32 %v3444_v29, %v3444_v29  ;;  %v3447_v12 = vadd.f32 %v3381_v43, %v7111_v58  ;;  %v3383_v5 = vadd.f32 %v3382_v59, %v3269_v57  ;;  %3706 = vmatprep.mubr.f32.mxu1 %v3540_v37 }
 0x28e   : > { %3707 = vmatmul.mubr.f32.gmra.mxu1 %v3539_v28 }
 0x28f   : > { %v3511_v47 = vmul.f32 %v3447_v12, %v3447_v12  ;;  %v3448_v34 = vadd.f32 %v3383_v5, %v7742_v16  ;;  %v3542_v3 = vadd.f32 %v3510_v51, %v3478_v35 }
 0x291   : > { %v3543_v50 = vadd.f32 %v3511_v47, %v3479_v45  ;;  %v3512_v24 = vmul.f32 %v3448_v34, %v3448_v34  ;;  %3711 = vmatprep.mubr.f32.mxu1 %v3542_v3 }
 0x292   : > { %3712 = vmatmul.mubr.f32.gmra.mxu1 %v3541_v33 }
 0x293   : > { %v3544_v63 = vadd.f32 %v3512_v24, %v3480_v27 }
 0x295   : > { %3716 = vmatprep.mubr.f32.mxu1 %v3544_v63 }
 0x296   : > { %3717 = vmatmul.mubr.f32.gmra.mxu1 %v3543_v50 }
 0x31a   : > { %v4237_v58 = vpop.f32.mrf.mxu0 }
 0x31c   : > { %v4238_v13 = vpop.f32.mrf.mxu0 }
 0x31d   : > { %v4239_v32 = vadd.f32 %v4238_v13, %v4237_v58 }
 0x31e   : > { %v4240_v38 = vpop.f32.mrf.mxu0 }
 0x31f   : > { %v3722_v42 = vmax.f32 %v4239_v32, 1e-10 }
 0x320   : > { %v4241_v55 = vpop.f32.mrf.mxu0 }
 0x321   : > { %4725 = vlog2.f32 %v3722_v42  ;;  %v4242_v22 = vadd.f32 %v4241_v55, %v4240_v38 }
 0x322   : > { %v4243_v23 = vpop.f32.mrf.mxu0 }
 0x323   : > { %v3723_v60 = vmax.f32 %v4242_v22, 1e-10 }
 0x324   : > { %v4244_v15 = vpop.f32.mrf.mxu0 }
 0x325   : > { %4727 = vlog2.f32 %v3723_v60  ;;  %v4245_v49 = vadd.f32 %v4244_v15, %v4243_v23 }
 0x326   : > { %v4246_v9 = vpop.f32.mrf.mxu0 }
 0x327   : > { %v3724_v36 = vmax.f32 %v4245_v49, 1e-10 }
 0x328   : > { %v4247_v17 = vpop.f32.mrf.mxu0 }
 0x329   : > { %4729 = vlog2.f32 %v3724_v36  ;;  %v4248_v1 = vadd.f32 %v4247_v17, %v4246_v9 }
 0x32a   : > { %v4249_v10 = vpop.f32.mrf.mxu0 }
 0x32b   : > { %v3725_v2 = vmax.f32 %v4248_v1, 1e-10 }
 0x32c   : > { %v4250_v31 = vpop.f32.mrf.mxu0 }
 0x32d   : > { %4731 = vlog2.f32 %v3725_v2  ;;  %v4251_v21 = vadd.f32 %v4250_v31, %v4249_v10 }
 0x32e   : > { %v4726_v4 = vpop.eup %4725  ;;  %v4252_v61 = vpop.f32.mrf.mxu0 }
 0x32f   : > { %v3726_v44 = vmax.f32 %v4251_v21, 1e-10  ;;  %v3739_v25 = vmul.f32 0.6931472, %v4726_v4 }
 0x330   : > { %v4253_v30 = vpop.f32.mrf.mxu0 }
 0x331   : > { %4733 = vlog2.f32 %v3726_v44  ;;  %v4254_v7 = vadd.f32 %v4253_v30, %v4252_v61  ;;  %v3770_v6 = vmul.f32 0.4342945, %v3739_v25 }
 0x332   : > { %v4728_v52 = vpop.eup %4727  ;;  %v4255_v39 = vpop.f32.mrf.mxu0 }
 0x333   : > { %v3727_v56 = vmax.f32 %v4254_v7, 1e-10  ;;  %v3786_v54 = vmul.f32 10.0, %v3770_v6  ;;  %v3741_v26 = vmul.f32 0.6931472, %v4728_v52 }
 0x334   : > { %v4256_v46 = vpop.f32.mrf.mxu0 }
 0x335   : > { %4735 = vlog2.f32 %v3727_v56  ;;  %v4257_v20 = vadd.f32 %v4256_v46, %v4255_v39  ;;  %3802 = vxpose.xlu0.b32.start [1/16] %v3786_v54, 128  ;;  %v3771_v18 = vmul.f32 0.4342945, %v3741_v26 }
 0x336   : > { %v4730_v8 = vpop.eup %4729  ;;  %v4258_v28 = vpop.f32.mrf.mxu0 }
 0x337   : > { %v3728_v19 = vmax.f32 %v4257_v20, 1e-10  ;;  %v3787_v11 = vmul.f32 10.0, %v3771_v18  ;;  %v3743_v41 = vmul.f32 0.6931472, %v4730_v8 }
 0x338   : > { %v4259_v62 = vpop.f32.mrf.mxu0 }
 0x339   : > { %4737 = vlog2.f32 %v3728_v19  ;;  %v4260_v53 = vadd.f32 %v4259_v62, %v4258_v28  ;;  %3803 = vxpose.xlu0.b32.cont [2/16] %v3787_v11, 128  ;;  %v3772_v0 = vmul.f32 0.4342945, %v3743_v41 }
 0x33a   : > { %v4732_v14 = vpop.eup %4731  ;;  %v4261_v40 = vpop.f32.mrf.mxu1 }
 0x33b   : > { %v3729_v29 = vmax.f32 %v4260_v53, 1e-10  ;;  %v3788_v43 = vmul.f32 10.0, %v3772_v0  ;;  %v3745_v37 = vmul.f32 0.6931472, %v4732_v14 }
 0x33c   : > { %v4262_v35 = vpop.f32.mrf.mxu1 }
 0x33d   : > { %4739 = vlog2.f32 %v3729_v29  ;;  %v4263_v57 = vadd.f32 %v4262_v35, %v4261_v40  ;;  %3804 = vxpose.xlu0.b32.cont [3/16] %v3788_v43, 128  ;;  %v3773_v59 = vmul.f32 0.4342945, %v3745_v37 }
 0x33e   : > { %v4734_v33 = vpop.eup %4733  ;;  %v4264_v51 = vpop.f32.mrf.mxu1 }
 0x33f   : > { %v3730_v12 = vmax.f32 %v4263_v57, 1e-10  ;;  %v3789_v5 = vmul.f32 10.0, %v3773_v59  ;;  %v3747_v45 = vmul.f32 0.6931472, %v4734_v33 }
 0x340   : > { %v4265_v47 = vpop.f32.mrf.mxu1 }
 0x341   : > { %4741 = vlog2.f32 %v3730_v12  ;;  %v4266_v16 = vadd.f32 %v4265_v47, %v4264_v51  ;;  %3805 = vxpose.xlu0.b32.cont [4/16] %v3789_v5, 128  ;;  %v3774_v34 = vmul.f32 0.4342945, %v3747_v45 }
 0x342   : > { %v4736_v3 = vpop.eup %4735  ;;  %v4267_v48 = vpop.f32.mrf.mxu1 }
 0x343   : > { %v3731_v27 = vmax.f32 %v4266_v16, 1e-10  ;;  %v3790_v50 = vmul.f32 10.0, %v3774_v34  ;;  %v3749_v24 = vmul.f32 0.6931472, %v4736_v3 }
 0x344   : > { %v4268_v63 = vpop.f32.mrf.mxu1 }
 0x345   : > { %4743 = vlog2.f32 %v3731_v27  ;;  %v4269_v58 = vadd.f32 %v4268_v63, %v4267_v48  ;;  %3806 = vxpose.xlu0.b32.cont [5/16] %v3790_v50, 128  ;;  %v3775_v13 = vmul.f32 0.4342945, %v3749_v24 }
 0x346   : > { %v4738_v32 = vpop.eup %4737  ;;  %v4270_v38 = vpop.f32.mrf.mxu1 }
 0x347   : > { %v3732_v42 = vmax.f32 %v4269_v58, 1e-10  ;;  %v3791_v55 = vmul.f32 10.0, %v3775_v13  ;;  %v3751_v22 = vmul.f32 0.6931472, %v4738_v32 }
 0x348   : > { %v4271_v23 = vpop.f32.mrf.mxu1 }
 0x349   : > { %4745 = vlog2.f32 %v3732_v42  ;;  %v4272_v60 = vadd.f32 %v4271_v23, %v4270_v38  ;;  %3807 = vxpose.xlu0.b32.cont [6/16] %v3791_v55, 128  ;;  %v3776_v15 = vmul.f32 0.4342945, %v3751_v22 }
 0x34a   : > { %v4740_v49 = vpop.eup %4739  ;;  %v4273_v9 = vpop.f32.mrf.mxu1 }
 0x34b   : > { %v3733_v36 = vmax.f32 %v4272_v60, 1e-10  ;;  %v3792_v17 = vmul.f32 10.0, %v3776_v15  ;;  %v3753_v1 = vmul.f32 0.6931472, %v4740_v49 }
 0x34c   : > { %v4274_v10 = vpop.f32.mrf.mxu1 }
 0x34d   : > { %4747 = vlog2.f32 %v3733_v36  ;;  %v4275_v2 = vadd.f32 %v4274_v10, %v4273_v9  ;;  %3808 = vxpose.xlu0.b32.cont [7/16] %v3792_v17, 128  ;;  %v3777_v31 = vmul.f32 0.4342945, %v3753_v1 }
 0x34e   : > { %v4742_v21 = vpop.eup %4741  ;;  %v4276_v4 = vpop.f32.mrf.mxu1 }
 0x34f   : > { %v3734_v61 = vmax.f32 %v4275_v2, 1e-10  ;;  %v3793_v44 = vmul.f32 10.0, %v3777_v31  ;;  %v3755_v25 = vmul.f32 0.6931472, %v4742_v21 }
 0x350   : > { %v4277_v30 = vpop.f32.mrf.mxu1 }
 0x351   : > { %4749 = vlog2.f32 %v3734_v61  ;;  %v4278_v7 = vadd.f32 %v4277_v30, %v4276_v4  ;;  %3809 = vxpose.xlu0.b32.cont [8/16] %v3793_v44, 128  ;;  %v3778_v6 = vmul.f32 0.4342945, %v3755_v25 }
 0x352   : > { %v4744_v52 = vpop.eup %4743  ;;  %v4279_v39 = vpop.f32.mrf.mxu1 }
 0x353   : > { %v3735_v56 = vmax.f32 %v4278_v7, 1e-10  ;;  %v3794_v54 = vmul.f32 10.0, %v3778_v6  ;;  %v3757_v26 = vmul.f32 0.6931472, %v4744_v52 }
 0x354   : > { %v4280_v46 = vpop.f32.mrf.mxu1 }
 0x355   : > { %4751 = vlog2.f32 %v3735_v56  ;;  %v4281_v20 = vadd.f32 %v4280_v46, %v4279_v39  ;;  %3810 = vxpose.xlu0.b32.cont [9/16] %v3794_v54, 128  ;;  %v3779_v18 = vmul.f32 0.4342945, %v3757_v26 }
 0x356   : > { %v4746_v8 = vpop.eup %4745  ;;  %v4282_v28 = vpop.f32.mrf.mxu1 }
 0x357   : > { %v3736_v19 = vmax.f32 %v4281_v20, 1e-10  ;;  %v3795_v11 = vmul.f32 10.0, %v3779_v18  ;;  %v3759_v41 = vmul.f32 0.6931472, %v4746_v8 }
 0x358   : > { %v4283_v62 = vpop.f32.mrf.mxu1 }
 0x359   : > { %4753 = vlog2.f32 %v3736_v19  ;;  %v4284_v53 = vadd.f32 %v4283_v62, %v4282_v28  ;;  %3811 = vxpose.xlu0.b32.cont [10/16] %v3795_v11, 128  ;;  %v3780_v0 = vmul.f32 0.4342945, %v3759_v41 }
 0x35a   : > { %v4748_v14 = vpop.eup %4747 }
 0x35b   : > { %v3737_v40 = vmax.f32 %v4284_v53, 1e-10  ;;  %v3796_v29 = vmul.f32 10.0, %v3780_v0  ;;  %v3761_v43 = vmul.f32 0.6931472, %v4748_v14 }
 0x35d   : > { %4755 = vlog2.f32 %v3737_v40  ;;  %3812 = vxpose.xlu0.b32.cont [11/16] %v3796_v29, 128  ;;  %v3781_v37 = vmul.f32 0.4342945, %v3761_v43 }
 0x35e   : > { %v4750_v35 = vpop.eup %4749 }
 0x35f   : > { %v3797_v57 = vmul.f32 10.0, %v3781_v37  ;;  %v3763_v59 = vmul.f32 0.6931472, %v4750_v35 }
 0x361   : > { %3813 = vxpose.xlu0.b32.cont [12/16] %v3797_v57, 128  ;;  %v3782_v33 = vmul.f32 0.4342945, %v3763_v59 }
 0x362   : > { %v4752_v51 = vpop.eup %4751 }
 0x363   : > { %v3798_v12 = vmul.f32 10.0, %v3782_v33  ;;  %v3765_v5 = vmul.f32 0.6931472, %v4752_v51 }
 0x365   : > { %3814 = vxpose.xlu0.b32.cont [13/16] %v3798_v12, 128  ;;  %v3783_v45 = vmul.f32 0.4342945, %v3765_v5 }
 0x366   : > { %v4754_v47 = vpop.eup %4753 }
 0x367   : > { %v3799_v16 = vmul.f32 10.0, %v3783_v45  ;;  %v3767_v34 = vmul.f32 0.6931472, %v4754_v47 }
 0x369   : > { %3815 = vxpose.xlu0.b32.cont [14/16] %v3799_v16, 128  ;;  %v3784_v3 = vmul.f32 0.4342945, %v3767_v34 }
 0x36a   : > { %v4756_v48 = vpop.eup %4755 }
 0x36b   : > { %v3800_v27 = vmul.f32 10.0, %v3784_v3  ;;  %v3769_v50 = vmul.f32 0.6931472, %v4756_v48 }
 0x36d   : > { %3816 = vxpose.xlu0.b32.cont [15/16] %v3800_v27, 128  ;;  %v3785_v24 = vmul.f32 0.4342945, %v3769_v50 }
 0x36f   : > { %v3801_v63 = vmul.f32 10.0, %v3785_v24 }
 0x371   : > { %3817 = vxpose.xlu0.b32.end [16/16] %v3801_v63, 128 }
 0x3b1   : > { %v3818_v58 = vpop.trf.xlu0 }
 0x3b2   : > { %3834 = vst [vmem:[%s7328_s28] sm:$0xff] %v3818_v58 }
 0x3b5   : > { %v3819_v13 = vpop.trf.xlu0 }
 0x3b6   : > { %3835 = vst [vmem:[%s7328_s28 + $0x8] sm:$0xff] %v3819_v13 }
 0x3b9   : > { %v3820_v32 = vpop.trf.xlu0 }
 0x3ba   : > { %3836 = vst [vmem:[%s7328_s28 + $0x10] sm:$0xff] %v3820_v32 }
 0x3bd   : > { %v3821_v38 = vpop.trf.xlu0 }
 0x3be   : > { %3837 = vst [vmem:[%s7328_s28 + $0x18] sm:$0xff] %v3821_v38 }
 0x3c1   : > { %v3822_v42 = vpop.trf.xlu0 }
 0x3c2   : > { %3838 = vst [vmem:[%s7328_s28 + $0x20] sm:$0xff] %v3822_v42 }
 0x3c5   : > { %v3823_v55 = vpop.trf.xlu0 }
 0x3c6   : > { %3839 = vst [vmem:[%s7328_s28 + $0x28] sm:$0xff] %v3823_v55 }
 0x3c9   : > { %v3824_v22 = vpop.trf.xlu0 }
 0x3ca   : > { %3840 = vst [vmem:[%s7328_s28 + $0x30] sm:$0xff] %v3824_v22 }
 0x3cd   : > { %v3825_v23 = vpop.trf.xlu0 }
 0x3ce   : > { %3841 = vst [vmem:[%s7328_s28 + $0x38] sm:$0xff] %v3825_v23 }
 0x3d1   : > { %v3826_v60 = vpop.trf.xlu0 }
 0x3d2   : > { %3842 = vst [vmem:[%s7328_s28 + $0x40] sm:$0xff] %v3826_v60 }
 0x3d5   : > { %v3827_v15 = vpop.trf.xlu0 }
 0x3d6   : > { %3843 = vst [vmem:[%s7328_s28 + $0x48] sm:$0xff] %v3827_v15 }
 0x3d9   : > { %v3828_v49 = vpop.trf.xlu0 }
 0x3da   : > { %3844 = vst [vmem:[%s7328_s28 + $0x50] sm:$0xff] %v3828_v49 }
 0x3dd   : > { %v3829_v9 = vpop.trf.xlu0 }
 0x3de   : > { %3845 = vst [vmem:[%s7328_s28 + $0x58] sm:$0xff] %v3829_v9 }
 0x3e1   : > { %v3830_v36 = vpop.trf.xlu0 }
 0x3e2   : > { %3846 = vst [vmem:[%s7328_s28 + $0x60] sm:$0xff] %v3830_v36 }
 0x3e5   : > { %v3831_v17 = vpop.trf.xlu0 }
 0x3e6   : > { %3847 = vst [vmem:[%s7328_s28 + $0x68] sm:$0xff] %v3831_v17 }
 0x3e9   : > { %v3832_v1 = vpop.trf.xlu0 }
 0x3ea   : > { %3848 = vst [vmem:[%s7328_s28 + $0x70] sm:$0xff] %v3832_v1 }
 0x3ed   : > { %v3833_v10 = vpop.trf.xlu0 }
 0x3ee   : > { %3849 = vst [vmem:[%s7328_s28 + $0x78] sm:$0xff] %v3833_v10 }
 0x3ef PF: > { %s14_s17 = sadd.s32 1, %s4865_s17   ;;  %s7744_s15 = smov %s4861_s16 }
 0x3f0   : > { %p11_p5 = scmp.ge.s32.totalorder %s14_s17, 4   ;;  %s7745_s16 = smov %s7747_s18 }
 0x3f2   :  { %13 = sbr.rel (!%p11_p5) target bundleno = 2 (0x2), region = 66 }

</bundles_post_ra>
